<compile_context>
chip_gen: v7x
topology: tpu7x:2x2x1
jax: 0.10.0
libtpu: 0.0.40
codegen_flags: <defaults>
</compile_context>

<pallas_src>
import functools

import jax
import jax.numpy as jnp
from jax.experimental import pallas as pl
from jax.experimental.pallas import tpu as pltpu

BN_EPS = 1e-5


# ----------------------------------------------------------------------------------
# Kernels
# ----------------------------------------------------------------------------------
def _load_taps(x_ref, row0, th, w):
    """Load the 9 shifted (th*w, Cin) source windows.

    x_ref block: (1, 3, (H+2)*W, Cin) with x_ref[0, b, h*W + j, :] = xpad[h, j + b, :].
    taps[a*3 + b][i*w + j, :]                                      = xpad[row0+a+i, j+b, :].
    """
    taps = []
    for a in range(3):
        base = pl.multiple_of((row0 + a) * w, w)
        for b in range(3):
            taps.append(x_ref[0, b, pl.ds(base, th * w), :])
    return taps


def _conv_parity(taps, w_ref, b3_ref, py, px, th, w, cp):
    """Conv3x3(pad=1) of the 2x-nearest-upsampled input, restricted to parity (py, px).

    Returns the (th*w, cp) f32 conv output (bias included) for output pixels
    (2*(row0+i)+py, 2*j+px).
    """
    acc = jnp.zeros((th * w, cp), jnp.float32)
    for dy in range(2):
        for dx in range(2):
            acc += jnp.dot(taps[(py + dy) * 3 + (px + dx)],
                           w_ref[((py * 2 + px) * 2 + dy) * 2 + dx],
                           preferred_element_type=jnp.float32)
    return acc + b3_ref[...]


def _stats_kernel(x_ref, w_ref, b3_ref, stats_ref, *, th, w, cp):
    """Pass 1: per-sample partial sum / sum-of-squares of conv3x3(+bias)."""
    t = pl.program_id(1)

    @pl.when(t == 0)
    def _init():
        stats_ref[...] = jnp.zeros_like(stats_ref)

    taps = _load_taps(x_ref, t * th, th, w)
    s = jnp.zeros((1, cp), jnp.float32)
    ss = jnp.zeros((1, cp), jnp.float32)
    for py in range(2):
        for px in range(2):
            c = _conv_parity(taps, w_ref, b3_ref, py, px, th, w, cp)
            s = s + jnp.sum(c, axis=0, keepdims=True)
            ss = ss + jnp.sum(c * c, axis=0, keepdims=True)
    stats_ref[...] = stats_ref[...] + jnp.concatenate([s, ss], axis=0)[None]


def _apply_kernel(x_ref, w_ref, b3_ref, w1_ref, scale_ref, shift_ref, out_ref,
                  *, th, w, cp):
    """Pass 2: conv3x3 -> BN(scale, shift) -> ReLU, + 1x1-conv residual, dense stores."""
    t = pl.program_id(1)
    taps = _load_taps(x_ref, t * th, th, w)

    # The 1x1 conv commutes with nearest upsample: apply it once to the centre tap
    # (the original, non-upsampled pixels) and add it to all four parity planes.
    res = jnp.dot(taps[4], w1_ref[...], preferred_element_type=jnp.float32)

    scale = scale_ref[...]
    shift = shift_ref[...]
    for py in range(2):
        for px in range(2):
            c = _conv_parity(taps, w_ref, b3_ref, py, px, th, w, cp)
            y = jnp.maximum(c * scale + shift, 0.0) + res
            out_ref[0, py * 2 + px, :, :] = y.astype(out_ref.dtype)


# ----------------------------------------------------------------------------------
# Wrapper
# ----------------------------------------------------------------------------------
def _pick_tile_rows(h, w, cin, cp, budget_bytes=10 * 1024 * 1024):
    """Largest divisor of H whose per-grid-step VMEM footprint fits the budget."""
    per_row = (8 * w * cp * 4       # double-buffered f32 output block
               + 2 * w * cp * 4     # live f32 conv / residual tiles
               + 9 * w * cin * 2)   # bf16 taps
    cap = max(1, budget_bytes // per_row)
    th = 1
    for d in range(1, h + 1):
        if h % d == 0 and d <= cap and ((d * w) % 8 == 0 or d == h):
            th = max(th, d)
    if (th * w) % 8 != 0 and th != h:   # keep the output block (8,128)-legal
        th = h
    return th


def resblock_up(x_nchw, params):
    """x_nchw: [N, Cin, H, W] float32 -> [N, Cout, 2H, 2W] float32."""
    w3, b3, gamma, beta, w1 = params        # w3: (Cout,Cin,3,3), w1: (Cout,Cin,1,1)
    N, Cin, H, W = x_nchw.shape
    Cout = w3.shape[0]
    Hu, Wu = 2 * H, 2 * W
    Cp = ((Cout + 127) // 128) * 128        # lane-dense padded channel count
    TH = _pick_tile_rows(H, W, Cin, Cp)     # source rows per grid step
    HT = H // TH

    # Boundary glue (pure XLA): NCHW -> NHWC bf16, zero-pad H/W by 1 each side, then
    # pre-build three column-shifted, (H,W)-flattened tap planes so every in-kernel
    # tap is a dense 2D load (no in-kernel reshapes or sublane-offset slices).
    x = jnp.transpose(x_nchw, (0, 2, 3, 1)).astype(jnp.bfloat16)          # (N,H,W,Cin)
    xp = jnp.pad(x, ((0, 0), (1, 1), (1, 1), (0, 0)))                     # (N,H+2,W+2,Cin)
    xsh = jnp.stack([xp[:, :, b:b + W, :].reshape(N, (H + 2) * W, Cin)
                     for b in range(3)], axis=1)                          # (N,3,(H+2)W,Cin)

    # Fold both 2x nearest upsamples into per-parity combined 2x2 weights:
    #   out[2h+py, 2w+px] = b + sum_{dy,dx} xpad[h+py+dy, w+px+dx] @ Wc[py,px,dy,dx]
    w3t = jnp.pad(jnp.transpose(w3, (2, 3, 1, 0)),
                  ((0, 0), (0, 0), (0, 0), (0, Cp - Cout)))               # (3,3,Cin,Cp)
    par = jnp.array([[[1., 0.], [0., 1.], [0., 1.]],                      # even: k -> d
                     [[1., 0.], [1., 0.], [0., 1.]]])                     # odd : k -> d
    wc = jnp.einsum('pyd,qxe,yxio->pqdeio', par, par, w3t)
    wc = wc.reshape(16, Cin, Cp).astype(jnp.bfloat16)                     # [(py,px,dy,dx)]
    b3p = jnp.pad(b3, (0, Cp - Cout)).reshape(1, Cp).astype(jnp.float32)
    w1p = jnp.pad(jnp.transpose(w1[:, :, 0, 0]),
                  ((0, 0), (0, Cp - Cout))).astype(jnp.bfloat16)          # (Cin, Cp)

    grid = (N, HT)
    x_spec = pl.BlockSpec((1, 3, (H + 2) * W, Cin), lambda n, t: (n, 0, 0, 0))
    wc_spec = pl.BlockSpec((16, Cin, Cp), lambda n, t: (0, 0, 0))
    vec_spec = pl.BlockSpec((1, Cp), lambda n, t: (0, 0))
    w1_spec = pl.BlockSpec((Cin, Cp), lambda n, t: (0, 0))

    flops_conv = 2 * 16 * N * H * W * Cin * Cp
    bytes_in = xsh.size * 2 + wc.size * 2 + b3p.size * 4
    kw = dict(th=TH, w=W, cp=Cp)

    # ---- Pass 1: per-sample partial BN statistics of conv3x3(+bias) ----
    stats_part = pl.pallas_call(
        functools.partial(_stats_kernel, **kw),
        out_shape=jax.ShapeDtypeStruct((N, 2, Cp), jnp.float32),
        grid_spec=pltpu.PrefetchScalarGridSpec(
            num_scalar_prefetch=0,
            grid=grid,
            in_specs=[x_spec, wc_spec, vec_spec],
            out_specs=pl.BlockSpec((1, 2, Cp), lambda n, t: (n, 0, 0)),
        ),
        compiler_params=pltpu.CompilerParams(
            dimension_semantics=("parallel", "arbitrary"),   # per-n accumulator, no race
            vmem_limit_bytes=32 * 1024 * 1024,
        ),
        cost_estimate=pl.CostEstimate(flops=flops_conv, transcendentals=0,
                                      bytes_accessed=bytes_in + N * 2 * Cp * 4),
    )(xsh, wc, b3p)

    # ---- exact training-mode BN stats -> fused scale/shift (tiny O(N*Cp) glue) ----
    stats = jnp.sum(stats_part, axis=0)                      # (2, Cp)
    count = float(N * Hu * Wu)
    mean = stats[0] / count
    var = jnp.maximum(stats[1] / count - mean * mean, 0.0)   # biased variance
    gp = jnp.pad(gamma, (0, Cp - Cout))
    bp = jnp.pad(beta, (0, Cp - Cout))
    scale_v = gp * jax.lax.rsqrt(var + BN_EPS)
    shift_v = bp - mean * scale_v
    scale = scale_v.reshape(1, Cp).astype(jnp.float32)
    shift = shift_v.reshape(1, Cp).astype(jnp.float32)

    # ---- Pass 2: conv recompute, BN affine + ReLU + residual, dense parity stores ----
    out_p = pl.pallas_call(
        functools.partial(_apply_kernel, **kw),
        out_shape=jax.ShapeDtypeStruct((N, 4, H * W, Cp), jnp.float32),
        grid_spec=pltpu.PrefetchScalarGridSpec(
            num_scalar_prefetch=0,
            grid=grid,
            in_specs=[x_spec, wc_spec, vec_spec, w1_spec, vec_spec, vec_spec],
            out_specs=pl.BlockSpec((1, 4, TH * W, Cp), lambda n, t: (n, 0, t, 0)),
        ),
        compiler_params=pltpu.CompilerParams(
            dimension_semantics=("parallel", "parallel"),     # independent tiles (2 TCs on v7x)
            vmem_limit_bytes=32 * 1024 * 1024,
        ),
        cost_estimate=pl.CostEstimate(
            flops=flops_conv + 2 * N * H * W * Cin * Cp, transcendentals=0,
            bytes_accessed=bytes_in + N * 4 * H * W * Cp * 4),
    )(xsh, wc, b3p, w1p, scale, shift)

    # Drop channel padding, interleave the parity planes and convert to NCHW in one
    # fused XLA copy (the NCHW transpose was needed regardless of kernel layout).
    out6 = out_p[..., :Cout].reshape(N, 2, 2, H, W, Cout)
    return jnp.transpose(out6, (0, 5, 3, 1, 4, 2)).reshape(N, Cout, Hu, Wu)


# ----------------------------------------------------------------------------------
# Params / reference / test
# ----------------------------------------------------------------------------------
def init_params(key, in_ch, out_ch):
    k3, kb, k1 = jax.random.split(key, 3)
    fan3 = in_ch * 9
    w3 = jax.random.uniform(k3, (out_ch, in_ch, 3, 3), jnp.float32,
                            -1.0 / jnp.sqrt(fan3), 1.0 / jnp.sqrt(fan3))
    b3 = jax.random.uniform(kb, (out_ch,), jnp.float32,
                            -1.0 / jnp.sqrt(fan3), 1.0 / jnp.sqrt(fan3))
    gamma = jnp.ones((out_ch,), jnp.float32)        # BN default init
    beta = jnp.zeros((out_ch,), jnp.float32)
    fan1 = in_ch
    w1 = jax.random.uniform(k1, (out_ch, in_ch, 1, 1), jnp.float32,
                            -1.0 / jnp.sqrt(fan1), 1.0 / jnp.sqrt(fan1))
    return (w3, b3, gamma, beta, w1)


def reference(x_nchw, params):
    """Pure-JAX f32 reference mirroring the PyTorch forward (training-mode BN)."""
    w3, b3, gamma, beta, w1 = params
    xu = jnp.repeat(jnp.repeat(x_nchw, 2, axis=2), 2, axis=3)
    conv = jax.lax.conv_general_dilated(
        xu, w3, (1, 1), ((1, 1), (1, 1)),
        dimension_numbers=("NCHW", "OIHW", "NCHW")) + b3[None, :, None, None]
    mean = jnp.mean(conv, axis=(0, 2, 3), keepdims=True)
    var = jnp.mean((conv - mean) ** 2, axis=(0, 2, 3), keepdims=True)
    bn = (conv - mean) * jax.lax.rsqrt(var + BN_EPS) * \
        gamma[None, :, None, None] + beta[None, :, None, None]
    up = jnp.maximum(bn, 0.0)
    res = jax.lax.conv_general_dilated(
        x_nchw, w1, (1, 1), ((0, 0), (0, 0)),
        dimension_numbers=("NCHW", "OIHW", "NCHW"))
    res = jnp.repeat(jnp.repeat(res, 2, axis=2), 2, axis=3)
    return up + res


if __name__ == "__main__":
    key = jax.random.PRNGKey(0)
    kx, kp = jax.random.split(key)
    N, Cin, Cout, H, W = 2, 4, 8, 16, 16
    x = jax.random.normal(kx, (N, Cin, H, W), jnp.float32)
    params = init_params(kp, Cin, Cout)

    out = jax.block_until_ready(jax.jit(resblock_up)(x, params))
    ref = jax.block_until_ready(reference(x, params))

    assert out.shape == (N, Cout, 2 * H, 2 * W)
    # bf16 MXU operands / f32 accumulation -> compare at bf16-appropriate tolerance.
    assert jnp.allclose(out, ref, rtol=2e-2, atol=2e-2), \
        f"max abs err = {jnp.max(jnp.abs(out - ref))}"
    print("KERNEL_OK")
</pallas_src>

<mosaic_0001>
module attributes {stable_mosaic.version = 11 : i64} {
  func.func @_stats_kernel(%arg0: i32, %arg1: i32, %arg2: memref<1x3x288x4xbf16, #tpu.memory_space<vmem>>, %arg3: memref<16x4x128xbf16, #tpu.memory_space<vmem>>, %arg4: memref<1x128xf32, #tpu.memory_space<vmem>>, %arg5: memref<1x2x128xf32, #tpu.memory_space<vmem>>) attributes {dimension_semantics = [#tpu.dimension_semantics<parallel>, #tpu.dimension_semantics<arbitrary>], iteration_bounds = array<i64: 2, 1>, scalar_prefetch = 0 : i64, scratch_operands = 0 : i64, tpu.core_type = #tpu.core_type<tc>, window_params = [{transform_indices = @transform_0, window_bounds = array<i64: 1, 3, 288, 4>}, {pipeline_mode = #tpu.pipeline_mode<synchronous>, transform_indices = @transform_1, window_bounds = array<i64: 16, 4, 128>}, {pipeline_mode = #tpu.pipeline_mode<synchronous>, transform_indices = @transform_2, window_bounds = array<i64: 1, 128>}, {transform_indices = @transform_3, window_bounds = array<i64: 1, 2, 128>}]} {
    %c0_i32 = arith.constant 0 : i32
    %0 = arith.cmpi eq, %arg1, %c0_i32 : i32
    %1 = arith.extui %0 : i1 to i32
    %c0_i32_0 = arith.constant 0 : i32
    %2 = arith.cmpi ne, %1, %c0_i32_0 : i32
    scf.if %2 {
      %cst_107 = arith.constant 0.000000e+00 : f32
      %155 = vector.broadcast %cst_107 : f32 to vector<1x2x128xf32>
      %c0_108 = arith.constant 0 : index
      %c0_109 = arith.constant 0 : index
      %c0_110 = arith.constant 0 : index
      %156 = vector.load %arg5[%c0_108, %c0_109, %c0_110] : memref<1x2x128xf32, #tpu.memory_space<vmem>>, vector<1x2x128xf32>
      tpu.vector_store %arg5[%c0_108, %c0_109, %c0_110], %155 {strides = array<i32>} : memref<1x2x128xf32, #tpu.memory_space<vmem>>, vector<1x2x128xf32>,
    } else {
    }
    %c16_i32 = arith.constant 16 : i32
    %3 = arith.muli %arg1, %c16_i32 : i32
    %c0_i32_1 = arith.constant 0 : i32
    %4 = arith.addi %3, %c0_i32_1 : i32
    %c16_i32_2 = arith.constant 16 : i32
    %5 = arith.muli %4, %c16_i32_2 : i32
    %6 = tpu.assume_multiple %5, 16 : i32
    %c0 = arith.constant 0 : index
    %c0_3 = arith.constant 0 : index
    %7 = arith.index_cast %6 : i32 to index
    %c0_4 = arith.constant 0 : index
    %8 = vector.load %arg2[%c0, %c0_3, %7, %c0_4] : memref<1x3x288x4xbf16, #tpu.memory_space<vmem>>, vector<1x1x256x4xbf16>
    %9 = vector.shape_cast %8 : vector<1x1x256x4xbf16> to vector<256x4xbf16>
    %c0_5 = arith.constant 0 : index
    %c1 = arith.constant 1 : index
    %10 = arith.index_cast %6 : i32 to index
    %c0_6 = arith.constant 0 : index
    %11 = vector.load %arg2[%c0_5, %c1, %10, %c0_6] : memref<1x3x288x4xbf16, #tpu.memory_space<vmem>>, vector<1x1x256x4xbf16>
    %12 = vector.shape_cast %11 : vector<1x1x256x4xbf16> to vector<256x4xbf16>
    %c0_7 = arith.constant 0 : index
    %c2 = arith.constant 2 : index
    %13 = arith.index_cast %6 : i32 to index
    %c0_8 = arith.constant 0 : index
    %14 = vector.load %arg2[%c0_7, %c2, %13, %c0_8] : memref<1x3x288x4xbf16, #tpu.memory_space<vmem>>, vector<1x1x256x4xbf16>
    %15 = vector.shape_cast %14 : vector<1x1x256x4xbf16> to vector<256x4xbf16>
    %c1_i32 = arith.constant 1 : i32
    %16 = arith.addi %3, %c1_i32 : i32
    %c16_i32_9 = arith.constant 16 : i32
    %17 = arith.muli %16, %c16_i32_9 : i32
    %18 = tpu.assume_multiple %17, 16 : i32
    %c0_10 = arith.constant 0 : index
    %c0_11 = arith.constant 0 : index
    %19 = arith.index_cast %18 : i32 to index
    %c0_12 = arith.constant 0 : index
    %20 = vector.load %arg2[%c0_10, %c0_11, %19, %c0_12] : memref<1x3x288x4xbf16, #tpu.memory_space<vmem>>, vector<1x1x256x4xbf16>
    %21 = vector.shape_cast %20 : vector<1x1x256x4xbf16> to vector<256x4xbf16>
    %c0_13 = arith.constant 0 : index
    %c1_14 = arith.constant 1 : index
    %22 = arith.index_cast %18 : i32 to index
    %c0_15 = arith.constant 0 : index
    %23 = vector.load %arg2[%c0_13, %c1_14, %22, %c0_15] : memref<1x3x288x4xbf16, #tpu.memory_space<vmem>>, vector<1x1x256x4xbf16>
    %24 = vector.shape_cast %23 : vector<1x1x256x4xbf16> to vector<256x4xbf16>
    %c0_16 = arith.constant 0 : index
    %c2_17 = arith.constant 2 : index
    %25 = arith.index_cast %18 : i32 to index
    %c0_18 = arith.constant 0 : index
    %26 = vector.load %arg2[%c0_16, %c2_17, %25, %c0_18] : memref<1x3x288x4xbf16, #tpu.memory_space<vmem>>, vector<1x1x256x4xbf16>
    %27 = vector.shape_cast %26 : vector<1x1x256x4xbf16> to vector<256x4xbf16>
    %c2_i32 = arith.constant 2 : i32
    %28 = arith.addi %3, %c2_i32 : i32
    %c16_i32_19 = arith.constant 16 : i32
    %29 = arith.muli %28, %c16_i32_19 : i32
    %30 = tpu.assume_multiple %29, 16 : i32
    %c0_20 = arith.constant 0 : index
    %c0_21 = arith.constant 0 : index
    %31 = arith.index_cast %30 : i32 to index
    %c0_22 = arith.constant 0 : index
    %32 = vector.load %arg2[%c0_20, %c0_21, %31, %c0_22] : memref<1x3x288x4xbf16, #tpu.memory_space<vmem>>, vector<1x1x256x4xbf16>
    %33 = vector.shape_cast %32 : vector<1x1x256x4xbf16> to vector<256x4xbf16>
    %c0_23 = arith.constant 0 : index
    %c1_24 = arith.constant 1 : index
    %34 = arith.index_cast %30 : i32 to index
    %c0_25 = arith.constant 0 : index
    %35 = vector.load %arg2[%c0_23, %c1_24, %34, %c0_25] : memref<1x3x288x4xbf16, #tpu.memory_space<vmem>>, vector<1x1x256x4xbf16>
    %36 = vector.shape_cast %35 : vector<1x1x256x4xbf16> to vector<256x4xbf16>
    %c0_26 = arith.constant 0 : index
    %c2_27 = arith.constant 2 : index
    %37 = arith.index_cast %30 : i32 to index
    %c0_28 = arith.constant 0 : index
    %38 = vector.load %arg2[%c0_26, %c2_27, %37, %c0_28] : memref<1x3x288x4xbf16, #tpu.memory_space<vmem>>, vector<1x1x256x4xbf16>
    %39 = vector.shape_cast %38 : vector<1x1x256x4xbf16> to vector<256x4xbf16>
    %cst = arith.constant 0.000000e+00 : f32
    %40 = vector.broadcast %cst : f32 to vector<1x128xf32>
    %cst_29 = arith.constant 0.000000e+00 : f32
    %41 = vector.broadcast %cst_29 : f32 to vector<1x128xf32>
    %cst_30 = arith.constant 0.000000e+00 : f32
    %42 = vector.broadcast %cst_30 : f32 to vector<256x128xf32>
    %c0_31 = arith.constant 0 : index
    %c0_32 = arith.constant 0 : index
    %c0_33 = arith.constant 0 : index
    %43 = vector.load %arg3[%c0_31, %c0_32, %c0_33] : memref<16x4x128xbf16, #tpu.memory_space<vmem>>, vector<1x4x128xbf16>
    %44 = vector.shape_cast %43 : vector<1x4x128xbf16> to vector<4x128xbf16>
    %cst_34 = arith.constant dense<0.000000e+00> : vector<256x128xf32>
    %45 = tpu.matmul %9, %44, %cst_34 {dimension_numbers = #tpu.dot_dimension_numbers<[1], [0], [0], [1], [0, 0, 1, 1], [], []>} : vector<256x4xbf16>, vector<4x128xbf16>, vector<256x128xf32> -> vector<256x128xf32>
    %46 = arith.addf %42, %45 : vector<256x128xf32>
    %c1_35 = arith.constant 1 : index
    %c0_36 = arith.constant 0 : index
    %c0_37 = arith.constant 0 : index
    %47 = vector.load %arg3[%c1_35, %c0_36, %c0_37] : memref<16x4x128xbf16, #tpu.memory_space<vmem>>, vector<1x4x128xbf16>
    %48 = vector.shape_cast %47 : vector<1x4x128xbf16> to vector<4x128xbf16>
    %cst_38 = arith.constant dense<0.000000e+00> : vector<256x128xf32>
    %49 = tpu.matmul %12, %48, %cst_38 {dimension_numbers = #tpu.dot_dimension_numbers<[1], [0], [0], [1], [0, 0, 1, 1], [], []>} : vector<256x4xbf16>, vector<4x128xbf16>, vector<256x128xf32> -> vector<256x128xf32>
    %50 = arith.addf %46, %49 : vector<256x128xf32>
    %c2_39 = arith.constant 2 : index
    %c0_40 = arith.constant 0 : index
    %c0_41 = arith.constant 0 : index
    %51 = vector.load %arg3[%c2_39, %c0_40, %c0_41] : memref<16x4x128xbf16, #tpu.memory_space<vmem>>, vector<1x4x128xbf16>
    %52 = vector.shape_cast %51 : vector<1x4x128xbf16> to vector<4x128xbf16>
    %cst_42 = arith.constant dense<0.000000e+00> : vector<256x128xf32>
    %53 = tpu.matmul %21, %52, %cst_42 {dimension_numbers = #tpu.dot_dimension_numbers<[1], [0], [0], [1], [0, 0, 1, 1], [], []>} : vector<256x4xbf16>, vector<4x128xbf16>, vector<256x128xf32> -> vector<256x128xf32>
    %54 = arith.addf %50, %53 : vector<256x128xf32>
    %c3 = arith.constant 3 : index
    %c0_43 = arith.constant 0 : index
    %c0_44 = arith.constant 0 : index
    %55 = vector.load %arg3[%c3, %c0_43, %c0_44] : memref<16x4x128xbf16, #tpu.memory_space<vmem>>, vector<1x4x128xbf16>
    %56 = vector.shape_cast %55 : vector<1x4x128xbf16> to vector<4x128xbf16>
    %cst_45 = arith.constant dense<0.000000e+00> : vector<256x128xf32>
    %57 = tpu.matmul %24, %56, %cst_45 {dimension_numbers = #tpu.dot_dimension_numbers<[1], [0], [0], [1], [0, 0, 1, 1], [], []>} : vector<256x4xbf16>, vector<4x128xbf16>, vector<256x128xf32> -> vector<256x128xf32>
    %58 = arith.addf %54, %57 : vector<256x128xf32>
    %c0_46 = arith.constant 0 : index
    %c0_47 = arith.constant 0 : index
    %59 = vector.load %arg4[%c0_46, %c0_47] : memref<1x128xf32, #tpu.memory_space<vmem>>, vector<1x128xf32>
    %60 = vector.broadcast %59 : vector<1x128xf32> to vector<256x128xf32>
    %61 = arith.addf %58, %60 : vector<256x128xf32>
    %cst_48 = arith.constant dense<0.000000e+00> : vector<128xf32>
    %62 = vector.multi_reduction <add>, %61, %cst_48 [0] : vector<256x128xf32> to vector<128xf32>
    %63 = vector.shape_cast %62 : vector<128xf32> to vector<1x128xf32>
    %64 = arith.addf %40, %63 : vector<1x128xf32>
    %65 = arith.mulf %61, %61 : vector<256x128xf32>
    %cst_49 = arith.constant dense<0.000000e+00> : vector<128xf32>
    %66 = vector.multi_reduction <add>, %65, %cst_49 [0] : vector<256x128xf32> to vector<128xf32>
    %67 = vector.shape_cast %66 : vector<128xf32> to vector<1x128xf32>
    %68 = arith.addf %41, %67 : vector<1x128xf32>
    %cst_50 = arith.constant 0.000000e+00 : f32
    %69 = vector.broadcast %cst_50 : f32 to vector<256x128xf32>
    %c4 = arith.constant 4 : index
    %c0_51 = arith.constant 0 : index
    %c0_52 = arith.constant 0 : index
    %70 = vector.load %arg3[%c4, %c0_51, %c0_52] : memref<16x4x128xbf16, #tpu.memory_space<vmem>>, vector<1x4x128xbf16>
    %71 = vector.shape_cast %70 : vector<1x4x128xbf16> to vector<4x128xbf16>
    %cst_53 = arith.constant dense<0.000000e+00> : vector<256x128xf32>
    %72 = tpu.matmul %12, %71, %cst_53 {dimension_numbers = #tpu.dot_dimension_numbers<[1], [0], [0], [1], [0, 0, 1, 1], [], []>} : vector<256x4xbf16>, vector<4x128xbf16>, vector<256x128xf32> -> vector<256x128xf32>
    %73 = arith.addf %69, %72 : vector<256x128xf32>
    %c5 = arith.constant 5 : index
    %c0_54 = arith.constant 0 : index
    %c0_55 = arith.constant 0 : index
    %74 = vector.load %arg3[%c5, %c0_54, %c0_55] : memref<16x4x128xbf16, #tpu.memory_space<vmem>>, vector<1x4x128xbf16>
    %75 = vector.shape_cast %74 : vector<1x4x128xbf16> to vector<4x128xbf16>
    %cst_56 = arith.constant dense<0.000000e+00> : vector<256x128xf32>
    %76 = tpu.matmul %15, %75, %cst_56 {dimension_numbers = #tpu.dot_dimension_numbers<[1], [0], [0], [1], [0, 0, 1, 1], [], []>} : vector<256x4xbf16>, vector<4x128xbf16>, vector<256x128xf32> -> vector<256x128xf32>
    %77 = arith.addf %73, %76 : vector<256x128xf32>
    %c6 = arith.constant 6 : index
    %c0_57 = arith.constant 0 : index
    %c0_58 = arith.constant 0 : index
    %78 = vector.load %arg3[%c6, %c0_57, %c0_58] : memref<16x4x128xbf16, #tpu.memory_space<vmem>>, vector<1x4x128xbf16>
    %79 = vector.shape_cast %78 : vector<1x4x128xbf16> to vector<4x128xbf16>
    %cst_59 = arith.constant dense<0.000000e+00> : vector<256x128xf32>
    %80 = tpu.matmul %24, %79, %cst_59 {dimension_numbers = #tpu.dot_dimension_numbers<[1], [0], [0], [1], [0, 0, 1, 1], [], []>} : vector<256x4xbf16>, vector<4x128xbf16>, vector<256x128xf32> -> vector<256x128xf32>
    %81 = arith.addf %77, %80 : vector<256x128xf32>
    %c7 = arith.constant 7 : index
    %c0_60 = arith.constant 0 : index
    %c0_61 = arith.constant 0 : index
    %82 = vector.load %arg3[%c7, %c0_60, %c0_61] : memref<16x4x128xbf16, #tpu.memory_space<vmem>>, vector<1x4x128xbf16>
    %83 = vector.shape_cast %82 : vector<1x4x128xbf16> to vector<4x128xbf16>
    %cst_62 = arith.constant dense<0.000000e+00> : vector<256x128xf32>
    %84 = tpu.matmul %27, %83, %cst_62 {dimension_numbers = #tpu.dot_dimension_numbers<[1], [0], [0], [1], [0, 0, 1, 1], [], []>} : vector<256x4xbf16>, vector<4x128xbf16>, vector<256x128xf32> -> vector<256x128xf32>
    %85 = arith.addf %81, %84 : vector<256x128xf32>
    %c0_63 = arith.constant 0 : index
    %c0_64 = arith.constant 0 : index
    %86 = vector.load %arg4[%c0_63, %c0_64] : memref<1x128xf32, #tpu.memory_space<vmem>>, vector<1x128xf32>
    %87 = vector.broadcast %86 : vector<1x128xf32> to vector<256x128xf32>
    %88 = arith.addf %85, %87 : vector<256x128xf32>
    %cst_65 = arith.constant dense<0.000000e+00> : vector<128xf32>
    %89 = vector.multi_reduction <add>, %88, %cst_65 [0] : vector<256x128xf32> to vector<128xf32>
    %90 = vector.shape_cast %89 : vector<128xf32> to vector<1x128xf32>
    %91 = arith.addf %64, %90 : vector<1x128xf32>
    %92 = arith.mulf %88, %88 : vector<256x128xf32>
    %cst_66 = arith.constant dense<0.000000e+00> : vector<128xf32>
    %93 = vector.multi_reduction <add>, %92, %cst_66 [0] : vector<256x128xf32> to vector<128xf32>
    %94 = vector.shape_cast %93 : vector<128xf32> to vector<1x128xf32>
    %95 = arith.addf %68, %94 : vector<1x128xf32>
    %cst_67 = arith.constant 0.000000e+00 : f32
    %96 = vector.broadcast %cst_67 : f32 to vector<256x128xf32>
    %c8 = arith.constant 8 : index
    %c0_68 = arith.constant 0 : index
    %c0_69 = arith.constant 0 : index
    %97 = vector.load %arg3[%c8, %c0_68, %c0_69] : memref<16x4x128xbf16, #tpu.memory_space<vmem>>, vector<1x4x128xbf16>
    %98 = vector.shape_cast %97 : vector<1x4x128xbf16> to vector<4x128xbf16>
    %cst_70 = arith.constant dense<0.000000e+00> : vector<256x128xf32>
    %99 = tpu.matmul %21, %98, %cst_70 {dimension_numbers = #tpu.dot_dimension_numbers<[1], [0], [0], [1], [0, 0, 1, 1], [], []>} : vector<256x4xbf16>, vector<4x128xbf16>, vector<256x128xf32> -> vector<256x128xf32>
    %100 = arith.addf %96, %99 : vector<256x128xf32>
    %c9 = arith.constant 9 : index
    %c0_71 = arith.constant 0 : index
    %c0_72 = arith.constant 0 : index
    %101 = vector.load %arg3[%c9, %c0_71, %c0_72] : memref<16x4x128xbf16, #tpu.memory_space<vmem>>, vector<1x4x128xbf16>
    %102 = vector.shape_cast %101 : vector<1x4x128xbf16> to vector<4x128xbf16>
    %cst_73 = arith.constant dense<0.000000e+00> : vector<256x128xf32>
    %103 = tpu.matmul %24, %102, %cst_73 {dimension_numbers = #tpu.dot_dimension_numbers<[1], [0], [0], [1], [0, 0, 1, 1], [], []>} : vector<256x4xbf16>, vector<4x128xbf16>, vector<256x128xf32> -> vector<256x128xf32>
    %104 = arith.addf %100, %103 : vector<256x128xf32>
    %c10 = arith.constant 10 : index
    %c0_74 = arith.constant 0 : index
    %c0_75 = arith.constant 0 : index
    %105 = vector.load %arg3[%c10, %c0_74, %c0_75] : memref<16x4x128xbf16, #tpu.memory_space<vmem>>, vector<1x4x128xbf16>
    %106 = vector.shape_cast %105 : vector<1x4x128xbf16> to vector<4x128xbf16>
    %cst_76 = arith.constant dense<0.000000e+00> : vector<256x128xf32>
    %107 = tpu.matmul %33, %106, %cst_76 {dimension_numbers = #tpu.dot_dimension_numbers<[1], [0], [0], [1], [0, 0, 1, 1], [], []>} : vector<256x4xbf16>, vector<4x128xbf16>, vector<256x128xf32> -> vector<256x128xf32>
    %108 = arith.addf %104, %107 : vector<256x128xf32>
    %c11 = arith.constant 11 : index
    %c0_77 = arith.constant 0 : index
    %c0_78 = arith.constant 0 : index
    %109 = vector.load %arg3[%c11, %c0_77, %c0_78] : memref<16x4x128xbf16, #tpu.memory_space<vmem>>, vector<1x4x128xbf16>
    %110 = vector.shape_cast %109 : vector<1x4x128xbf16> to vector<4x128xbf16>
    %cst_79 = arith.constant dense<0.000000e+00> : vector<256x128xf32>
    %111 = tpu.matmul %36, %110, %cst_79 {dimension_numbers = #tpu.dot_dimension_numbers<[1], [0], [0], [1], [0, 0, 1, 1], [], []>} : vector<256x4xbf16>, vector<4x128xbf16>, vector<256x128xf32> -> vector<256x128xf32>
    %112 = arith.addf %108, %111 : vector<256x128xf32>
    %c0_80 = arith.constant 0 : index
    %c0_81 = arith.constant 0 : index
    %113 = vector.load %arg4[%c0_80, %c0_81] : memref<1x128xf32, #tpu.memory_space<vmem>>, vector<1x128xf32>
    %114 = vector.broadcast %113 : vector<1x128xf32> to vector<256x128xf32>
    %115 = arith.addf %112, %114 : vector<256x128xf32>
    %cst_82 = arith.constant dense<0.000000e+00> : vector<128xf32>
    %116 = vector.multi_reduction <add>, %115, %cst_82 [0] : vector<256x128xf32> to vector<128xf32>
    %117 = vector.shape_cast %116 : vector<128xf32> to vector<1x128xf32>
    %118 = arith.addf %91, %117 : vector<1x128xf32>
    %119 = arith.mulf %115, %115 : vector<256x128xf32>
    %cst_83 = arith.constant dense<0.000000e+00> : vector<128xf32>
    %120 = vector.multi_reduction <add>, %119, %cst_83 [0] : vector<256x128xf32> to vector<128xf32>
    %121 = vector.shape_cast %120 : vector<128xf32> to vector<1x128xf32>
    %122 = arith.addf %95, %121 : vector<1x128xf32>
    %cst_84 = arith.constant 0.000000e+00 : f32
    %123 = vector.broadcast %cst_84 : f32 to vector<256x128xf32>
    %c12 = arith.constant 12 : index
    %c0_85 = arith.constant 0 : index
    %c0_86 = arith.constant 0 : index
    %124 = vector.load %arg3[%c12, %c0_85, %c0_86] : memref<16x4x128xbf16, #tpu.memory_space<vmem>>, vector<1x4x128xbf16>
    %125 = vector.shape_cast %124 : vector<1x4x128xbf16> to vector<4x128xbf16>
    %cst_87 = arith.constant dense<0.000000e+00> : vector<256x128xf32>
    %126 = tpu.matmul %24, %125, %cst_87 {dimension_numbers = #tpu.dot_dimension_numbers<[1], [0], [0], [1], [0, 0, 1, 1], [], []>} : vector<256x4xbf16>, vector<4x128xbf16>, vector<256x128xf32> -> vector<256x128xf32>
    %127 = arith.addf %123, %126 : vector<256x128xf32>
    %c13 = arith.constant 13 : index
    %c0_88 = arith.constant 0 : index
    %c0_89 = arith.constant 0 : index
    %128 = vector.load %arg3[%c13, %c0_88, %c0_89] : memref<16x4x128xbf16, #tpu.memory_space<vmem>>, vector<1x4x128xbf16>
    %129 = vector.shape_cast %128 : vector<1x4x128xbf16> to vector<4x128xbf16>
    %cst_90 = arith.constant dense<0.000000e+00> : vector<256x128xf32>
    %130 = tpu.matmul %27, %129, %cst_90 {dimension_numbers = #tpu.dot_dimension_numbers<[1], [0], [0], [1], [0, 0, 1, 1], [], []>} : vector<256x4xbf16>, vector<4x128xbf16>, vector<256x128xf32> -> vector<256x128xf32>
    %131 = arith.addf %127, %130 : vector<256x128xf32>
    %c14 = arith.constant 14 : index
    %c0_91 = arith.constant 0 : index
    %c0_92 = arith.constant 0 : index
    %132 = vector.load %arg3[%c14, %c0_91, %c0_92] : memref<16x4x128xbf16, #tpu.memory_space<vmem>>, vector<1x4x128xbf16>
    %133 = vector.shape_cast %132 : vector<1x4x128xbf16> to vector<4x128xbf16>
    %cst_93 = arith.constant dense<0.000000e+00> : vector<256x128xf32>
    %134 = tpu.matmul %36, %133, %cst_93 {dimension_numbers = #tpu.dot_dimension_numbers<[1], [0], [0], [1], [0, 0, 1, 1], [], []>} : vector<256x4xbf16>, vector<4x128xbf16>, vector<256x128xf32> -> vector<256x128xf32>
    %135 = arith.addf %131, %134 : vector<256x128xf32>
    %c15 = arith.constant 15 : index
    %c0_94 = arith.constant 0 : index
    %c0_95 = arith.constant 0 : index
    %136 = vector.load %arg3[%c15, %c0_94, %c0_95] : memref<16x4x128xbf16, #tpu.memory_space<vmem>>, vector<1x4x128xbf16>
    %137 = vector.shape_cast %136 : vector<1x4x128xbf16> to vector<4x128xbf16>
    %cst_96 = arith.constant dense<0.000000e+00> : vector<256x128xf32>
    %138 = tpu.matmul %39, %137, %cst_96 {dimension_numbers = #tpu.dot_dimension_numbers<[1], [0], [0], [1], [0, 0, 1, 1], [], []>} : vector<256x4xbf16>, vector<4x128xbf16>, vector<256x128xf32> -> vector<256x128xf32>
    %139 = arith.addf %135, %138 : vector<256x128xf32>
    %c0_97 = arith.constant 0 : index
    %c0_98 = arith.constant 0 : index
    %140 = vector.load %arg4[%c0_97, %c0_98] : memref<1x128xf32, #tpu.memory_space<vmem>>, vector<1x128xf32>
    %141 = vector.broadcast %140 : vector<1x128xf32> to vector<256x128xf32>
    %142 = arith.addf %139, %141 : vector<256x128xf32>
    %cst_99 = arith.constant dense<0.000000e+00> : vector<128xf32>
    %143 = vector.multi_reduction <add>, %142, %cst_99 [0] : vector<256x128xf32> to vector<128xf32>
    %144 = vector.shape_cast %143 : vector<128xf32> to vector<1x128xf32>
    %145 = arith.addf %118, %144 : vector<1x128xf32>
    %146 = arith.mulf %142, %142 : vector<256x128xf32>
    %cst_100 = arith.constant dense<0.000000e+00> : vector<128xf32>
    %147 = vector.multi_reduction <add>, %146, %cst_100 [0] : vector<256x128xf32> to vector<128xf32>
    %148 = vector.shape_cast %147 : vector<128xf32> to vector<1x128xf32>
    %149 = arith.addf %122, %148 : vector<1x128xf32>
    %c0_101 = arith.constant 0 : index
    %c0_102 = arith.constant 0 : index
    %c0_103 = arith.constant 0 : index
    %150 = vector.load %arg5[%c0_101, %c0_102, %c0_103] : memref<1x2x128xf32, #tpu.memory_space<vmem>>, vector<1x2x128xf32>
    %151 = tpu.concatenate %145, %149 in 0 : vector<1x128xf32>, vector<1x128xf32> -> vector<2x128xf32>
    %152 = vector.shape_cast %151 : vector<2x128xf32> to vector<1x2x128xf32>
    %153 = arith.addf %150, %152 : vector<1x2x128xf32>
    %c0_104 = arith.constant 0 : index
    %c0_105 = arith.constant 0 : index
    %c0_106 = arith.constant 0 : index
    %154 = vector.load %arg5[%c0_104, %c0_105, %c0_106] : memref<1x2x128xf32, #tpu.memory_space<vmem>>, vector<1x2x128xf32>
    tpu.vector_store %arg5[%c0_104, %c0_105, %c0_106], %153 {strides = array<i32>} : memref<1x2x128xf32, #tpu.memory_space<vmem>>, vector<1x2x128xf32>,
    return
  }
  func.func @transform_0(%arg0: i32, %arg1: i32) -> (i32, i32, i32, i32) {
    %c0_i32 = arith.constant 0 : i32
    %c0_i32_0 = arith.constant 0 : i32
    %c0_i32_1 = arith.constant 0 : i32
    %c0_i32_2 = arith.constant 0 : i32
    return %arg0, %c0_i32, %c0_i32_0, %c0_i32_1 : i32, i32, i32, i32
  }
  func.func @transform_1(%arg0: i32, %arg1: i32) -> (i32, i32, i32) {
    %c0_i32 = arith.constant 0 : i32
    %c0_i32_0 = arith.constant 0 : i32
    %c0_i32_1 = arith.constant 0 : i32
    %c0_i32_2 = arith.constant 0 : i32
    return %c0_i32, %c0_i32_0, %c0_i32_1 : i32, i32, i32
  }
  func.func @transform_2(%arg0: i32, %arg1: i32) -> (i32, i32) {
    %c0_i32 = arith.constant 0 : i32
    %c0_i32_0 = arith.constant 0 : i32
    %c0_i32_1 = arith.constant 0 : i32
    return %c0_i32, %c0_i32_0 : i32, i32
  }
  func.func @transform_3(%arg0: i32, %arg1: i32) -> (i32, i32, i32) {
    %c0_i32 = arith.constant 0 : i32
    %c0_i32_0 = arith.constant 0 : i32
    %c0_i32_1 = arith.constant 0 : i32
    return %arg0, %c0_i32, %c0_i32_0 : i32, i32, i32
  }
}

module attributes {stable_mosaic.version = 11 : i64} {
  func.func @_apply_kernel(%arg0: i32, %arg1: i32, %arg2: memref<1x3x288x4xbf16, #tpu.memory_space<vmem>>, %arg3: memref<16x4x128xbf16, #tpu.memory_space<vmem>>, %arg4: memref<1x128xf32, #tpu.memory_space<vmem>>, %arg5: memref<4x128xbf16, #tpu.memory_space<vmem>>, %arg6: memref<1x128xf32, #tpu.memory_space<vmem>>, %arg7: memref<1x128xf32, #tpu.memory_space<vmem>>, %arg8: memref<1x4x256x128xf32, #tpu.memory_space<vmem>>) attributes {dimension_semantics = [#tpu.dimension_semantics<parallel>, #tpu.dimension_semantics<parallel>], iteration_bounds = array<i64: 2, 1>, scalar_prefetch = 0 : i64, scratch_operands = 0 : i64, tpu.core_type = #tpu.core_type<tc>, window_params = [{transform_indices = @transform_0, window_bounds = array<i64: 1, 3, 288, 4>}, {pipeline_mode = #tpu.pipeline_mode<synchronous>, transform_indices = @transform_1, window_bounds = array<i64: 16, 4, 128>}, {pipeline_mode = #tpu.pipeline_mode<synchronous>, transform_indices = @transform_2, window_bounds = array<i64: 1, 128>}, {pipeline_mode = #tpu.pipeline_mode<synchronous>, transform_indices = @transform_3, window_bounds = array<i64: 4, 128>}, {pipeline_mode = #tpu.pipeline_mode<synchronous>, transform_indices = @transform_4, window_bounds = array<i64: 1, 128>}, {pipeline_mode = #tpu.pipeline_mode<synchronous>, transform_indices = @transform_5, window_bounds = array<i64: 1, 128>}, {transform_indices = @transform_6, window_bounds = array<i64: 1, 4, 256, 128>}]} {
    %c16_i32 = arith.constant 16 : i32
    %0 = arith.muli %arg1, %c16_i32 : i32
    %c0_i32 = arith.constant 0 : i32
    %1 = arith.addi %0, %c0_i32 : i32
    %c16_i32_0 = arith.constant 16 : i32
    %2 = arith.muli %1, %c16_i32_0 : i32
    %3 = tpu.assume_multiple %2, 16 : i32
    %c0 = arith.constant 0 : index
    %c0_1 = arith.constant 0 : index
    %4 = arith.index_cast %3 : i32 to index
    %c0_2 = arith.constant 0 : index
    %5 = vector.load %arg2[%c0, %c0_1, %4, %c0_2] : memref<1x3x288x4xbf16, #tpu.memory_space<vmem>>, vector<1x1x256x4xbf16>
    %6 = vector.shape_cast %5 : vector<1x1x256x4xbf16> to vector<256x4xbf16>
    %c0_3 = arith.constant 0 : index
    %c1 = arith.constant 1 : index
    %7 = arith.index_cast %3 : i32 to index
    %c0_4 = arith.constant 0 : index
    %8 = vector.load %arg2[%c0_3, %c1, %7, %c0_4] : memref<1x3x288x4xbf16, #tpu.memory_space<vmem>>, vector<1x1x256x4xbf16>
    %9 = vector.shape_cast %8 : vector<1x1x256x4xbf16> to vector<256x4xbf16>
    %c0_5 = arith.constant 0 : index
    %c2 = arith.constant 2 : index
    %10 = arith.index_cast %3 : i32 to index
    %c0_6 = arith.constant 0 : index
    %11 = vector.load %arg2[%c0_5, %c2, %10, %c0_6] : memref<1x3x288x4xbf16, #tpu.memory_space<vmem>>, vector<1x1x256x4xbf16>
    %12 = vector.shape_cast %11 : vector<1x1x256x4xbf16> to vector<256x4xbf16>
    %c1_i32 = arith.constant 1 : i32
    %13 = arith.addi %0, %c1_i32 : i32
    %c16_i32_7 = arith.constant 16 : i32
    %14 = arith.muli %13, %c16_i32_7 : i32
    %15 = tpu.assume_multiple %14, 16 : i32
    %c0_8 = arith.constant 0 : index
    %c0_9 = arith.constant 0 : index
    %16 = arith.index_cast %15 : i32 to index
    %c0_10 = arith.constant 0 : index
    %17 = vector.load %arg2[%c0_8, %c0_9, %16, %c0_10] : memref<1x3x288x4xbf16, #tpu.memory_space<vmem>>, vector<1x1x256x4xbf16>
    %18 = vector.shape_cast %17 : vector<1x1x256x4xbf16> to vector<256x4xbf16>
    %c0_11 = arith.constant 0 : index
    %c1_12 = arith.constant 1 : index
    %19 = arith.index_cast %15 : i32 to index
    %c0_13 = arith.constant 0 : index
    %20 = vector.load %arg2[%c0_11, %c1_12, %19, %c0_13] : memref<1x3x288x4xbf16, #tpu.memory_space<vmem>>, vector<1x1x256x4xbf16>
    %21 = vector.shape_cast %20 : vector<1x1x256x4xbf16> to vector<256x4xbf16>
    %c0_14 = arith.constant 0 : index
    %c2_15 = arith.constant 2 : index
    %22 = arith.index_cast %15 : i32 to index
    %c0_16 = arith.constant 0 : index
    %23 = vector.load %arg2[%c0_14, %c2_15, %22, %c0_16] : memref<1x3x288x4xbf16, #tpu.memory_space<vmem>>, vector<1x1x256x4xbf16>
    %24 = vector.shape_cast %23 : vector<1x1x256x4xbf16> to vector<256x4xbf16>
    %c2_i32 = arith.constant 2 : i32
    %25 = arith.addi %0, %c2_i32 : i32
    %c16_i32_17 = arith.constant 16 : i32
    %26 = arith.muli %25, %c16_i32_17 : i32
    %27 = tpu.assume_multiple %26, 16 : i32
    %c0_18 = arith.constant 0 : index
    %c0_19 = arith.constant 0 : index
    %28 = arith.index_cast %27 : i32 to index
    %c0_20 = arith.constant 0 : index
    %29 = vector.load %arg2[%c0_18, %c0_19, %28, %c0_20] : memref<1x3x288x4xbf16, #tpu.memory_space<vmem>>, vector<1x1x256x4xbf16>
    %30 = vector.shape_cast %29 : vector<1x1x256x4xbf16> to vector<256x4xbf16>
    %c0_21 = arith.constant 0 : index
    %c1_22 = arith.constant 1 : index
    %31 = arith.index_cast %27 : i32 to index
    %c0_23 = arith.constant 0 : index
    %32 = vector.load %arg2[%c0_21, %c1_22, %31, %c0_23] : memref<1x3x288x4xbf16, #tpu.memory_space<vmem>>, vector<1x1x256x4xbf16>
    %33 = vector.shape_cast %32 : vector<1x1x256x4xbf16> to vector<256x4xbf16>
    %c0_24 = arith.constant 0 : index
    %c2_25 = arith.constant 2 : index
    %34 = arith.index_cast %27 : i32 to index
    %c0_26 = arith.constant 0 : index
    %35 = vector.load %arg2[%c0_24, %c2_25, %34, %c0_26] : memref<1x3x288x4xbf16, #tpu.memory_space<vmem>>, vector<1x1x256x4xbf16>
    %36 = vector.shape_cast %35 : vector<1x1x256x4xbf16> to vector<256x4xbf16>
    %c0_27 = arith.constant 0 : index
    %c0_28 = arith.constant 0 : index
    %37 = vector.load %arg5[%c0_27, %c0_28] : memref<4x128xbf16, #tpu.memory_space<vmem>>, vector<4x128xbf16>
    %cst = arith.constant dense<0.000000e+00> : vector<256x128xf32>
    %38 = tpu.matmul %21, %37, %cst {dimension_numbers = #tpu.dot_dimension_numbers<[1], [0], [0], [1], [0, 0, 1, 1], [], []>} : vector<256x4xbf16>, vector<4x128xbf16>, vector<256x128xf32> -> vector<256x128xf32>
    %c0_29 = arith.constant 0 : index
    %c0_30 = arith.constant 0 : index
    %39 = vector.load %arg6[%c0_29, %c0_30] : memref<1x128xf32, #tpu.memory_space<vmem>>, vector<1x128xf32>
    %c0_31 = arith.constant 0 : index
    %c0_32 = arith.constant 0 : index
    %40 = vector.load %arg7[%c0_31, %c0_32] : memref<1x128xf32, #tpu.memory_space<vmem>>, vector<1x128xf32>
    %cst_33 = arith.constant 0.000000e+00 : f32
    %41 = vector.broadcast %cst_33 : f32 to vector<256x128xf32>
    %c0_34 = arith.constant 0 : index
    %c0_35 = arith.constant 0 : index
    %c0_36 = arith.constant 0 : index
    %42 = vector.load %arg3[%c0_34, %c0_35, %c0_36] : memref<16x4x128xbf16, #tpu.memory_space<vmem>>, vector<1x4x128xbf16>
    %43 = vector.shape_cast %42 : vector<1x4x128xbf16> to vector<4x128xbf16>
    %cst_37 = arith.constant dense<0.000000e+00> : vector<256x128xf32>
    %44 = tpu.matmul %6, %43, %cst_37 {dimension_numbers = #tpu.dot_dimension_numbers<[1], [0], [0], [1], [0, 0, 1, 1], [], []>} : vector<256x4xbf16>, vector<4x128xbf16>, vector<256x128xf32> -> vector<256x128xf32>
    %45 = arith.addf %41, %44 : vector<256x128xf32>
    %c1_38 = arith.constant 1 : index
    %c0_39 = arith.constant 0 : index
    %c0_40 = arith.constant 0 : index
    %46 = vector.load %arg3[%c1_38, %c0_39, %c0_40] : memref<16x4x128xbf16, #tpu.memory_space<vmem>>, vector<1x4x128xbf16>
    %47 = vector.shape_cast %46 : vector<1x4x128xbf16> to vector<4x128xbf16>
    %cst_41 = arith.constant dense<0.000000e+00> : vector<256x128xf32>
    %48 = tpu.matmul %9, %47, %cst_41 {dimension_numbers = #tpu.dot_dimension_numbers<[1], [0], [0], [1], [0, 0, 1, 1], [], []>} : vector<256x4xbf16>, vector<4x128xbf16>, vector<256x128xf32> -> vector<256x128xf32>
    %49 = arith.addf %45, %48 : vector<256x128xf32>
    %c2_42 = arith.constant 2 : index
    %c0_43 = arith.constant 0 : index
    %c0_44 = arith.constant 0 : index
    %50 = vector.load %arg3[%c2_42, %c0_43, %c0_44] : memref<16x4x128xbf16, #tpu.memory_space<vmem>>, vector<1x4x128xbf16>
    %51 = vector.shape_cast %50 : vector<1x4x128xbf16> to vector<4x128xbf16>
    %cst_45 = arith.constant dense<0.000000e+00> : vector<256x128xf32>
    %52 = tpu.matmul %18, %51, %cst_45 {dimension_numbers = #tpu.dot_dimension_numbers<[1], [0], [0], [1], [0, 0, 1, 1], [], []>} : vector<256x4xbf16>, vector<4x128xbf16>, vector<256x128xf32> -> vector<256x128xf32>
    %53 = arith.addf %49, %52 : vector<256x128xf32>
    %c3 = arith.constant 3 : index
    %c0_46 = arith.constant 0 : index
    %c0_47 = arith.constant 0 : index
    %54 = vector.load %arg3[%c3, %c0_46, %c0_47] : memref<16x4x128xbf16, #tpu.memory_space<vmem>>, vector<1x4x128xbf16>
    %55 = vector.shape_cast %54 : vector<1x4x128xbf16> to vector<4x128xbf16>
    %cst_48 = arith.constant dense<0.000000e+00> : vector<256x128xf32>
    %56 = tpu.matmul %21, %55, %cst_48 {dimension_numbers = #tpu.dot_dimension_numbers<[1], [0], [0], [1], [0, 0, 1, 1], [], []>} : vector<256x4xbf16>, vector<4x128xbf16>, vector<256x128xf32> -> vector<256x128xf32>
    %57 = arith.addf %53, %56 : vector<256x128xf32>
    %c0_49 = arith.constant 0 : index
    %c0_50 = arith.constant 0 : index
    %58 = vector.load %arg4[%c0_49, %c0_50] : memref<1x128xf32, #tpu.memory_space<vmem>>, vector<1x128xf32>
    %59 = vector.broadcast %58 : vector<1x128xf32> to vector<256x128xf32>
    %60 = arith.addf %57, %59 : vector<256x128xf32>
    %61 = vector.broadcast %39 : vector<1x128xf32> to vector<256x128xf32>
    %62 = arith.mulf %60, %61 : vector<256x128xf32>
    %63 = vector.broadcast %40 : vector<1x128xf32> to vector<256x128xf32>
    %64 = arith.addf %62, %63 : vector<256x128xf32>
    %cst_51 = arith.constant 0.000000e+00 : f32
    %65 = vector.broadcast %cst_51 : f32 to vector<256x128xf32>
    %66 = arith.maximumf %64, %65 : vector<256x128xf32>
    %67 = arith.addf %66, %38 : vector<256x128xf32>
    %c0_52 = arith.constant 0 : index
    %c0_53 = arith.constant 0 : index
    %c0_54 = arith.constant 0 : index
    %c0_55 = arith.constant 0 : index
    %68 = vector.load %arg8[%c0_52, %c0_53, %c0_54, %c0_55] : memref<1x4x256x128xf32, #tpu.memory_space<vmem>>, vector<1x1x256x128xf32>
    %69 = vector.shape_cast %68 : vector<1x1x256x128xf32> to vector<256x128xf32>
    %70 = vector.shape_cast %67 : vector<256x128xf32> to vector<1x1x256x128xf32>
    tpu.vector_store %arg8[%c0_52, %c0_53, %c0_54, %c0_55], %70 {strides = array<i32>} : memref<1x4x256x128xf32, #tpu.memory_space<vmem>>, vector<1x1x256x128xf32>,
    %cst_56 = arith.constant 0.000000e+00 : f32
    %71 = vector.broadcast %cst_56 : f32 to vector<256x128xf32>
    %c4 = arith.constant 4 : index
    %c0_57 = arith.constant 0 : index
    %c0_58 = arith.constant 0 : index
    %72 = vector.load %arg3[%c4, %c0_57, %c0_58] : memref<16x4x128xbf16, #tpu.memory_space<vmem>>, vector<1x4x128xbf16>
    %73 = vector.shape_cast %72 : vector<1x4x128xbf16> to vector<4x128xbf16>
    %cst_59 = arith.constant dense<0.000000e+00> : vector<256x128xf32>
    %74 = tpu.matmul %9, %73, %cst_59 {dimension_numbers = #tpu.dot_dimension_numbers<[1], [0], [0], [1], [0, 0, 1, 1], [], []>} : vector<256x4xbf16>, vector<4x128xbf16>, vector<256x128xf32> -> vector<256x128xf32>
    %75 = arith.addf %71, %74 : vector<256x128xf32>
    %c5 = arith.constant 5 : index
    %c0_60 = arith.constant 0 : index
    %c0_61 = arith.constant 0 : index
    %76 = vector.load %arg3[%c5, %c0_60, %c0_61] : memref<16x4x128xbf16, #tpu.memory_space<vmem>>, vector<1x4x128xbf16>
    %77 = vector.shape_cast %76 : vector<1x4x128xbf16> to vector<4x128xbf16>
    %cst_62 = arith.constant dense<0.000000e+00> : vector<256x128xf32>
    %78 = tpu.matmul %12, %77, %cst_62 {dimension_numbers = #tpu.dot_dimension_numbers<[1], [0], [0], [1], [0, 0, 1, 1], [], []>} : vector<256x4xbf16>, vector<4x128xbf16>, vector<256x128xf32> -> vector<256x128xf32>
    %79 = arith.addf %75, %78 : vector<256x128xf32>
    %c6 = arith.constant 6 : index
    %c0_63 = arith.constant 0 : index
    %c0_64 = arith.constant 0 : index
    %80 = vector.load %arg3[%c6, %c0_63, %c0_64] : memref<16x4x128xbf16, #tpu.memory_space<vmem>>, vector<1x4x128xbf16>
    %81 = vector.shape_cast %80 : vector<1x4x128xbf16> to vector<4x128xbf16>
    %cst_65 = arith.constant dense<0.000000e+00> : vector<256x128xf32>
    %82 = tpu.matmul %21, %81, %cst_65 {dimension_numbers = #tpu.dot_dimension_numbers<[1], [0], [0], [1], [0, 0, 1, 1], [], []>} : vector<256x4xbf16>, vector<4x128xbf16>, vector<256x128xf32> -> vector<256x128xf32>
    %83 = arith.addf %79, %82 : vector<256x128xf32>
    %c7 = arith.constant 7 : index
    %c0_66 = arith.constant 0 : index
    %c0_67 = arith.constant 0 : index
    %84 = vector.load %arg3[%c7, %c0_66, %c0_67] : memref<16x4x128xbf16, #tpu.memory_space<vmem>>, vector<1x4x128xbf16>
    %85 = vector.shape_cast %84 : vector<1x4x128xbf16> to vector<4x128xbf16>
    %cst_68 = arith.constant dense<0.000000e+00> : vector<256x128xf32>
    %86 = tpu.matmul %24, %85, %cst_68 {dimension_numbers = #tpu.dot_dimension_numbers<[1], [0], [0], [1], [0, 0, 1, 1], [], []>} : vector<256x4xbf16>, vector<4x128xbf16>, vector<256x128xf32> -> vector<256x128xf32>
    %87 = arith.addf %83, %86 : vector<256x128xf32>
    %c0_69 = arith.constant 0 : index
    %c0_70 = arith.constant 0 : index
    %88 = vector.load %arg4[%c0_69, %c0_70] : memref<1x128xf32, #tpu.memory_space<vmem>>, vector<1x128xf32>
    %89 = vector.broadcast %88 : vector<1x128xf32> to vector<256x128xf32>
    %90 = arith.addf %87, %89 : vector<256x128xf32>
    %91 = vector.broadcast %39 : vector<1x128xf32> to vector<256x128xf32>
    %92 = arith.mulf %90, %91 : vector<256x128xf32>
    %93 = vector.broadcast %40 : vector<1x128xf32> to vector<256x128xf32>
    %94 = arith.addf %92, %93 : vector<256x128xf32>
    %cst_71 = arith.constant 0.000000e+00 : f32
    %95 = vector.broadcast %cst_71 : f32 to vector<256x128xf32>
    %96 = arith.maximumf %94, %95 : vector<256x128xf32>
    %97 = arith.addf %96, %38 : vector<256x128xf32>
    %c0_72 = arith.constant 0 : index
    %c1_73 = arith.constant 1 : index
    %c0_74 = arith.constant 0 : index
    %c0_75 = arith.constant 0 : index
    %98 = vector.load %arg8[%c0_72, %c1_73, %c0_74, %c0_75] : memref<1x4x256x128xf32, #tpu.memory_space<vmem>>, vector<1x1x256x128xf32>
    %99 = vector.shape_cast %98 : vector<1x1x256x128xf32> to vector<256x128xf32>
    %100 = vector.shape_cast %97 : vector<256x128xf32> to vector<1x1x256x128xf32>
    tpu.vector_store %arg8[%c0_72, %c1_73, %c0_74, %c0_75], %100 {strides = array<i32>} : memref<1x4x256x128xf32, #tpu.memory_space<vmem>>, vector<1x1x256x128xf32>,
    %cst_76 = arith.constant 0.000000e+00 : f32
    %101 = vector.broadcast %cst_76 : f32 to vector<256x128xf32>
    %c8 = arith.constant 8 : index
    %c0_77 = arith.constant 0 : index
    %c0_78 = arith.constant 0 : index
    %102 = vector.load %arg3[%c8, %c0_77, %c0_78] : memref<16x4x128xbf16, #tpu.memory_space<vmem>>, vector<1x4x128xbf16>
    %103 = vector.shape_cast %102 : vector<1x4x128xbf16> to vector<4x128xbf16>
    %cst_79 = arith.constant dense<0.000000e+00> : vector<256x128xf32>
    %104 = tpu.matmul %18, %103, %cst_79 {dimension_numbers = #tpu.dot_dimension_numbers<[1], [0], [0], [1], [0, 0, 1, 1], [], []>} : vector<256x4xbf16>, vector<4x128xbf16>, vector<256x128xf32> -> vector<256x128xf32>
    %105 = arith.addf %101, %104 : vector<256x128xf32>
    %c9 = arith.constant 9 : index
    %c0_80 = arith.constant 0 : index
    %c0_81 = arith.constant 0 : index
    %106 = vector.load %arg3[%c9, %c0_80, %c0_81] : memref<16x4x128xbf16, #tpu.memory_space<vmem>>, vector<1x4x128xbf16>
    %107 = vector.shape_cast %106 : vector<1x4x128xbf16> to vector<4x128xbf16>
    %cst_82 = arith.constant dense<0.000000e+00> : vector<256x128xf32>
    %108 = tpu.matmul %21, %107, %cst_82 {dimension_numbers = #tpu.dot_dimension_numbers<[1], [0], [0], [1], [0, 0, 1, 1], [], []>} : vector<256x4xbf16>, vector<4x128xbf16>, vector<256x128xf32> -> vector<256x128xf32>
    %109 = arith.addf %105, %108 : vector<256x128xf32>
    %c10 = arith.constant 10 : index
    %c0_83 = arith.constant 0 : index
    %c0_84 = arith.constant 0 : index
    %110 = vector.load %arg3[%c10, %c0_83, %c0_84] : memref<16x4x128xbf16, #tpu.memory_space<vmem>>, vector<1x4x128xbf16>
    %111 = vector.shape_cast %110 : vector<1x4x128xbf16> to vector<4x128xbf16>
    %cst_85 = arith.constant dense<0.000000e+00> : vector<256x128xf32>
    %112 = tpu.matmul %30, %111, %cst_85 {dimension_numbers = #tpu.dot_dimension_numbers<[1], [0], [0], [1], [0, 0, 1, 1], [], []>} : vector<256x4xbf16>, vector<4x128xbf16>, vector<256x128xf32> -> vector<256x128xf32>
    %113 = arith.addf %109, %112 : vector<256x128xf32>
    %c11 = arith.constant 11 : index
    %c0_86 = arith.constant 0 : index
    %c0_87 = arith.constant 0 : index
    %114 = vector.load %arg3[%c11, %c0_86, %c0_87] : memref<16x4x128xbf16, #tpu.memory_space<vmem>>, vector<1x4x128xbf16>
    %115 = vector.shape_cast %114 : vector<1x4x128xbf16> to vector<4x128xbf16>
    %cst_88 = arith.constant dense<0.000000e+00> : vector<256x128xf32>
    %116 = tpu.matmul %33, %115, %cst_88 {dimension_numbers = #tpu.dot_dimension_numbers<[1], [0], [0], [1], [0, 0, 1, 1], [], []>} : vector<256x4xbf16>, vector<4x128xbf16>, vector<256x128xf32> -> vector<256x128xf32>
    %117 = arith.addf %113, %116 : vector<256x128xf32>
    %c0_89 = arith.constant 0 : index
    %c0_90 = arith.constant 0 : index
    %118 = vector.load %arg4[%c0_89, %c0_90] : memref<1x128xf32, #tpu.memory_space<vmem>>, vector<1x128xf32>
    %119 = vector.broadcast %118 : vector<1x128xf32> to vector<256x128xf32>
    %120 = arith.addf %117, %119 : vector<256x128xf32>
    %121 = vector.broadcast %39 : vector<1x128xf32> to vector<256x128xf32>
    %122 = arith.mulf %120, %121 : vector<256x128xf32>
    %123 = vector.broadcast %40 : vector<1x128xf32> to vector<256x128xf32>
    %124 = arith.addf %122, %123 : vector<256x128xf32>
    %cst_91 = arith.constant 0.000000e+00 : f32
    %125 = vector.broadcast %cst_91 : f32 to vector<256x128xf32>
    %126 = arith.maximumf %124, %125 : vector<256x128xf32>
    %127 = arith.addf %126, %38 : vector<256x128xf32>
    %c0_92 = arith.constant 0 : index
    %c2_93 = arith.constant 2 : index
    %c0_94 = arith.constant 0 : index
    %c0_95 = arith.constant 0 : index
    %128 = vector.load %arg8[%c0_92, %c2_93, %c0_94, %c0_95] : memref<1x4x256x128xf32, #tpu.memory_space<vmem>>, vector<1x1x256x128xf32>
    %129 = vector.shape_cast %128 : vector<1x1x256x128xf32> to vector<256x128xf32>
    %130 = vector.shape_cast %127 : vector<256x128xf32> to vector<1x1x256x128xf32>
    tpu.vector_store %arg8[%c0_92, %c2_93, %c0_94, %c0_95], %130 {strides = array<i32>} : memref<1x4x256x128xf32, #tpu.memory_space<vmem>>, vector<1x1x256x128xf32>,
    %cst_96 = arith.constant 0.000000e+00 : f32
    %131 = vector.broadcast %cst_96 : f32 to vector<256x128xf32>
    %c12 = arith.constant 12 : index
    %c0_97 = arith.constant 0 : index
    %c0_98 = arith.constant 0 : index
    %132 = vector.load %arg3[%c12, %c0_97, %c0_98] : memref<16x4x128xbf16, #tpu.memory_space<vmem>>, vector<1x4x128xbf16>
    %133 = vector.shape_cast %132 : vector<1x4x128xbf16> to vector<4x128xbf16>
    %cst_99 = arith.constant dense<0.000000e+00> : vector<256x128xf32>
    %134 = tpu.matmul %21, %133, %cst_99 {dimension_numbers = #tpu.dot_dimension_numbers<[1], [0], [0], [1], [0, 0, 1, 1], [], []>} : vector<256x4xbf16>, vector<4x128xbf16>, vector<256x128xf32> -> vector<256x128xf32>
    %135 = arith.addf %131, %134 : vector<256x128xf32>
    %c13 = arith.constant 13 : index
    %c0_100 = arith.constant 0 : index
    %c0_101 = arith.constant 0 : index
    %136 = vector.load %arg3[%c13, %c0_100, %c0_101] : memref<16x4x128xbf16, #tpu.memory_space<vmem>>, vector<1x4x128xbf16>
    %137 = vector.shape_cast %136 : vector<1x4x128xbf16> to vector<4x128xbf16>
    %cst_102 = arith.constant dense<0.000000e+00> : vector<256x128xf32>
    %138 = tpu.matmul %24, %137, %cst_102 {dimension_numbers = #tpu.dot_dimension_numbers<[1], [0], [0], [1], [0, 0, 1, 1], [], []>} : vector<256x4xbf16>, vector<4x128xbf16>, vector<256x128xf32> -> vector<256x128xf32>
    %139 = arith.addf %135, %138 : vector<256x128xf32>
    %c14 = arith.constant 14 : index
    %c0_103 = arith.constant 0 : index
    %c0_104 = arith.constant 0 : index
    %140 = vector.load %arg3[%c14, %c0_103, %c0_104] : memref<16x4x128xbf16, #tpu.memory_space<vmem>>, vector<1x4x128xbf16>
    %141 = vector.shape_cast %140 : vector<1x4x128xbf16> to vector<4x128xbf16>
    %cst_105 = arith.constant dense<0.000000e+00> : vector<256x128xf32>
    %142 = tpu.matmul %33, %141, %cst_105 {dimension_numbers = #tpu.dot_dimension_numbers<[1], [0], [0], [1], [0, 0, 1, 1], [], []>} : vector<256x4xbf16>, vector<4x128xbf16>, vector<256x128xf32> -> vector<256x128xf32>
    %143 = arith.addf %139, %142 : vector<256x128xf32>
    %c15 = arith.constant 15 : index
    %c0_106 = arith.constant 0 : index
    %c0_107 = arith.constant 0 : index
    %144 = vector.load %arg3[%c15, %c0_106, %c0_107] : memref<16x4x128xbf16, #tpu.memory_space<vmem>>, vector<1x4x128xbf16>
    %145 = vector.shape_cast %144 : vector<1x4x128xbf16> to vector<4x128xbf16>
    %cst_108 = arith.constant dense<0.000000e+00> : vector<256x128xf32>
    %146 = tpu.matmul %36, %145, %cst_108 {dimension_numbers = #tpu.dot_dimension_numbers<[1], [0], [0], [1], [0, 0, 1, 1], [], []>} : vector<256x4xbf16>, vector<4x128xbf16>, vector<256x128xf32> -> vector<256x128xf32>
    %147 = arith.addf %143, %146 : vector<256x128xf32>
    %c0_109 = arith.constant 0 : index
    %c0_110 = arith.constant 0 : index
    %148 = vector.load %arg4[%c0_109, %c0_110] : memref<1x128xf32, #tpu.memory_space<vmem>>, vector<1x128xf32>
    %149 = vector.broadcast %148 : vector<1x128xf32> to vector<256x128xf32>
    %150 = arith.addf %147, %149 : vector<256x128xf32>
    %151 = vector.broadcast %39 : vector<1x128xf32> to vector<256x128xf32>
    %152 = arith.mulf %150, %151 : vector<256x128xf32>
    %153 = vector.broadcast %40 : vector<1x128xf32> to vector<256x128xf32>
    %154 = arith.addf %152, %153 : vector<256x128xf32>
    %cst_111 = arith.constant 0.000000e+00 : f32
    %155 = vector.broadcast %cst_111 : f32 to vector<256x128xf32>
    %156 = arith.maximumf %154, %155 : vector<256x128xf32>
    %157 = arith.addf %156, %38 : vector<256x128xf32>
    %c0_112 = arith.constant 0 : index
    %c3_113 = arith.constant 3 : index
    %c0_114 = arith.constant 0 : index
    %c0_115 = arith.constant 0 : index
    %158 = vector.load %arg8[%c0_112, %c3_113, %c0_114, %c0_115] : memref<1x4x256x128xf32, #tpu.memory_space<vmem>>, vector<1x1x256x128xf32>
    %159 = vector.shape_cast %158 : vector<1x1x256x128xf32> to vector<256x128xf32>
    %160 = vector.shape_cast %157 : vector<256x128xf32> to vector<1x1x256x128xf32>
    tpu.vector_store %arg8[%c0_112, %c3_113, %c0_114, %c0_115], %160 {strides = array<i32>} : memref<1x4x256x128xf32, #tpu.memory_space<vmem>>, vector<1x1x256x128xf32>,
    return
  }
  func.func @transform_0(%arg0: i32, %arg1: i32) -> (i32, i32, i32, i32) {
    %c0_i32 = arith.constant 0 : i32
    %c0_i32_0 = arith.constant 0 : i32
    %c0_i32_1 = arith.constant 0 : i32
    %c0_i32_2 = arith.constant 0 : i32
    return %arg0, %c0_i32, %c0_i32_0, %c0_i32_1 : i32, i32, i32, i32
  }
  func.func @transform_1(%arg0: i32, %arg1: i32) -> (i32, i32, i32) {
    %c0_i32 = arith.constant 0 : i32
    %c0_i32_0 = arith.constant 0 : i32
    %c0_i32_1 = arith.constant 0 : i32
    %c0_i32_2 = arith.constant 0 : i32
    return %c0_i32, %c0_i32_0, %c0_i32_1 : i32, i32, i32
  }
  func.func @transform_2(%arg0: i32, %arg1: i32) -> (i32, i32) {
    %c0_i32 = arith.constant 0 : i32
    %c0_i32_0 = arith.constant 0 : i32
    %c0_i32_1 = arith.constant 0 : i32
    return %c0_i32, %c0_i32_0 : i32, i32
  }
  func.func @transform_3(%arg0: i32, %arg1: i32) -> (i32, i32) {
    %c0_i32 = arith.constant 0 : i32
    %c0_i32_0 = arith.constant 0 : i32
    %c0_i32_1 = arith.constant 0 : i32
    return %c0_i32, %c0_i32_0 : i32, i32
  }
  func.func @transform_4(%arg0: i32, %arg1: i32) -> (i32, i32) {
    %c0_i32 = arith.constant 0 : i32
    %c0_i32_0 = arith.constant 0 : i32
    %c0_i32_1 = arith.constant 0 : i32
    return %c0_i32, %c0_i32_0 : i32, i32
  }
  func.func @transform_5(%arg0: i32, %arg1: i32) -> (i32, i32) {
    %c0_i32 = arith.constant 0 : i32
    %c0_i32_0 = arith.constant 0 : i32
    %c0_i32_1 = arith.constant 0 : i32
    return %c0_i32, %c0_i32_0 : i32, i32
  }
  func.func @transform_6(%arg0: i32, %arg1: i32) -> (i32, i32, i32, i32) {
    %c0_i32 = arith.constant 0 : i32
    %c0_i32_0 = arith.constant 0 : i32
    %c0_i32_1 = arith.constant 0 : i32
    return %arg0, %c0_i32, %arg1, %c0_i32_0 : i32, i32, i32, i32
  }
}

</mosaic_0001>

<bundles_post_ra>
// kernel: resblock_up.2
= control target key start
LH: loop header
LB: loop body
LE: loop exit
PB: predicated region body
PF: predicated region fallthrough
CT: control target
= control target key end

     0   :  { %s7350_s12 = smov 0   ;;  %s7352_s13 = smov 0   ;;  %s8310_s0 = inlined_call_operand.vmem [shape: bf16[2,3,288,4], index: 0, kind: input, shape index: {}]   ;;  %s8311_s1 = inlined_call_operand.vmem [shape: bf16[16,4,128], index: 1, kind: input, shape index: {}]   ;;  %s8312_s2 = inlined_call_operand.vmem [shape: f32[1,128], index: 2, kind: input, shape index: {}]   ;;  %s8313_s3 = inlined_call_operand.vmem [shape: f32[2,2,128], index: 3, kind: output, shape index: {}]  }
   0x1   :  { %s7354_s14 = smov 0  }
   0x2 LB: > { %s25_s15 = sadd.s32 1, %s7323_s13  ;;  %p5237_p0 = scmp.ge.s32.totalorder %s7327_s14, 1  ;;  %s7327_s14 = sphi %s7354_s14, %s13_s14   ;;  %s7323_s13 = sphi %s7352_s13, %s8315_s13   ;;  %s7319_s12 = sphi %s7350_s12, %s8314_s12  }
   0x3   : > { %p27_p1 = scmp.ge.s32.totalorder %s25_s15, 2  ;;  %p149_p2 = scmp.lt.s32.totalorder %s7327_s14, 3 }
   0x5   : > { %s8317_s15 = smov (%p27_p1, %s25_s15), 0  ;;  %p150_p3 = pnand %p5237_p0, %p149_p2 }
   0x6   : > { %v5500_v0 = vld [vmem:[%s8311_s1 + $0x2] sm:$0x3] (!%p150_p3)  ;;  %vm643_vm0 = vcmask (!%p150_p3), 1041408   ;;  %v5633_v1 = vld [vmem:[%s8311_s1 + $0xa] sm:$0x3] (!%p150_p3)  ;;  %p172_p4 = scmp.lt.s32.totalorder (!%p150_p3), %s7319_s12, 1 }
   0x7   : > { %153 = sbr.rel (%p150_p3) target bundleno = 770 (0x302), region = 32  ;;  %7118 = vmatprep.subr.msk.bf16.mxu0 (!%p150_p3), %vm643_vm0, %v5500_v0  ;;  %v645_v2 = vsel (!%p150_p3), %vm643_vm0, %v5500_v0, 0  ;;  %7122 = vmatprep.subr.msk.bf16.mxu1 (!%p150_p3), %vm643_vm0, %v5633_v1  ;;  %v2032_v3 = vsel (!%p150_p3), %vm643_vm0, %v5633_v1, 0  ;;  %v511_v4 = vld [vmem:[%s8311_s1] sm:$0x3] (!%p150_p3)  ;;  %vm594_vm1 = vcmask (!%p150_p3), 31744  }
   0x8   : > { %6191 = vmatpush3.bf16.msra.mxu0 (!%p150_p3), %v645_v2  ;;  %6327 = vmatpush3.bf16.msra.mxu1 (!%p150_p3), %v2032_v3  ;;  %v5632_v5 = vld [vmem:[%s8311_s1 + $0x8] sm:$0x3] (!%p150_p3)  ;;  %v937_v9 = vsel (!%p150_p3), %vm643_vm0, %v511_v4, 0  ;;  %v7407_v10 = vld [vmem:[%s8311_s1 + $0x4] sm:$0x3] (!%p150_p3)  ;;  %vm5144_vm2 = vcmask (!%p150_p3), 1040384  }
   0x9   : > { %7119 = vmatprep.subr.msk.bf16.mxu0 (!%p150_p3), %vm643_vm0, %v511_v4  ;;  %7123 = vmatprep.subr.msk.bf16.mxu1 (!%p150_p3), %vm643_vm0, %v5632_v5  ;;  %v2196_v12 = vsel (!%p150_p3), %vm643_vm0, %v5632_v5, 0  ;;  %v7415_v13 = vld [vmem:[%s8311_s1 + $0xc] sm:$0x3] (!%p150_p3)  ;;  %v1231_v44 = vsel (!%p150_p3), %vm643_vm0, %v7407_v10, 0  ;;  %v5598_v47 = vld [vmem:[%s8311_s1 + $0x6] sm:$0x3] (!%p150_p3) }
   0xa   : > { %v2362_v46 = vsel (!%p150_p3), %vm643_vm0, %v7415_v13, 0  ;;  %v5699_v48 = vld [vmem:[%s8311_s1 + $0xe] sm:$0x3] (!%p150_p3)  ;;  %v1557_v2 = vsel (!%p150_p3), %vm643_vm0, %v5598_v47, 0 }
   0xb   : > { %v2688_v4 = vsel (!%p150_p3), %vm643_vm0, %v5699_v48, 0 }
   0xe   : > { %s8319_s12 = smov (!%p172_p4, %s7319_s12), 1 }
   0xf   : > { %s7134_s24 = smul.u32 432, %s8319_s12  ;;  %s5239_s5 = sshll.u32 %s8319_s12, 1 }
  0x10   : > { %s8225_s8 = scalar_lea.vmem %s8313_s3, %s5239_s5 }
  0x11   : > { %s7392_s27 = scalar_lea.vmem %s8310_s0, %s7134_s24 }
  0x12   : > { %v7395_v6 = vld [vmem:[%s7392_s27 + $0x90] sm:$0xff]   ;;  %v7161_v7 = vld [vmem:[%s7392_s27 + $0x120] sm:$0xff]   ;;  %v7401_v8 = vld [vmem:[%s7392_s27 + $0x98] sm:$0xff]  }
  0x13   : > { %6192 = vmatprep.mubr.msk.bf16.mxu0 %vm594_vm1, %v7395_v6  ;;  %6328 = vmatprep.mubr.msk.bf16.mxu1 %vm594_vm1, %v7161_v7  ;;  %v7163_v11 = vld [vmem:[%s7392_s27 + $0x128] sm:$0xff]   ;;  %v7420_v14 = vld [vmem:[%s7392_s27 + $0xa0] sm:$0xff]   ;;  %v7165_v15 = vld [vmem:[%s7392_s27 + $0x130] sm:$0xff]  }
  0x14   : > { %6193 = vmatmul.mubr.msk.bf16.vlgmr.msra.gmra.mrb[0].mxu0 %vm594_vm1, %v7401_v8  ;;  %6329 = vmatmul.mubr.msk.bf16.vlgmr.msra.gmra.mrb[0].mxu1 %vm594_vm1, %v7163_v11  ;;  %v7428_v16 = vld [vmem:[%s7392_s27 + $0xa8] sm:$0xff]   ;;  %v7167_v17 = vld [vmem:[%s7392_s27 + $0x138] sm:$0xff]   ;;  %v7436_v18 = vld [vmem:[%s7392_s27 + $0xb0] sm:$0xff]  }
  0x15   : > { %6225 = vmatpush3.bf16.msra.mxu0 %v937_v9  ;;  %6361 = vmatpush3.bf16.msra.mxu1 %v2196_v12  ;;  %v7169_v19 = vld [vmem:[%s7392_s27 + $0x140] sm:$0xff]   ;;  %v7446_v20 = vld [vmem:[%s7392_s27 + $0xb8] sm:$0xff]   ;;  %v7171_v21 = vld [vmem:[%s7392_s27 + $0x148] sm:$0xff]  }
  0x16   : > { %6196 = vmatprep.mubr.msk.bf16.mxu0 %vm594_vm1, %v7420_v14  ;;  %6332 = vmatprep.mubr.msk.bf16.mxu1 %vm594_vm1, %v7165_v15  ;;  %v7450_v22 = vld [vmem:[%s7392_s27 + $0xc0] sm:$0xff]   ;;  %v7173_v23 = vld [vmem:[%s7392_s27 + $0x150] sm:$0xff]   ;;  %v7460_v24 = vld [vmem:[%s7392_s27 + $0xc8] sm:$0xff]  }
  0x17   : > { %7120 = vmatprep.subr.msk.bf16.mxu0 %vm643_vm0, %v7407_v10  ;;  %7124 = vmatprep.subr.msk.bf16.mxu1 %vm643_vm0, %v7415_v13  ;;  %v7175_v25 = vld [vmem:[%s7392_s27 + $0x158] sm:$0xff]   ;;  %v7464_v26 = vld [vmem:[%s7392_s27 + $0xd0] sm:$0xff]   ;;  %v7177_v27 = vld [vmem:[%s7392_s27 + $0x160] sm:$0xff]  }
  0x18   : > { %v7474_v28 = vld [vmem:[%s7392_s27 + $0xd8] sm:$0xff]   ;;  %v7179_v29 = vld [vmem:[%s7392_s27 + $0x168] sm:$0xff]   ;;  %v7478_v30 = vld [vmem:[%s7392_s27 + $0xe0] sm:$0xff]  }
  0x19   : > { %v7181_v31 = vld [vmem:[%s7392_s27 + $0x170] sm:$0xff]   ;;  %v7488_v32 = vld [vmem:[%s7392_s27 + $0xe8] sm:$0xff]   ;;  %v7183_v33 = vld [vmem:[%s7392_s27 + $0x178] sm:$0xff]  }
  0x1a   : > { %v7492_v34 = vld [vmem:[%s7392_s27 + $0xf0] sm:$0xff]   ;;  %v7185_v35 = vld [vmem:[%s7392_s27 + $0x180] sm:$0xff]   ;;  %v7186_v36 = vld [vmem:[%s7392_s27 + $0xf8] sm:$0xff]  }
  0x1b   : > { %v7187_v37 = vld [vmem:[%s7392_s27 + $0x188] sm:$0xff]   ;;  %v7188_v38 = vld [vmem:[%s7392_s27 + $0x100] sm:$0xff]   ;;  %v7189_v39 = vld [vmem:[%s7392_s27 + $0x190] sm:$0xff]  }
  0x1c   : > { %6197 = vmatmul.mubr.msk.bf16.gmra.mrb[4].mxu0 %vm594_vm1, %v7428_v16  ;;  %6333 = vmatmul.mubr.msk.bf16.gmra.mrb[4].mxu1 %vm594_vm1, %v7167_v17  ;;  %v7190_v40 = vld [vmem:[%s7392_s27 + $0x108] sm:$0xff]   ;;  %v7191_v41 = vld [vmem:[%s7392_s27 + $0x198] sm:$0xff]   ;;  %v7192_v42 = vld [vmem:[%s7392_s27] sm:$0xff]  }
  0x1d   : > { %6200 = vmatprep.mubr.msk.bf16.mxu0 %vm594_vm1, %v7436_v18  ;;  %6336 = vmatprep.mubr.msk.bf16.mxu1 %vm594_vm1, %v7169_v19  ;;  %v7193_v43 = vld [vmem:[%s7392_s27 + $0x8] sm:$0xff]   ;;  %v7194_v45 = vld [vmem:[%s7392_s27 + $0x10] sm:$0xff]   ;;  %v7195_v49 = vld [vmem:[%s7392_s27 + $0x18] sm:$0xff]  }
  0x1e   : > { %v7196_v50 = vld [vmem:[%s7392_s27 + $0x20] sm:$0xff]   ;;  %v7197_v51 = vld [vmem:[%s7392_s27 + $0x28] sm:$0xff]   ;;  %v7198_v52 = vld [vmem:[%s7392_s27 + $0x30] sm:$0xff]  }
  0x1f   : > { %v7199_v53 = vld [vmem:[%s7392_s27 + $0x38] sm:$0xff]   ;;  %v7200_v54 = vld [vmem:[%s7392_s27 + $0x40] sm:$0xff]   ;;  %v7201_v55 = vld [vmem:[%s7392_s27 + $0x48] sm:$0xff]  }
  0x20   : > { %v7202_v56 = vld [vmem:[%s7392_s27 + $0x50] sm:$0xff]   ;;  %v7203_v57 = vld [vmem:[%s7392_s27 + $0x58] sm:$0xff]   ;;  %v7204_v58 = vld [vmem:[%s7392_s27 + $0x60] sm:$0xff]  }
  0x21   : > { %v7205_v59 = vld [vmem:[%s7392_s27 + $0x68] sm:$0xff]   ;;  %v7206_v60 = vld [vmem:[%s7392_s27 + $0x70] sm:$0xff]   ;;  %v7207_v61 = vld [vmem:[%s7392_s27 + $0x78] sm:$0xff]  }
  0x22   : > { %v7585_v62 = vld [vmem:[%s7392_s27 + $0x8] sm:$0xff]   ;;  %v7588_v63 = vld [vmem:[%s7392_s27 + $0x98] sm:$0xff]   ;;  %v7597_v0 = vld [vmem:[%s7392_s27 + $0x10] sm:$0xff]  }
  0x23   : > { %v7600_v1 = vld [vmem:[%s7392_s27 + $0xa0] sm:$0xff]   ;;  %v7604_v3 = vld [vmem:[%s7392_s27 + $0x18] sm:$0xff]   ;;  %v7608_v5 = vld [vmem:[%s7392_s27 + $0xa8] sm:$0xff]  }
  0x24   : > { %6201 = vmatmul.mubr.msk.bf16.gmra.mrb[8].mxu0 %vm594_vm1, %v7446_v20  ;;  %6337 = vmatmul.mubr.msk.bf16.gmra.mrb[8].mxu1 %vm594_vm1, %v7171_v21  ;;  %v7622_v7 = vld [vmem:[%s8311_s1 + $0x1a] sm:$0x3]  ;;  %v7636_v9 = vld [vmem:[%s7392_s27 + $0xb0] sm:$0xff]   ;;  %v7639_v10 = vld [vmem:[%s7392_s27 + $0x28] sm:$0xff]  }
  0x25   : > { %6204 = vmatprep.mubr.msk.bf16.mxu0 %vm594_vm1, %v7450_v22  ;;  %6340 = vmatprep.mubr.msk.bf16.mxu1 %vm594_vm1, %v7173_v23  ;;  %v7642_v11 = vld [vmem:[%s7392_s27 + $0xb8] sm:$0xff]   ;;  %v7653_v12 = vld [vmem:[%s7392_s27 + $0x30] sm:$0xff]   ;;  %v7656_v13 = vld [vmem:[%s7392_s27 + $0xc0] sm:$0xff]  }
  0x26   : > { %v7662_v15 = vld [vmem:[%s7392_s27 + $0xc8] sm:$0xff]   ;;  %v7676_v17 = vld [vmem:[%s7392_s27 + $0xd0] sm:$0xff]   ;;  %v7682_v19 = vld [vmem:[%s7392_s27 + $0xd8] sm:$0xff]  }
  0x27   : > { %v7696_v21 = vld [vmem:[%s7392_s27 + $0xe0] sm:$0xff]   ;;  %v7702_v23 = vld [vmem:[%s7392_s27 + $0xe8] sm:$0xff]  }
  0x2c   : > { %6205 = vmatmul.mubr.msk.bf16.gmra.mrb[12].mxu0 %vm594_vm1, %v7460_v24  ;;  %6341 = vmatmul.mubr.msk.bf16.gmra.mrb[12].mxu1 %vm594_vm1, %v7175_v25  ;;  %v7716_v25 = vld [vmem:[%s7392_s27 + $0xf0] sm:$0xff]  }
  0x2d   : > { %6208 = vmatprep.mubr.msk.bf16.mxu0 %vm594_vm1, %v7464_v26  ;;  %6344 = vmatprep.mubr.msk.bf16.mxu1 %vm594_vm1, %v7177_v27  ;;  %v7722_v27 = vld [vmem:[%s7392_s27 + $0xf8] sm:$0xff]  }
  0x34   : > { %6209 = vmatmul.mubr.msk.bf16.gmra.mrb[16].mxu0 %vm594_vm1, %v7474_v28  ;;  %6345 = vmatmul.mubr.msk.bf16.gmra.mrb[16].mxu1 %vm594_vm1, %v7179_v29  ;;  %v7736_v29 = vld [vmem:[%s7392_s27 + $0x100] sm:$0xff]  }
  0x35   : > { %6212 = vmatprep.mubr.msk.bf16.mxu0 %vm594_vm1, %v7478_v30  ;;  %6348 = vmatprep.mubr.msk.bf16.mxu1 %vm594_vm1, %v7181_v31  ;;  %v7742_v31 = vld [vmem:[%s7392_s27 + $0x108] sm:$0xff]  }
  0x3c   : > { %6213 = vmatmul.mubr.msk.bf16.gmra.mrb[20].mxu0 %vm594_vm1, %v7488_v32  ;;  %6349 = vmatmul.mubr.msk.bf16.gmra.mrb[20].mxu1 %vm594_vm1, %v7183_v33  ;;  %v7756_v33 = vld [vmem:[%s7392_s27 + $0x110] sm:$0xff]  }
  0x3d   : > { %6216 = vmatprep.mubr.msk.bf16.mxu0 %vm594_vm1, %v7492_v34  ;;  %6352 = vmatprep.mubr.msk.bf16.mxu1 %vm594_vm1, %v7185_v35  ;;  %v7241_v35 = vld [vmem:[%s7392_s27 + $0x130] sm:$0xff]  }
  0x44   : > { %6217 = vmatmul.mubr.msk.bf16.gmra.mrb[24].mxu0 %vm594_vm1, %v7186_v36  ;;  %6353 = vmatmul.mubr.msk.bf16.gmra.mrb[24].mxu1 %vm594_vm1, %v7187_v37  ;;  %v4152_v37 = vsel %vm643_vm0, %v7622_v7, 0 }
  0x45   : > { %6220 = vmatprep.mubr.msk.bf16.mxu0 %vm594_vm1, %v7188_v38  ;;  %6356 = vmatprep.mubr.msk.bf16.mxu1 %vm594_vm1, %v7189_v39  ;;  %v5732_v39 = vld [vmem:[%s8311_s1 + $0x10] sm:$0x3] }
  0x4c   : > { %6221 = vmatmul.mubr.msk.bf16.gmra.mrb[28].mxu0 %vm594_vm1, %v7190_v40  ;;  %6357 = vmatmul.mubr.msk.bf16.gmra.mrb[28].mxu1 %vm594_vm1, %v7191_v41  ;;  %v7243_v41 = vld [vmem:[%s7392_s27 + $0x140] sm:$0xff]  }
  0x4d   : > { %6226 = vmatprep.mubr.msk.bf16.mxu0 %vm594_vm1, %v7192_v42  ;;  %6362 = vmatprep.mubr.msk.bf16.mxu1 %vm594_vm1, %v7395_v6  ;;  %v7615_v6 = vld [vmem:[%s8311_s1 + $0x12] sm:$0x3]  ;;  %v7244_v42 = vld [vmem:[%s7392_s27 + $0x148] sm:$0xff]  }
  0x54   : > { %6227 = vmatmul.mubr.msk.bf16.vlgmr.msra.gmra.mrb[0].mxu0 %vm594_vm1, %v7193_v43  ;;  %6363 = vmatmul.mubr.msk.bf16.vlgmr.msra.gmra.mrb[0].mxu1 %vm594_vm1, %v7401_v8  ;;  %v7631_v8 = vld [vmem:[%s7392_s27 + $0x20] sm:$0xff]   ;;  %v7245_v43 = vld [vmem:[%s7392_s27 + $0x150] sm:$0xff]  }
  0x55   : > { %6259 = vmatpush3.bf16.msra.mxu0 %v1231_v44  ;;  %6395 = vmatpush3.bf16.msra.mxu1 %v2362_v46  ;;  %v7246_v44 = vld [vmem:[%s7392_s27 + $0x158] sm:$0xff]   ;;  %v7248_v46 = vld [vmem:[%s7392_s27 + $0x168] sm:$0xff]  }
  0x56   : > { %6230 = vmatprep.mubr.msk.bf16.mxu0 %vm594_vm1, %v7194_v45  ;;  %6366 = vmatprep.mubr.msk.bf16.mxu1 %vm594_vm1, %v7420_v14  ;;  %v7659_v14 = vld [vmem:[%s7392_s27 + $0x38] sm:$0xff]   ;;  %v7247_v45 = vld [vmem:[%s7392_s27 + $0x160] sm:$0xff]  }
  0x57   : > { %7121 = vmatprep.subr.msk.bf16.mxu0 %vm643_vm0, %v5598_v47  ;;  %7125 = vmatprep.subr.msk.bf16.mxu1 %vm643_vm0, %v5699_v48  ;;  %v7249_v47 = vld [vmem:[%s7392_s27 + $0x170] sm:$0xff]   ;;  %v7250_v48 = vld [vmem:[%s7392_s27 + $0x178] sm:$0xff]  }
  0x5c   : > { %6231 = vmatmul.mubr.msk.bf16.gmra.mrb[4].mxu0 %vm594_vm1, %v7195_v49  ;;  %6367 = vmatmul.mubr.msk.bf16.gmra.mrb[4].mxu1 %vm594_vm1, %v7428_v16  ;;  %v7673_v16 = vld [vmem:[%s7392_s27 + $0x40] sm:$0xff]  }
  0x5d   : > { %6234 = vmatprep.mubr.msk.bf16.mxu0 %vm594_vm1, %v7196_v50  ;;  %6370 = vmatprep.mubr.msk.bf16.mxu1 %vm594_vm1, %v7436_v18  ;;  %v7679_v18 = vld [vmem:[%s7392_s27 + $0x48] sm:$0xff]   ;;  %v7251_v49 = vld [vmem:[%s7392_s27 + $0x180] sm:$0xff]  }
  0x5e   : > { %v7252_v50 = vld [vmem:[%s7392_s27 + $0x188] sm:$0xff]  }
  0x64   : > { %6235 = vmatmul.mubr.msk.bf16.gmra.mrb[8].mxu0 %vm594_vm1, %v7197_v51  ;;  %6371 = vmatmul.mubr.msk.bf16.gmra.mrb[8].mxu1 %vm594_vm1, %v7446_v20  ;;  %v7693_v20 = vld [vmem:[%s7392_s27 + $0x50] sm:$0xff]  }
  0x65   : > { %6238 = vmatprep.mubr.msk.bf16.mxu0 %vm594_vm1, %v7198_v52  ;;  %6374 = vmatprep.mubr.msk.bf16.mxu1 %vm594_vm1, %v7450_v22  ;;  %v7699_v22 = vld [vmem:[%s7392_s27 + $0x58] sm:$0xff]   ;;  %v7253_v51 = vld [vmem:[%s7392_s27 + $0x190] sm:$0xff]  }
  0x66   : > { %v7254_v52 = vld [vmem:[%s7392_s27 + $0x198] sm:$0xff]  }
  0x6c   : > { %6239 = vmatmul.mubr.msk.bf16.gmra.mrb[12].mxu0 %vm594_vm1, %v7199_v53  ;;  %6375 = vmatmul.mubr.msk.bf16.gmra.mrb[12].mxu1 %vm594_vm1, %v7460_v24  ;;  %v7713_v24 = vld [vmem:[%s7392_s27 + $0x60] sm:$0xff]  }
  0x6d   : > { %6242 = vmatprep.mubr.msk.bf16.mxu0 %vm594_vm1, %v7200_v54  ;;  %6378 = vmatprep.mubr.msk.bf16.mxu1 %vm594_vm1, %v7464_v26  ;;  %v7719_v26 = vld [vmem:[%s7392_s27 + $0x68] sm:$0xff]   ;;  %v7255_v53 = vld [vmem:[%s7392_s27 + $0x1a0] sm:$0xff]   ;;  %v3192_v54 = vsel %vm643_vm0, %v5732_v39, 0 }
  0x74   : > { %6243 = vmatmul.mubr.msk.bf16.gmra.mrb[16].mxu0 %vm594_vm1, %v7201_v55  ;;  %6379 = vmatmul.mubr.msk.bf16.gmra.mrb[16].mxu1 %vm594_vm1, %v7474_v28  ;;  %v7733_v28 = vld [vmem:[%s7392_s27 + $0x70] sm:$0xff]  }
  0x75   : > { %6246 = vmatprep.mubr.msk.bf16.mxu0 %vm594_vm1, %v7202_v56  ;;  %6382 = vmatprep.mubr.msk.bf16.mxu1 %vm594_vm1, %v7478_v30  ;;  %v7739_v30 = vld [vmem:[%s7392_s27 + $0x78] sm:$0xff]   ;;  %v5766_v56 = vld [vmem:[%s8311_s1 + $0x14] sm:$0x3] }
  0x7c   : > { %6247 = vmatmul.mubr.msk.bf16.gmra.mrb[20].mxu0 %vm594_vm1, %v7203_v57  ;;  %6383 = vmatmul.mubr.msk.bf16.gmra.mrb[20].mxu1 %vm594_vm1, %v7488_v32  ;;  %v7753_v32 = vld [vmem:[%s7392_s27 + $0x80] sm:$0xff]   ;;  %v5866_v57 = vld [vmem:[%s8311_s1 + $0x1c] sm:$0x3] }
  0x7d   : > { %6250 = vmatprep.mubr.msk.bf16.mxu0 %vm594_vm1, %v7204_v58  ;;  %6386 = vmatprep.mubr.msk.bf16.mxu1 %vm594_vm1, %v7492_v34  ;;  %v7240_v34 = vld [vmem:[%s7392_s27 + $0x128] sm:$0xff]   ;;  %v3486_v58 = vsel %vm643_vm0, %v5766_v56, 0 }
  0x84   : > { %6251 = vmatmul.mubr.msk.bf16.gmra.mrb[24].mxu0 %vm594_vm1, %v7205_v59  ;;  %6387 = vmatmul.mubr.msk.bf16.gmra.mrb[24].mxu1 %vm594_vm1, %v7186_v36  ;;  %v3028_v36 = vsel %vm643_vm0, %v7615_v6, 0  ;;  %v4482_v59 = vsel %vm643_vm0, %v5866_v57, 0 }
  0x85   : > { %6254 = vmatprep.mubr.msk.bf16.mxu0 %vm594_vm1, %v7206_v60  ;;  %6390 = vmatprep.mubr.msk.bf16.mxu1 %vm594_vm1, %v7188_v38  ;;  %v7242_v38 = vld [vmem:[%s7392_s27 + $0x138] sm:$0xff]   ;;  %v5799_v60 = vld [vmem:[%s8311_s1 + $0x16] sm:$0x3] }
  0x8c   : > { %6255 = vmatmul.mubr.msk.bf16.gmra.mrb[28].mxu0 %vm594_vm1, %v7207_v61  ;;  %6391 = vmatmul.mubr.msk.bf16.gmra.mrb[28].mxu1 %vm594_vm1, %v7190_v40  ;;  %v5832_v40 = vld [vmem:[%s8311_s1 + $0x18] sm:$0x3]  ;;  %v5883_v61 = vld [vmem:[%s8311_s1 + $0x1e] sm:$0x3] }
  0x8d   : > { %6260 = vmatprep.mubr.msk.bf16.mxu0 %vm594_vm1, %v7585_v62  ;;  %6396 = vmatprep.mubr.msk.bf16.mxu1 %vm594_vm1, %v7588_v63  ;;  %v4316_v55 = vsel %vm643_vm0, %v5832_v40, 0 }
  0x94   : > { %6261 = vmatmul.mubr.msk.bf16.vlgmr.msra.gmra.mrb[0].mxu0 %vm594_vm1, %v7597_v0  ;;  %6397 = vmatmul.mubr.msk.bf16.vlgmr.msra.gmra.mrb[0].mxu1 %vm594_vm1, %v7600_v1 }
  0x95   : > { %6293 = vmatpush3.bf16.msra.mxu0 %v1557_v2  ;;  %6429 = vmatpush3.bf16.msra.mxu1 %v2688_v4  ;;  %v3812_v2 = vsel %vm643_vm0, %v5799_v60, 0  ;;  %v4808_v4 = vsel %vm643_vm0, %v5883_v61, 0 }
  0x96   : > { %6264 = vmatprep.mubr.msk.bf16.mxu0 %vm594_vm1, %v7604_v3  ;;  %6400 = vmatprep.mubr.msk.bf16.mxu1 %vm594_vm1, %v7608_v5 }
  0x97   : > { %7126 = vmatprep.subr.msk.bf16.mxu0 %vm643_vm0, %v7615_v6  ;;  %7130 = vmatprep.subr.msk.bf16.mxu1 %vm643_vm0, %v7622_v7  ;;  %v7262_v6 = vld [vmem:[%s7392_s27 + $0x28] sm:$0xff]   ;;  %v7995_v7 = vld [vmem:[%s7392_s27 + $0xb8] sm:$0xff]  }
  0x9c   : > { %6265 = vmatmul.mubr.msk.bf16.gmra.mrb[4].mxu0 %vm594_vm1, %v7631_v8  ;;  %6401 = vmatmul.mubr.msk.bf16.gmra.mrb[4].mxu1 %vm594_vm1, %v7636_v9 }
  0x9d   : > { %6268 = vmatprep.mubr.msk.bf16.mxu0 %vm594_vm1, %v7639_v10  ;;  %6404 = vmatprep.mubr.msk.bf16.mxu1 %vm594_vm1, %v7642_v11 }
  0xa4   : > { %6269 = vmatmul.mubr.msk.bf16.gmra.mrb[8].mxu0 %vm594_vm1, %v7653_v12  ;;  %6405 = vmatmul.mubr.msk.bf16.gmra.mrb[8].mxu1 %vm594_vm1, %v7656_v13 }
  0xa5   : > { %6272 = vmatprep.mubr.msk.bf16.mxu0 %vm594_vm1, %v7659_v14  ;;  %6408 = vmatprep.mubr.msk.bf16.mxu1 %vm594_vm1, %v7662_v15 }
  0xac   : > { %6273 = vmatmul.mubr.msk.bf16.gmra.mrb[12].mxu0 %vm594_vm1, %v7673_v16  ;;  %6409 = vmatmul.mubr.msk.bf16.gmra.mrb[12].mxu1 %vm594_vm1, %v7676_v17 }
  0xad   : > { %6276 = vmatprep.mubr.msk.bf16.mxu0 %vm594_vm1, %v7679_v18  ;;  %6412 = vmatprep.mubr.msk.bf16.mxu1 %vm594_vm1, %v7682_v19 }
  0xb4   : > { %6277 = vmatmul.mubr.msk.bf16.gmra.mrb[16].mxu0 %vm594_vm1, %v7693_v20  ;;  %6413 = vmatmul.mubr.msk.bf16.gmra.mrb[16].mxu1 %vm594_vm1, %v7696_v21 }
  0xb5   : > { %6280 = vmatprep.mubr.msk.bf16.mxu0 %vm594_vm1, %v7699_v22  ;;  %6416 = vmatprep.mubr.msk.bf16.mxu1 %vm594_vm1, %v7702_v23 }
  0xbc   : > { %6281 = vmatmul.mubr.msk.bf16.gmra.mrb[20].mxu0 %vm594_vm1, %v7713_v24  ;;  %6417 = vmatmul.mubr.msk.bf16.gmra.mrb[20].mxu1 %vm594_vm1, %v7716_v25 }
  0xbd   : > { %6284 = vmatprep.mubr.msk.bf16.mxu0 %vm594_vm1, %v7719_v26  ;;  %6420 = vmatprep.mubr.msk.bf16.mxu1 %vm594_vm1, %v7722_v27 }
  0xc4   : > { %6285 = vmatmul.mubr.msk.bf16.gmra.mrb[24].mxu0 %vm594_vm1, %v7733_v28  ;;  %6421 = vmatmul.mubr.msk.bf16.gmra.mrb[24].mxu1 %vm594_vm1, %v7736_v29 }
  0xc5   : > { %6288 = vmatprep.mubr.msk.bf16.mxu0 %vm594_vm1, %v7739_v30  ;;  %6424 = vmatprep.mubr.msk.bf16.mxu1 %vm594_vm1, %v7742_v31 }
  0xcc   : > { %6289 = vmatmul.mubr.msk.bf16.gmra.mrb[28].mxu0 %vm594_vm1, %v7753_v32  ;;  %6425 = vmatmul.mubr.msk.bf16.gmra.mrb[28].mxu1 %vm594_vm1, %v7756_v33 }
  0xcd   : > { %6294 = vmatprep.mubr.msk.bf16.mxu0 %vm594_vm1, %v7588_v63  ;;  %6430 = vmatprep.mubr.msk.bf16.mxu1 %vm594_vm1, %v7240_v34 }
  0xd4   : > { %6295 = vmatmul.mubr.msk.bf16.vlgmr.msra.gmra.mrb[0].mxu0 %vm594_vm1, %v7600_v1  ;;  %6431 = vmatmul.mubr.msk.bf16.vlgmr.msra.gmra.mrb[0].mxu1 %vm594_vm1, %v7241_v35 }
  0xd5   : > { %6463 = vmatpush3.bf16.msra.mxu0 %v3028_v36  ;;  %6599 = vmatpush3.bf16.msra.mxu1 %v4152_v37 }
  0xd6   : > { %6298 = vmatprep.mubr.msk.bf16.mxu0 %vm594_vm1, %v7608_v5  ;;  %6434 = vmatprep.mubr.msk.bf16.mxu1 %vm594_vm1, %v7242_v38 }
  0xd7   : > { %7127 = vmatprep.subr.msk.bf16.mxu0 %vm643_vm0, %v5732_v39  ;;  %7131 = vmatprep.subr.msk.bf16.mxu1 %vm643_vm0, %v5832_v40 }
  0xdc   : > { %6299 = vmatmul.mubr.msk.bf16.gmra.mrb[4].mxu0 %vm594_vm1, %v7636_v9  ;;  %6435 = vmatmul.mubr.msk.bf16.gmra.mrb[4].mxu1 %vm594_vm1, %v7243_v41 }
  0xdd   : > { %6302 = vmatprep.mubr.msk.bf16.mxu0 %vm594_vm1, %v7642_v11  ;;  %6438 = vmatprep.mubr.msk.bf16.mxu1 %vm594_vm1, %v7244_v42 }
  0xe4   : > { %6303 = vmatmul.mubr.msk.bf16.gmra.mrb[8].mxu0 %vm594_vm1, %v7656_v13  ;;  %6439 = vmatmul.mubr.msk.bf16.gmra.mrb[8].mxu1 %vm594_vm1, %v7245_v43 }
  0xe5   : > { %6306 = vmatprep.mubr.msk.bf16.mxu0 %vm594_vm1, %v7662_v15  ;;  %6442 = vmatprep.mubr.msk.bf16.mxu1 %vm594_vm1, %v7246_v44 }
  0xec   : > { %6307 = vmatmul.mubr.msk.bf16.gmra.mrb[12].mxu0 %vm594_vm1, %v7676_v17  ;;  %6443 = vmatmul.mubr.msk.bf16.gmra.mrb[12].mxu1 %vm594_vm1, %v7247_v45 }
  0xed   : > { %6310 = vmatprep.mubr.msk.bf16.mxu0 %vm594_vm1, %v7682_v19  ;;  %6446 = vmatprep.mubr.msk.bf16.mxu1 %vm594_vm1, %v7248_v46 }
  0xf4   : > { %6311 = vmatmul.mubr.msk.bf16.gmra.mrb[16].mxu0 %vm594_vm1, %v7696_v21  ;;  %6447 = vmatmul.mubr.msk.bf16.gmra.mrb[16].mxu1 %vm594_vm1, %v7249_v47 }
  0xf5   : > { %6314 = vmatprep.mubr.msk.bf16.mxu0 %vm594_vm1, %v7702_v23  ;;  %6450 = vmatprep.mubr.msk.bf16.mxu1 %vm594_vm1, %v7250_v48 }
  0xfc   : > { %6315 = vmatmul.mubr.msk.bf16.gmra.mrb[20].mxu0 %vm594_vm1, %v7716_v25  ;;  %6451 = vmatmul.mubr.msk.bf16.gmra.mrb[20].mxu1 %vm594_vm1, %v7251_v49 }
  0xfd   : > { %6318 = vmatprep.mubr.msk.bf16.mxu0 %vm594_vm1, %v7722_v27  ;;  %6454 = vmatprep.mubr.msk.bf16.mxu1 %vm594_vm1, %v7252_v50 }
 0x104   : > { %6319 = vmatmul.mubr.msk.bf16.gmra.mrb[24].mxu0 %vm594_vm1, %v7736_v29  ;;  %6455 = vmatmul.mubr.msk.bf16.gmra.mrb[24].mxu1 %vm594_vm1, %v7253_v51 }
 0x105   : > { %6322 = vmatprep.mubr.msk.bf16.mxu0 %vm594_vm1, %v7742_v31  ;;  %6458 = vmatprep.mubr.msk.bf16.mxu1 %vm594_vm1, %v7254_v52 }
 0x10c   : > { %6323 = vmatmul.mubr.msk.bf16.gmra.mrb[28].mxu0 %vm594_vm1, %v7756_v33  ;;  %6459 = vmatmul.mubr.msk.bf16.gmra.mrb[28].mxu1 %vm594_vm1, %v7255_v53 }
 0x10d   : > { %6464 = vmatprep.mubr.msk.bf16.mxu0 %vm594_vm1, %v7588_v63  ;;  %6600 = vmatprep.mubr.msk.bf16.mxu1 %vm594_vm1, %v7240_v34 }
 0x114   : > { %6465 = vmatmul.mubr.msk.bf16.vlgmr.msra.gmra.mrb[32].mxu0 %vm594_vm1, %v7600_v1  ;;  %6601 = vmatmul.mubr.msk.bf16.vlgmr.msra.gmra.mrb[32].mxu1 %vm594_vm1, %v7241_v35 }
 0x115   : > { %6497 = vmatpush3.bf16.msra.mxu0 %v3192_v54  ;;  %6633 = vmatpush3.bf16.msra.mxu1 %v4316_v55 }
 0x116   : > { %6468 = vmatprep.mubr.msk.bf16.mxu0 %vm594_vm1, %v7608_v5  ;;  %6604 = vmatprep.mubr.msk.bf16.mxu1 %vm594_vm1, %v7242_v38 }
 0x117   : > { %7128 = vmatprep.subr.msk.bf16.mxu0 %vm643_vm0, %v5766_v56  ;;  %7132 = vmatprep.subr.msk.bf16.mxu1 %vm643_vm0, %v5866_v57  ;;  %v8051_v57 = vld [vmem:[%s7392_s27 + $0xe8] sm:$0xff]  }
 0x11c   : > { %6469 = vmatmul.mubr.msk.bf16.gmra.mrb[36].mxu0 %vm594_vm1, %v7636_v9  ;;  %6605 = vmatmul.mubr.msk.bf16.gmra.mrb[36].mxu1 %vm594_vm1, %v7243_v41 }
 0x11d   : > { %6472 = vmatprep.mubr.msk.bf16.mxu0 %vm594_vm1, %v7642_v11  ;;  %6608 = vmatprep.mubr.msk.bf16.mxu1 %vm594_vm1, %v7244_v42 }
 0x124   : > { %6473 = vmatmul.mubr.msk.bf16.gmra.mrb[40].mxu0 %vm594_vm1, %v7656_v13  ;;  %6609 = vmatmul.mubr.msk.bf16.gmra.mrb[40].mxu1 %vm594_vm1, %v7245_v43 }
 0x125   : > { %6476 = vmatprep.mubr.msk.bf16.mxu0 %vm594_vm1, %v7662_v15  ;;  %6612 = vmatprep.mubr.msk.bf16.mxu1 %vm594_vm1, %v7246_v44 }
 0x12c   : > { %6477 = vmatmul.mubr.msk.bf16.gmra.mrb[44].mxu0 %vm594_vm1, %v7676_v17  ;;  %6613 = vmatmul.mubr.msk.bf16.gmra.mrb[44].mxu1 %vm594_vm1, %v7247_v45 }
 0x12d   : > { %6480 = vmatprep.mubr.msk.bf16.mxu0 %vm594_vm1, %v7682_v19  ;;  %6616 = vmatprep.mubr.msk.bf16.mxu1 %vm594_vm1, %v7248_v46 }
 0x134   : > { %6481 = vmatmul.mubr.msk.bf16.gmra.mrb[48].mxu0 %vm594_vm1, %v7696_v21  ;;  %6617 = vmatmul.mubr.msk.bf16.gmra.mrb[48].mxu1 %vm594_vm1, %v7249_v47 }
 0x135   : > { %6484 = vmatprep.mubr.msk.bf16.mxu0 %vm594_vm1, %v7702_v23  ;;  %6620 = vmatprep.mubr.msk.bf16.mxu1 %vm594_vm1, %v7250_v48 }
 0x13c   : > { %6485 = vmatmul.mubr.msk.bf16.gmra.mrb[52].mxu0 %vm594_vm1, %v7716_v25  ;;  %6621 = vmatmul.mubr.msk.bf16.gmra.mrb[52].mxu1 %vm594_vm1, %v7251_v49 }
 0x13d   : > { %6488 = vmatprep.mubr.msk.bf16.mxu0 %vm594_vm1, %v7722_v27  ;;  %6624 = vmatprep.mubr.msk.bf16.mxu1 %vm594_vm1, %v7252_v50  ;;  %v7274_v50 = vld [vmem:[%s7392_s27 + $0x58] sm:$0xff]  }
 0x144   : > { %6489 = vmatmul.mubr.msk.bf16.gmra.mrb[56].mxu0 %vm594_vm1, %v7736_v29  ;;  %6625 = vmatmul.mubr.msk.bf16.gmra.mrb[56].mxu1 %vm594_vm1, %v7253_v51 }
 0x145   : > { %6492 = vmatprep.mubr.msk.bf16.mxu0 %vm594_vm1, %v7742_v31  ;;  %6628 = vmatprep.mubr.msk.bf16.mxu1 %vm594_vm1, %v7254_v52 }
 0x14c   : > { %6493 = vmatmul.mubr.msk.bf16.gmra.mrb[60].mxu0 %vm594_vm1, %v7756_v33  ;;  %6629 = vmatmul.mubr.msk.bf16.gmra.mrb[60].mxu1 %vm594_vm1, %v7255_v53 }
 0x14d   : > { %6498 = vmatprep.mubr.msk.bf16.mxu0 %vm594_vm1, %v7585_v62  ;;  %6634 = vmatprep.mubr.msk.bf16.mxu1 %vm594_vm1, %v7588_v63  ;;  %v7256_v62 = vld [vmem:[%s7392_s27 + $0x10] sm:$0xff]   ;;  %v7968_v63 = vld [vmem:[%s7392_s27 + $0xa0] sm:$0xff]  }
 0x154   : > { %6499 = vmatmul.mubr.msk.bf16.vlgmr.msra.gmra.mrb[32].mxu0 %vm594_vm1, %v7597_v0  ;;  %6635 = vmatmul.mubr.msk.bf16.vlgmr.msra.gmra.mrb[32].mxu1 %vm594_vm1, %v7600_v1  ;;  %v7258_v0 = vld [vmem:[%s7392_s27 + $0x18] sm:$0xff]   ;;  %v7979_v1 = vld [vmem:[%s7392_s27 + $0xa8] sm:$0xff]  }
 0x155   : > { %6531 = vmatpush3.bf16.msra.mxu0 %v3486_v58  ;;  %6667 = vmatpush3.bf16.msra.mxu1 %v4482_v59 }
 0x156   : > { %6502 = vmatprep.mubr.msk.bf16.mxu0 %vm594_vm1, %v7604_v3  ;;  %6638 = vmatprep.mubr.msk.bf16.mxu1 %vm594_vm1, %v7608_v5  ;;  %v7260_v3 = vld [vmem:[%s7392_s27 + $0x20] sm:$0xff]   ;;  %v7985_v5 = vld [vmem:[%s7392_s27 + $0xb0] sm:$0xff]  }
 0x157   : > { %7129 = vmatprep.subr.msk.bf16.mxu0 %vm643_vm0, %v5799_v60  ;;  %7133 = vmatprep.subr.msk.bf16.mxu1 %vm643_vm0, %v5883_v61 }
 0x15c   : > { %6503 = vmatmul.mubr.msk.bf16.gmra.mrb[36].mxu0 %vm594_vm1, %v7631_v8  ;;  %6639 = vmatmul.mubr.msk.bf16.gmra.mrb[36].mxu1 %vm594_vm1, %v7636_v9  ;;  %v7264_v8 = vld [vmem:[%s7392_s27 + $0x30] sm:$0xff]   ;;  %v7999_v9 = vld [vmem:[%s7392_s27 + $0xc0] sm:$0xff]  }
 0x15d   : > { %6506 = vmatprep.mubr.msk.bf16.mxu0 %vm594_vm1, %v7639_v10  ;;  %6642 = vmatprep.mubr.msk.bf16.mxu1 %vm594_vm1, %v7642_v11  ;;  %v7266_v10 = vld [vmem:[%s7392_s27 + $0x38] sm:$0xff]   ;;  %v8009_v11 = vld [vmem:[%s7392_s27 + $0xc8] sm:$0xff]  }
 0x164   : > { %6507 = vmatmul.mubr.msk.bf16.gmra.mrb[40].mxu0 %vm594_vm1, %v7653_v12  ;;  %6643 = vmatmul.mubr.msk.bf16.gmra.mrb[40].mxu1 %vm594_vm1, %v7656_v13  ;;  %v7268_v12 = vld [vmem:[%s7392_s27 + $0x40] sm:$0xff]   ;;  %v8013_v13 = vld [vmem:[%s7392_s27 + $0xd0] sm:$0xff]  }
 0x165   : > { %6510 = vmatprep.mubr.msk.bf16.mxu0 %vm594_vm1, %v7659_v14  ;;  %6646 = vmatprep.mubr.msk.bf16.mxu1 %vm594_vm1, %v7662_v15  ;;  %v8022_v14 = vld [vmem:[%s8312_s2] ss:$0 sm:$0xff] }
 0x16c   : > { %6511 = vmatmul.mubr.msk.bf16.gmra.mrb[44].mxu0 %vm594_vm1, %v7673_v16  ;;  %6647 = vmatmul.mubr.msk.bf16.gmra.mrb[44].mxu1 %vm594_vm1, %v7676_v17 }
 0x16d   : > { %6514 = vmatprep.mubr.msk.bf16.mxu0 %vm594_vm1, %v7679_v18  ;;  %6650 = vmatprep.mubr.msk.bf16.mxu1 %vm594_vm1, %v7682_v19  ;;  %v7270_v18 = vld [vmem:[%s7392_s27 + $0x48] sm:$0xff]  }
 0x174   : > { %6515 = vmatmul.mubr.msk.bf16.gmra.mrb[48].mxu0 %vm594_vm1, %v7693_v20  ;;  %6651 = vmatmul.mubr.msk.bf16.gmra.mrb[48].mxu1 %vm594_vm1, %v7696_v21 }
 0x175   : > { %6518 = vmatprep.mubr.msk.bf16.mxu0 %vm594_vm1, %v7699_v22  ;;  %6654 = vmatprep.mubr.msk.bf16.mxu1 %vm594_vm1, %v7702_v23  ;;  %v8029_v22 = vld [vmem:[%s7392_s27 + $0xd8] sm:$0xff]   ;;  %v7272_v23 = vld [vmem:[%s7392_s27 + $0x50] sm:$0xff]  }
 0x17c   : > { %6519 = vmatmul.mubr.msk.bf16.gmra.mrb[52].mxu0 %vm594_vm1, %v7713_v24  ;;  %6655 = vmatmul.mubr.msk.bf16.gmra.mrb[52].mxu1 %vm594_vm1, %v7716_v25 }
 0x17d   : > { %6522 = vmatprep.mubr.msk.bf16.mxu0 %vm594_vm1, %v7719_v26  ;;  %6658 = vmatprep.mubr.msk.bf16.mxu1 %vm594_vm1, %v7722_v27  ;;  %v8034_v27 = vld [vmem:[%s7392_s27 + $0xe0] sm:$0xff]  }
 0x184   : > { %6523 = vmatmul.mubr.msk.bf16.gmra.mrb[56].mxu0 %vm594_vm1, %v7733_v28  ;;  %6659 = vmatmul.mubr.msk.bf16.gmra.mrb[56].mxu1 %vm594_vm1, %v7736_v29 }
 0x185   : > { %6526 = vmatprep.mubr.msk.bf16.mxu0 %vm594_vm1, %v7739_v30  ;;  %6662 = vmatprep.mubr.msk.bf16.mxu1 %vm594_vm1, %v7742_v31 }
 0x18c   : > { %6527 = vmatmul.mubr.msk.bf16.gmra.mrb[60].mxu0 %vm594_vm1, %v7753_v32  ;;  %6663 = vmatmul.mubr.msk.bf16.gmra.mrb[60].mxu1 %vm594_vm1, %v7756_v33 }
 0x18d   : > { %6532 = vmatprep.mubr.msk.bf16.mxu0 %vm594_vm1, %v7256_v62  ;;  %6668 = vmatprep.mubr.msk.bf16.mxu1 %vm594_vm1, %v7968_v63 }
 0x194   : > { %6533 = vmatmul.mubr.msk.bf16.vlgmr.msra.gmra.mrb[32].mxu0 %vm594_vm1, %v7258_v0  ;;  %6669 = vmatmul.mubr.msk.bf16.vlgmr.msra.gmra.mrb[32].mxu1 %vm594_vm1, %v7979_v1 }
 0x195   : > { %6565 = vmatpush3.bf16.msra.mxu0 %v3812_v2  ;;  %6701 = vmatpush3.bf16.msra.mxu1 %v4808_v4  ;;  %v7276_v2 = vld [vmem:[%s7392_s27 + $0x60] sm:$0xff]  }
 0x196   : > { %6536 = vmatprep.mubr.msk.bf16.mxu0 %vm594_vm1, %v7260_v3  ;;  %6672 = vmatprep.mubr.msk.bf16.mxu1 %vm594_vm1, %v7985_v5  ;;  %v8056_v3 = vld [vmem:[%s7392_s27 + $0xf0] sm:$0xff]  }
 0x19c   : > { %6537 = vmatmul.mubr.msk.bf16.gmra.mrb[36].mxu0 %vm594_vm1, %v7262_v6  ;;  %6673 = vmatmul.mubr.msk.bf16.gmra.mrb[36].mxu1 %vm594_vm1, %v7995_v7 }
 0x19d   : > { %6540 = vmatprep.mubr.msk.bf16.mxu0 %vm594_vm1, %v7264_v8  ;;  %6676 = vmatprep.mubr.msk.bf16.mxu1 %vm594_vm1, %v7999_v9 }
 0x1a4   : > { %6541 = vmatmul.mubr.msk.bf16.gmra.mrb[40].mxu0 %vm594_vm1, %v7266_v10  ;;  %6677 = vmatmul.mubr.msk.bf16.gmra.mrb[40].mxu1 %vm594_vm1, %v8009_v11 }
 0x1a5   : > { %6544 = vmatprep.mubr.msk.bf16.mxu0 %vm594_vm1, %v7268_v12  ;;  %6680 = vmatprep.mubr.msk.bf16.mxu1 %vm594_vm1, %v8013_v13 }
 0x1a7   : > { %v6296_v15 = vpop.f32.mrb[0].mxu0  ;;  %v6432_v16 = vpop.f32.mrb[0].mxu1 }
 0x1a8   : > { %v1593_v17 = vpop.f32.mrb[1].mxu0  ;;  %v2724_v20 = vpop.f32.mrb[1].mxu1  ;;  %v1761_v28 = vadd.f32 %v6296_v15, %v8022_v14  ;;  %v2885_v31 = vadd.f32 %v6432_v16, %v8022_v14 }
 0x1a9   : > { %v1759_v19 = vadd.f32 %v8022_v14, %v1593_v17  ;;  %v6297_v21 = vpop.f32.mrb[2].mxu0  ;;  %v2883_v24 = vadd.f32 %v8022_v14, %v2724_v20  ;;  %v6433_v25 = vpop.f32.mrb[2].mxu1 }
 0x1aa   : > { %v1596_v26 = vpop.f32.mrb[3].mxu0  ;;  %v2727_v30 = vpop.f32.mrb[3].mxu1  ;;  %v1762_v32 = vadd.f32 %v6297_v21, %v8022_v14  ;;  %v2886_v38 = vadd.f32 %v6433_v25, %v8022_v14  ;;  %v1831_v41 = vmul.f32 %v1761_v28, %v1761_v28  ;;  %v2955_v45 = vmul.f32 %v2885_v31, %v2885_v31 }
 0x1ab   : > { %v1760_v29 = vadd.f32 %v8022_v14, %v1596_v26  ;;  %v2884_v33 = vadd.f32 %v8022_v14, %v2727_v30  ;;  %v1829_v34 = vmul.f32 %v1759_v19, %v1759_v19  ;;  %v2953_v37 = vmul.f32 %v2883_v24, %v2883_v24 }
 0x1ac   : > { %6545 = vmatmul.mubr.msk.bf16.gmra.mrb[44].mxu0 %vm594_vm1, %v7270_v18  ;;  %6681 = vmatmul.mubr.msk.bf16.gmra.mrb[44].mxu1 %vm594_vm1, %v8029_v22  ;;  %v1832_v51 = vmul.f32 %v1762_v32, %v1762_v32  ;;  %v2956_v58 = vmul.f32 %v2886_v38, %v2886_v38 }
 0x1ad   : > { %v1791_v35 = vadd.f32 %v1760_v29, %v1759_v19  ;;  %v1830_v36 = vmul.f32 %v1760_v29, %v1760_v29  ;;  %6548 = vmatprep.mubr.msk.bf16.mxu0 %vm594_vm1, %v7272_v23  ;;  %v2915_v39 = vadd.f32 %v2884_v33, %v2883_v24  ;;  %v2954_v40 = vmul.f32 %v2884_v33, %v2884_v33 }
 0x1ae   : > { %6684 = vmatprep.mubr.msk.bf16.mxu1 %vm594_vm1, %v8034_v27 }
 0x1af   : > { %v1792_v42 = vadd.f32 %v1791_v35, %v1761_v28  ;;  %v1861_v43 = vadd.f32 %v1830_v36, %v1829_v34  ;;  %v6300_v44 = vpop.f32.mrb[4].mxu0  ;;  %v2916_v46 = vadd.f32 %v2915_v39, %v2885_v31  ;;  %v2985_v47 = vadd.f32 %v2954_v40, %v2953_v37  ;;  %v6436_v48 = vpop.f32.mrb[4].mxu1  ;;  %v7278_v35 = vld [vmem:[%s7392_s27 + $0x68] sm:$0xff]  }
 0x1b0   : > { %v1609_v49 = vpop.f32.mrb[5].mxu0  ;;  %v2740_v55 = vpop.f32.mrb[5].mxu1  ;;  %v1765_v12 = vadd.f32 %v6300_v44, %v8022_v14  ;;  %v2889_v18 = vadd.f32 %v6436_v48, %v8022_v14 }
 0x1b1   : > { %v1862_v52 = vadd.f32 %v1861_v43, %v1831_v41  ;;  %v1763_v53 = vadd.f32 %v8022_v14, %v1609_v49  ;;  %v1793_v54 = vadd.f32 %v1792_v42, %v1762_v32  ;;  %v6301_v56 = vpop.f32.mrb[6].mxu0  ;;  %v2986_v59 = vadd.f32 %v2985_v47, %v2955_v45  ;;  %v6437_v62 = vpop.f32.mrb[6].mxu1  ;;  %v8072_v42 = vld [vmem:[%s7392_s27 + $0xf8] sm:$0xff]   ;;  %v7280_v49 = vld [vmem:[%s7392_s27 + $0x70] sm:$0xff]  }
 0x1b2   : > { %v2887_v60 = vadd.f32 %v8022_v14, %v2740_v55  ;;  %v2917_v61 = vadd.f32 %v2916_v46, %v2886_v38  ;;  %v1612_v0 = vpop.f32.mrb[7].mxu0  ;;  %v2743_v10 = vpop.f32.mrb[7].mxu1  ;;  %v1766_v24 = vadd.f32 %v6301_v56, %v8022_v14  ;;  %v2890_v25 = vadd.f32 %v6437_v62, %v8022_v14  ;;  %v8078_v55 = vld [vmem:[%s7392_s27 + $0x100] sm:$0xff]  }
 0x1b3   : > { %v1794_v4 = vadd.f32 %v1793_v54, %v1763_v53  ;;  %v1833_v6 = vmul.f32 %v1763_v53, %v1763_v53  ;;  %v1863_v8 = vadd.f32 %v1862_v52, %v1832_v51  ;;  %v2987_v17 = vadd.f32 %v2986_v59, %v2956_v58 }
 0x1b4   : > { %v2918_v15 = vadd.f32 %v2917_v61, %v2887_v60  ;;  %v2957_v16 = vmul.f32 %v2887_v60, %v2887_v60  ;;  %6549 = vmatmul.mubr.msk.bf16.gmra.mrb[48].mxu0 %vm594_vm1, %v7274_v50  ;;  %v1764_v20 = vadd.f32 %v8022_v14, %v1612_v0  ;;  %v2888_v21 = vadd.f32 %v8022_v14, %v2743_v10 }
 0x1b5   : > { %v1864_v19 = vadd.f32 %v1863_v8, %v1833_v6  ;;  %6685 = vmatmul.mubr.msk.bf16.gmra.mrb[48].mxu1 %vm594_vm1, %v8051_v57  ;;  %6552 = vmatprep.mubr.msk.bf16.mxu0 %vm594_vm1, %v7276_v2  ;;  %v1835_v31 = vmul.f32 %v1765_v12, %v1765_v12  ;;  %v2959_v36 = vmul.f32 %v2889_v18, %v2889_v18 }
 0x1b6   : > { %v2988_v23 = vadd.f32 %v2987_v17, %v2957_v16  ;;  %6688 = vmatprep.mubr.msk.bf16.mxu1 %vm594_vm1, %v8056_v3  ;;  %v1795_v26 = vadd.f32 %v1794_v4, %v1764_v20  ;;  %v1834_v28 = vmul.f32 %v1764_v20, %v1764_v20  ;;  %v2919_v29 = vadd.f32 %v2918_v15, %v2888_v21 }
 0x1b7   : > { %v6304_v30 = vpop.f32.mrb[8].mxu0  ;;  %v2958_v32 = vmul.f32 %v2888_v21, %v2888_v21  ;;  %v6440_v33 = vpop.f32.mrb[8].mxu1  ;;  %v1836_v43 = vmul.f32 %v1766_v24, %v1766_v24  ;;  %v2960_v50 = vmul.f32 %v2890_v25, %v2890_v25 }
 0x1b8   : > { %v1625_v34 = vpop.f32.mrb[9].mxu0  ;;  %v1796_v37 = vadd.f32 %v1795_v26, %v1765_v12  ;;  %v1865_v38 = vadd.f32 %v1864_v19, %v1834_v28  ;;  %v2920_v39 = vadd.f32 %v2919_v29, %v2889_v18  ;;  %v2756_v40 = vpop.f32.mrb[9].mxu1  ;;  %v1769_v58 = vadd.f32 %v6304_v30, %v8022_v14 }
 0x1b9   : > { %v6305_v41 = vpop.f32.mrb[10].mxu0  ;;  %v2989_v44 = vadd.f32 %v2988_v23, %v2958_v32  ;;  %v1767_v45 = vadd.f32 %v8022_v14, %v1625_v34  ;;  %v2891_v46 = vadd.f32 %v8022_v14, %v2756_v40  ;;  %v6441_v47 = vpop.f32.mrb[10].mxu1  ;;  %v2893_v61 = vadd.f32 %v6440_v33, %v8022_v14  ;;  %v8095_v32 = vld [vmem:[%s7392_s27 + $0x108] sm:$0xff]  }
 0x1ba   : > { %v1628_v48 = vpop.f32.mrb[11].mxu0  ;;  %v1866_v51 = vadd.f32 %v1865_v38, %v1835_v31  ;;  %v1797_v52 = vadd.f32 %v1796_v37, %v1766_v24  ;;  %v2921_v53 = vadd.f32 %v2920_v39, %v2890_v25  ;;  %v2759_v54 = vpop.f32.mrb[11].mxu1  ;;  %v1770_v12 = vadd.f32 %v6305_v41, %v8022_v14  ;;  %v7282_v24 = vld [vmem:[%s7392_s27 + $0x78] sm:$0xff]   ;;  %v7284_v39 = vld [vmem:[%s7392_s27 + $0x80] sm:$0xff]  }
 0x1bb   : > { %v2990_v56 = vadd.f32 %v2989_v44, %v2959_v36  ;;  %v1837_v59 = vmul.f32 %v1767_v45, %v1767_v45  ;;  %v2961_v60 = vmul.f32 %v2891_v46, %v2891_v46  ;;  %v1768_v6 = vadd.f32 %v8022_v14, %v1628_v48 }
 0x1bc   : > { %6553 = vmatmul.mubr.msk.bf16.gmra.mrb[52].mxu0 %vm594_vm1, %v7278_v35  ;;  %v1798_v62 = vadd.f32 %v1797_v52, %v1767_v45  ;;  %v1867_v0 = vadd.f32 %v1866_v51, %v1836_v43  ;;  %v2922_v2 = vadd.f32 %v2921_v53, %v2891_v46  ;;  %v2892_v8 = vadd.f32 %v8022_v14, %v2759_v54  ;;  %v8101_v46 = vld [vmem:[%s7392_s27 + $0x110] sm:$0xff]  }
 0x1bd   : > { %6689 = vmatmul.mubr.msk.bf16.gmra.mrb[52].mxu1 %vm594_vm1, %v8072_v42  ;;  %v2991_v4 = vadd.f32 %v2990_v56, %v2960_v50  ;;  %6556 = vmatprep.mubr.msk.bf16.mxu0 %vm594_vm1, %v7280_v49  ;;  %v2894_v15 = vadd.f32 %v6441_v47, %v8022_v14  ;;  %v1838_v19 = vmul.f32 %v1768_v6, %v1768_v6 }
 0x1be   : > { %v1868_v10 = vadd.f32 %v1867_v0, %v1837_v59  ;;  %6692 = vmatprep.mubr.msk.bf16.mxu1 %vm594_vm1, %v8078_v55  ;;  %v1799_v18 = vadd.f32 %v1798_v62, %v1768_v6  ;;  %v2923_v20 = vadd.f32 %v2922_v2, %v2892_v8  ;;  %v1839_v25 = vmul.f32 %v1769_v58, %v1769_v58 }
 0x1bf   : > { %v6308_v16 = vpop.f32.mrb[12].mxu0  ;;  %v2992_v17 = vadd.f32 %v2991_v4, %v2961_v60  ;;  %v6444_v21 = vpop.f32.mrb[12].mxu1  ;;  %v2963_v26 = vmul.f32 %v2893_v61, %v2893_v61  ;;  %v2962_v28 = vmul.f32 %v2892_v8, %v2892_v8  ;;  %v1840_v40 = vmul.f32 %v1770_v12, %v1770_v12 }
 0x1c0   : > { %v1641_v23 = vpop.f32.mrb[13].mxu0  ;;  %v2772_v30 = vpop.f32.mrb[13].mxu1  ;;  %v1800_v33 = vadd.f32 %v1799_v18, %v1769_v58  ;;  %v1869_v34 = vadd.f32 %v1868_v10, %v1838_v19  ;;  %v2924_v35 = vadd.f32 %v2923_v20, %v2893_v61  ;;  %v2964_v41 = vmul.f32 %v2894_v15, %v2894_v15 }
 0x1c1   : > { %v1771_v29 = vadd.f32 %v8022_v14, %v1641_v23  ;;  %v6309_v31 = vpop.f32.mrb[14].mxu0  ;;  %v2895_v36 = vadd.f32 %v8022_v14, %v2772_v30  ;;  %v6445_v37 = vpop.f32.mrb[14].mxu1  ;;  %v2993_v43 = vadd.f32 %v2992_v17, %v2962_v28  ;;  %v1773_v44 = vadd.f32 %v6308_v16, %v8022_v14  ;;  %v7286_v17 = vld [vmem:[%s7392_s27 + $0x88] sm:$0xff]  }
 0x1c2   : > { %v1644_v38 = vpop.f32.mrb[15].mxu0  ;;  %v2775_v45 = vpop.f32.mrb[15].mxu1  ;;  %v1870_v47 = vadd.f32 %v1869_v34, %v1839_v25  ;;  %v1801_v48 = vadd.f32 %v1800_v33, %v1770_v12  ;;  %v2925_v50 = vadd.f32 %v2924_v35, %v2894_v15  ;;  %v2897_v52 = vadd.f32 %v6444_v21, %v8022_v14  ;;  %v8117_v25 = vld [vmem:[%s7392_s27 + $0x118] sm:$0xff]  }
 0x1c3   : > { %v1841_v49 = vmul.f32 %v1771_v29, %v1771_v29  ;;  %v2994_v51 = vadd.f32 %v2993_v43, %v2963_v26  ;;  %v2965_v53 = vmul.f32 %v2895_v36, %v2895_v36  ;;  %v1772_v54 = vadd.f32 %v8022_v14, %v1644_v38 }
 0x1c4   : > { %6557 = vmatmul.mubr.msk.bf16.gmra.mrb[56].mxu0 %vm594_vm1, %v7282_v24  ;;  %v1802_v56 = vadd.f32 %v1801_v48, %v1771_v29  ;;  %v1871_v58 = vadd.f32 %v1870_v47, %v1840_v40  ;;  %v2926_v59 = vadd.f32 %v2925_v50, %v2895_v36  ;;  %v2896_v60 = vadd.f32 %v8022_v14, %v2775_v45 }
 0x1c5   : > { %6693 = vmatmul.mubr.msk.bf16.gmra.mrb[56].mxu1 %vm594_vm1, %v8095_v32  ;;  %6560 = vmatprep.mubr.msk.bf16.mxu0 %vm594_vm1, %v7284_v39  ;;  %v2995_v61 = vadd.f32 %v2994_v51, %v2964_v41  ;;  %v1774_v62 = vadd.f32 %v6309_v31, %v8022_v14  ;;  %v2898_v0 = vadd.f32 %v6445_v37, %v8022_v14  ;;  %v7288_v39 = vld [vmem:[%s7392_s27 + $0x130] sm:$0xff]  }
 0x1c6   : > { %v1842_v2 = vmul.f32 %v1772_v54, %v1772_v54  ;;  %6696 = vmatprep.mubr.msk.bf16.mxu1 %vm594_vm1, %v8101_v46  ;;  %v1872_v6 = vadd.f32 %v1871_v58, %v1841_v49  ;;  %v1803_v8 = vadd.f32 %v1802_v56, %v1772_v54  ;;  %v2927_v10 = vadd.f32 %v2926_v59, %v2896_v60 }
 0x1c7   : > { %v6312_v4 = vpop.f32.mrb[16].mxu0  ;;  %v2966_v12 = vmul.f32 %v2896_v60, %v2896_v60  ;;  %v6448_v15 = vpop.f32.mrb[16].mxu1  ;;  %v1843_v18 = vmul.f32 %v1773_v44, %v1773_v44  ;;  %v2967_v19 = vmul.f32 %v2897_v52, %v2897_v52  ;;  %v2996_v20 = vadd.f32 %v2995_v61, %v2965_v53 }
 0x1c8   : > { %v1657_v16 = vpop.f32.mrb[17].mxu0  ;;  %v2788_v23 = vpop.f32.mrb[17].mxu1  ;;  %v1804_v26 = vadd.f32 %v1803_v8, %v1773_v44  ;;  %v1873_v28 = vadd.f32 %v1872_v6, %v1842_v2  ;;  %v2928_v29 = vadd.f32 %v2927_v10, %v2897_v52  ;;  %v1844_v34 = vmul.f32 %v1774_v62, %v1774_v62 }
 0x1c9   : > { %v1775_v21 = vadd.f32 %v8022_v14, %v1657_v16  ;;  %v6313_v24 = vpop.f32.mrb[18].mxu0  ;;  %v2899_v30 = vadd.f32 %v8022_v14, %v2788_v23  ;;  %v6449_v31 = vpop.f32.mrb[18].mxu1  ;;  %v2968_v35 = vmul.f32 %v2898_v0, %v2898_v0  ;;  %v2997_v36 = vadd.f32 %v2996_v20, %v2966_v12 }
 0x1ca   : > { %v1660_v33 = vpop.f32.mrb[19].mxu0  ;;  %v1777_v37 = vadd.f32 %v6312_v4, %v8022_v14  ;;  %v2791_v38 = vpop.f32.mrb[19].mxu1  ;;  %v1874_v40 = vadd.f32 %v1873_v28, %v1843_v18  ;;  %v1805_v41 = vadd.f32 %v1804_v26, %v1774_v62  ;;  %v2929_v45 = vadd.f32 %v2928_v29, %v2898_v0 }
 0x1cb   : > { %v1845_v43 = vmul.f32 %v1775_v21, %v1775_v21  ;;  %v2998_v44 = vadd.f32 %v2997_v36, %v2967_v19  ;;  %v2901_v47 = vadd.f32 %v6448_v15, %v8022_v14  ;;  %v2969_v48 = vmul.f32 %v2899_v30, %v2899_v30 }
 0x1cc   : > { %6561 = vmatmul.mubr.msk.bf16.gmra.mrb[60].mxu0 %vm594_vm1, %v7286_v17  ;;  %v1776_v49 = vadd.f32 %v8022_v14, %v1660_v33  ;;  %v1806_v50 = vadd.f32 %v1805_v41, %v1775_v21  ;;  %v1875_v51 = vadd.f32 %v1874_v40, %v1844_v34  ;;  %v2930_v52 = vadd.f32 %v2929_v45, %v2899_v30  ;;  %v7289_v17 = vld [vmem:[%s7392_s27 + $0x138] sm:$0xff]   ;;  %v7290_v33 = vld [vmem:[%s7392_s27 + $0x140] sm:$0xff]  }
 0x1cd   : > { %6697 = vmatmul.mubr.msk.bf16.gmra.mrb[60].mxu1 %vm594_vm1, %v8117_v25  ;;  %v2900_v53 = vadd.f32 %v8022_v14, %v2791_v38  ;;  %6566 = vmatprep.mubr.msk.bf16.mxu0 %vm594_vm1, %v7968_v63  ;;  %v2999_v54 = vadd.f32 %v2998_v44, %v2968_v35  ;;  %v1778_v56 = vadd.f32 %v6313_v24, %v8022_v14 }
 0x1ce   : > { %v2902_v58 = vadd.f32 %v6449_v31, %v8022_v14  ;;  %v1846_v59 = vmul.f32 %v1776_v49, %v1776_v49  ;;  %6702 = vmatprep.mubr.msk.bf16.mxu1 %vm594_vm1, %v7288_v39  ;;  %v1876_v61 = vadd.f32 %v1875_v51, %v1845_v43  ;;  %v1807_v62 = vadd.f32 %v1806_v50, %v1776_v49 }
 0x1cf   : > { %v6316_v60 = vpop.f32.mrb[20].mxu0  ;;  %v2931_v0 = vadd.f32 %v2930_v52, %v2900_v53  ;;  %v2970_v2 = vmul.f32 %v2900_v53, %v2900_v53  ;;  %v6452_v4 = vpop.f32.mrb[20].mxu1  ;;  %v1847_v8 = vmul.f32 %v1777_v37, %v1777_v37  ;;  %v2971_v10 = vmul.f32 %v2901_v47, %v2901_v47 }
 0x1d0   : > { %v1673_v6 = vpop.f32.mrb[21].mxu0  ;;  %v3000_v12 = vadd.f32 %v2999_v54, %v2969_v48  ;;  %v2804_v15 = vpop.f32.mrb[21].mxu1  ;;  %v1808_v18 = vadd.f32 %v1807_v62, %v1777_v37  ;;  %v1877_v19 = vadd.f32 %v1876_v61, %v1846_v59  ;;  %v1848_v26 = vmul.f32 %v1778_v56, %v1778_v56 }
 0x1d1   : > { %v1779_v63 = vadd.f32 %v8022_v14, %v1673_v6  ;;  %v6317_v16 = vpop.f32.mrb[22].mxu0  ;;  %v2932_v20 = vadd.f32 %v2931_v0, %v2901_v47  ;;  %v2903_v21 = vadd.f32 %v8022_v14, %v2804_v15  ;;  %v6453_v23 = vpop.f32.mrb[22].mxu1  ;;  %v2972_v28 = vmul.f32 %v2902_v58, %v2902_v58 }
 0x1d2   : > { %v1676_v24 = vpop.f32.mrb[23].mxu0  ;;  %v3001_v29 = vadd.f32 %v3000_v12, %v2970_v2  ;;  %v1781_v30 = vadd.f32 %v6316_v60, %v8022_v14  ;;  %v2807_v31 = vpop.f32.mrb[23].mxu1  ;;  %v1878_v34 = vadd.f32 %v1877_v19, %v1847_v8  ;;  %v1809_v35 = vadd.f32 %v1808_v18, %v1778_v56 }
 0x1d3   : > { %v1849_v36 = vmul.f32 %v1779_v63, %v1779_v63  ;;  %v2933_v38 = vadd.f32 %v2932_v20, %v2902_v58  ;;  %v2905_v39 = vadd.f32 %v6452_v4, %v8022_v14  ;;  %v2973_v40 = vmul.f32 %v2903_v21, %v2903_v21  ;;  %v7291_v4 = vld [vmem:[%s7392_s27 + $0x148] sm:$0xff]  }
 0x1d4   : > { %6567 = vmatmul.mubr.msk.bf16.vlgmr.msra.gmra.mrb[32].mxu0 %vm594_vm1, %v7979_v1  ;;  %v3002_v37 = vadd.f32 %v3001_v29, %v2971_v10  ;;  %v1780_v41 = vadd.f32 %v8022_v14, %v1676_v24  ;;  %v1810_v43 = vadd.f32 %v1809_v35, %v1779_v63  ;;  %v1879_v45 = vadd.f32 %v1878_v34, %v1848_v26 }
 0x1d5   : > { %6703 = vmatmul.mubr.msk.bf16.vlgmr.msra.gmra.mrb[32].mxu1 %vm594_vm1, %v7289_v17  ;;  %v2934_v44 = vadd.f32 %v2933_v38, %v2903_v21  ;;  %v2904_v47 = vadd.f32 %v8022_v14, %v2807_v31  ;;  %6570 = vmatprep.mubr.msk.bf16.mxu0 %vm594_vm1, %v7985_v5  ;;  %v1782_v49 = vadd.f32 %v6317_v16, %v8022_v14  ;;  %v7292_v21 = vld [vmem:[%s7392_s27 + $0x150] sm:$0xff]  }
 0x1d6   : > { %v3003_v48 = vadd.f32 %v3002_v37, %v2972_v28  ;;  %v2906_v1 = vadd.f32 %v6453_v23, %v8022_v14  ;;  %v1850_v50 = vmul.f32 %v1780_v41, %v1780_v41  ;;  %6706 = vmatprep.mubr.msk.bf16.mxu1 %vm594_vm1, %v7290_v33  ;;  %v1880_v52 = vadd.f32 %v1879_v45, %v1849_v36 }
 0x1d7   : > { %v6320_v51 = vpop.f32.mrb[24].mxu0  ;;  %v1811_v53 = vadd.f32 %v1810_v43, %v1780_v41  ;;  %v2935_v54 = vadd.f32 %v2934_v44, %v2904_v47  ;;  %v2974_v56 = vmul.f32 %v2904_v47, %v2904_v47  ;;  %v6456_v58 = vpop.f32.mrb[24].mxu1  ;;  %v1851_v60 = vmul.f32 %v1781_v30, %v1781_v30 }
 0x1d8   : > { %v1689_v59 = vpop.f32.mrb[25].mxu0  ;;  %v2975_v61 = vmul.f32 %v2905_v39, %v2905_v39  ;;  %v3004_v62 = vadd.f32 %v3003_v48, %v2973_v40  ;;  %v2820_v0 = vpop.f32.mrb[25].mxu1  ;;  %v1881_v8 = vadd.f32 %v1880_v52, %v1850_v50  ;;  %v1852_v16 = vmul.f32 %v1782_v49, %v1782_v49 }
 0x1d9   : > { %v1783_v5 = vadd.f32 %v8022_v14, %v1689_v59  ;;  %v6321_v2 = vpop.f32.mrb[26].mxu0  ;;  %v1812_v6 = vadd.f32 %v1811_v53, %v1781_v30  ;;  %v2936_v10 = vadd.f32 %v2935_v54, %v2905_v39  ;;  %v2907_v12 = vadd.f32 %v8022_v14, %v2820_v0  ;;  %v6457_v63 = vpop.f32.mrb[26].mxu1  ;;  %v7293_v53 = vld [vmem:[%s7392_s27 + $0x158] sm:$0xff]  }
 0x1da   : > { %v1692_v15 = vpop.f32.mrb[27].mxu0  ;;  %v2976_v17 = vmul.f32 %v2906_v1, %v2906_v1  ;;  %v3005_v18 = vadd.f32 %v3004_v62, %v2974_v56  ;;  %v1785_v19 = vadd.f32 %v6320_v51, %v8022_v14  ;;  %v2823_v20 = vpop.f32.mrb[27].mxu1  ;;  %v1882_v23 = vadd.f32 %v1881_v8, %v1851_v60 }
 0x1db   : > { %v1813_v24 = vadd.f32 %v1812_v6, %v1782_v49  ;;  %v1853_v26 = vmul.f32 %v1783_v5, %v1783_v5  ;;  %v2937_v28 = vadd.f32 %v2936_v10, %v2906_v1  ;;  %v2909_v30 = vadd.f32 %v6456_v58, %v8022_v14  ;;  %v7294_v6 = vld [vmem:[%s7392_s27 + $0x160] sm:$0xff]  }
 0x1dc   : > { %6571 = vmatmul.mubr.msk.bf16.gmra.mrb[36].mxu0 %vm594_vm1, %v7995_v7  ;;  %v3006_v29 = vadd.f32 %v3005_v18, %v2975_v61  ;;  %v2977_v31 = vmul.f32 %v2907_v12, %v2907_v12  ;;  %v1784_v33 = vadd.f32 %v8022_v14, %v1692_v15  ;;  %v1883_v35 = vadd.f32 %v1882_v23, %v1852_v16 }
 0x1dd   : > { %6707 = vmatmul.mubr.msk.bf16.gmra.mrb[36].mxu1 %vm594_vm1, %v7291_v4  ;;  %v1814_v34 = vadd.f32 %v1813_v24, %v1783_v5  ;;  %v2938_v36 = vadd.f32 %v2937_v28, %v2907_v12  ;;  %v2908_v38 = vadd.f32 %v8022_v14, %v2823_v20  ;;  %6574 = vmatprep.mubr.msk.bf16.mxu0 %vm594_vm1, %v7999_v9 }
 0x1de   : > { %v3007_v37 = vadd.f32 %v3006_v29, %v2976_v17  ;;  %v1786_v39 = vadd.f32 %v6321_v2, %v8022_v14  ;;  %v2910_v7 = vadd.f32 %v6457_v63, %v8022_v14  ;;  %v1854_v40 = vmul.f32 %v1784_v33, %v1784_v33  ;;  %6710 = vmatprep.mubr.msk.bf16.mxu1 %vm594_vm1, %v7292_v21 }
 0x1df   : > { %v6324_v41 = vpop.f32.mrb[28].mxu0  ;;  %v1884_v43 = vadd.f32 %v1883_v35, %v1853_v26  ;;  %v1815_v45 = vadd.f32 %v1814_v34, %v1784_v33  ;;  %v2939_v44 = vadd.f32 %v2938_v36, %v2908_v38  ;;  %v2978_v47 = vmul.f32 %v2908_v38, %v2908_v38  ;;  %v6460_v48 = vpop.f32.mrb[28].mxu1  ;;  %v7295_v36 = vld [vmem:[%s7392_s27 + $0x168] sm:$0xff]  }
 0x1e0   : > { %v1705_v49 = vpop.f32.mrb[29].mxu0  ;;  %v1855_v1 = vmul.f32 %v1785_v19, %v1785_v19  ;;  %v3008_v50 = vadd.f32 %v3007_v37, %v2977_v31  ;;  %v2836_v51 = vpop.f32.mrb[29].mxu1  ;;  %v2979_v62 = vmul.f32 %v2909_v30, %v2909_v30  ;;  %v1856_v5 = vmul.f32 %v1786_v39, %v1786_v39 }
 0x1e1   : > { %v1787_v9 = vadd.f32 %v8022_v14, %v1705_v49  ;;  %v6325_v52 = vpop.f32.mrb[30].mxu0  ;;  %v1816_v54 = vadd.f32 %v1815_v45, %v1785_v19  ;;  %v1885_v56 = vadd.f32 %v1884_v43, %v1854_v40  ;;  %v2940_v58 = vadd.f32 %v2939_v44, %v2909_v30  ;;  %v6461_v60 = vpop.f32.mrb[30].mxu1 }
 0x1e2   : > { %v2911_v59 = vadd.f32 %v8022_v14, %v2836_v51  ;;  %v1708_v61 = vpop.f32.mrb[31].mxu0  ;;  %v2980_v0 = vmul.f32 %v2910_v7, %v2910_v7  ;;  %v3009_v2 = vadd.f32 %v3008_v50, %v2978_v47  ;;  %v2839_v4 = vpop.f32.mrb[31].mxu1  ;;  %v1789_v16 = vadd.f32 %v6324_v41, %v8022_v14 }
 0x1e3   : > { %v1886_v8 = vadd.f32 %v1885_v56, %v1855_v1  ;;  %v1817_v10 = vadd.f32 %v1816_v54, %v1786_v39  ;;  %v1857_v12 = vmul.f32 %v1787_v9, %v1787_v9  ;;  %v2941_v63 = vadd.f32 %v2940_v58, %v2910_v7  ;;  %v7296_v7 = vld [vmem:[%s7392_s27 + $0x170] sm:$0xff]   ;;  %v7297_v58 = vld [vmem:[%s7392_s27 + $0x178] sm:$0xff]  }
 0x1e4   : > { %6575 = vmatmul.mubr.msk.bf16.gmra.mrb[40].mxu0 %vm594_vm1, %v8009_v11  ;;  %v3010_v15 = vadd.f32 %v3009_v2, %v2979_v62  ;;  %v2981_v17 = vmul.f32 %v2911_v59, %v2911_v59  ;;  %v1788_v18 = vadd.f32 %v8022_v14, %v1708_v61  ;;  %v2912_v23 = vadd.f32 %v8022_v14, %v2839_v4  ;;  %v7298_v61 = vld [vmem:[%s7392_s27 + $0x180] sm:$0xff]  }
 0x1e5   : > { %6711 = vmatmul.mubr.msk.bf16.gmra.mrb[40].mxu1 %vm594_vm1, %v7293_v53  ;;  %v1818_v19 = vadd.f32 %v1817_v10, %v1787_v9  ;;  %v1887_v20 = vadd.f32 %v1886_v8, %v1856_v5  ;;  %v2942_v21 = vadd.f32 %v2941_v63, %v2911_v59  ;;  %6578 = vmatprep.mubr.msk.bf16.mxu0 %vm594_vm1, %v8013_v13 }
 0x1e6   : > { %v2913_v24 = vadd.f32 %v6460_v48, %v8022_v14  ;;  %v3011_v11 = vadd.f32 %v3010_v15, %v2980_v0  ;;  %v1790_v26 = vadd.f32 %v6325_v52, %v8022_v14  ;;  %v1858_v28 = vmul.f32 %v1788_v18, %v1788_v18  ;;  %6714 = vmatprep.mubr.msk.bf16.mxu1 %vm594_vm1, %v7294_v6 }
 0x1e7   : > { %v1888_v29 = vadd.f32 %v1887_v20, %v1857_v12  ;;  %v1819_v30 = vadd.f32 %v1818_v19, %v1788_v18  ;;  %v2943_v31 = vadd.f32 %v2942_v21, %v2912_v23  ;;  %v2982_v33 = vmul.f32 %v2912_v23, %v2912_v23  ;;  %v7300_v19 = vld [vmem:[%s7392_s27 + $0x190] sm:$0xff]   ;;  %v7301_v21 = vld [vmem:[%s7392_s27 + $0x198] sm:$0xff]   ;;  %v7302_v23 = vld [vmem:[%s7392_s27 + $0x1a0] sm:$0xff]  }
 0x1e8   : > { %v3012_v34 = vadd.f32 %v3011_v11, %v2981_v17  ;;  %v2914_v35 = vadd.f32 %v6461_v60, %v8022_v14  ;;  %v1859_v38 = vmul.f32 %v1789_v16, %v1789_v16  ;;  %v2983_v40 = vmul.f32 %v2913_v24, %v2913_v24 }
 0x1e9   : > { %v1820_v37 = vadd.f32 %v1819_v30, %v1789_v16  ;;  %v1889_v13 = vadd.f32 %v1888_v29, %v1858_v28  ;;  %v2944_v39 = vadd.f32 %v2943_v31, %v2913_v24  ;;  %v1860_v43 = vmul.f32 %v1790_v26, %v1790_v26 }
 0x1ea   : > { %v3013_v41 = vadd.f32 %v3012_v34, %v2982_v33  ;;  %v2984_v48 = vmul.f32 %v2914_v35, %v2914_v35 }
 0x1eb   : > { %v1821_v45 = vadd.f32 %v1820_v37, %v1790_v26  ;;  %v1890_v44 = vadd.f32 %v1889_v13, %v1859_v38  ;;  %v2945_v47 = vadd.f32 %v2944_v39, %v2914_v35 }
 0x1ec   : > { %6579 = vmatmul.mubr.msk.bf16.gmra.mrb[44].mxu0 %vm594_vm1, %v8029_v22  ;;  %v3014_v49 = vadd.f32 %v3013_v41, %v2983_v40 }
 0x1ed   : > { %6715 = vmatmul.mubr.msk.bf16.gmra.mrb[44].mxu1 %vm594_vm1, %v7295_v36  ;;  %6582 = vmatprep.mubr.msk.bf16.mxu0 %vm594_vm1, %v8034_v27  ;;  %v1822_v1 = vrot.slane %v1821_v45, 4  ;;  %v1891_v50 = vadd.f32 %v1890_v44, %v1860_v43  ;;  %v2946_v9 = vrot.slane %v2945_v47, 4 }
 0x1ee   : > { %6718 = vmatprep.mubr.msk.bf16.mxu1 %vm594_vm1, %v7296_v7  ;;  %v3015_v51 = vadd.f32 %v3014_v49, %v2984_v48 }
 0x1ef   : > { %v1823_v52 = vadd.f32 %v1822_v1, %v1821_v45  ;;  %v1892_v53 = vrot.slane %v1891_v50, 4  ;;  %v2947_v54 = vadd.f32 %v2946_v9, %v2945_v47 }
 0x1f0   : > { %v3016_v56 = vrot.slane %v3015_v51, 4 }
 0x1f1   : > { %v1824_v22 = vrot.slane %v1823_v52, 2  ;;  %v1893_v59 = vadd.f32 %v1892_v53, %v1891_v50  ;;  %v2948_v60 = vrot.slane %v2947_v54, 2 }
 0x1f2   : > { %v3017_v62 = vadd.f32 %v3016_v56, %v3015_v51 }
 0x1f3   : > { %v1825_v5 = vadd.f32 %v1824_v22, %v1823_v52  ;;  %v1894_v0 = vrot.slane %v1893_v59, 2  ;;  %v2949_v27 = vadd.f32 %v2948_v60, %v2947_v54 }
 0x1f4   : > { %6583 = vmatmul.mubr.msk.bf16.gmra.mrb[48].mxu0 %vm594_vm1, %v8051_v57  ;;  %v3018_v2 = vrot.slane %v3017_v62, 2  ;;  %v7299_v57 = vld [vmem:[%s7392_s27 + $0x188] sm:$0xff]  }
 0x1f5   : > { %6719 = vmatmul.mubr.msk.bf16.gmra.mrb[48].mxu1 %vm594_vm1, %v7297_v58  ;;  %6586 = vmatprep.mubr.msk.bf16.mxu0 %vm594_vm1, %v8056_v3  ;;  %v1826_v4 = vrot.slane %v1825_v5, 1  ;;  %v1895_v6 = vadd.f32 %v1894_v0, %v1893_v59  ;;  %v2950_v8 = vrot.slane %v2949_v27, 1 }
 0x1f6   : > { %6722 = vmatprep.mubr.msk.bf16.mxu1 %vm594_vm1, %v7298_v61  ;;  %v3019_v10 = vadd.f32 %v3018_v2, %v3017_v62 }
 0x1f7   : > { %v1827_v12 = vadd.f32 %v1826_v4, %v1825_v5  ;;  %v1896_v63 = vrot.slane %v1895_v6, 1  ;;  %v2951_v15 = vadd.f32 %v2950_v8, %v2949_v27 }
 0x1f8   : > { %v3020_v16 = vrot.slane %v3019_v10, 1 }
 0x1f9   : > { %v1897_v17 = vadd.f32 %v1896_v63, %v1895_v6  ;;  %v8198_v18 = vadd.f32 %v2951_v15, %v1827_v12 }
 0x1fa   : > { %v3021_v3 = vadd.f32 %v3020_v16, %v3019_v10 }
 0x1fc   : > { %6587 = vmatmul.mubr.msk.bf16.gmra.mrb[52].mxu0 %vm594_vm1, %v8072_v42  ;;  %v8203_v20 = vadd.f32 %v3021_v3, %v1897_v17  ;;  %v7303_v42 = vld [vmem:[%s7392_s27 + $0x1a8] sm:$0xff]  }
 0x1fd   : > { %6723 = vmatmul.mubr.msk.bf16.gmra.mrb[52].mxu1 %vm594_vm1, %v7299_v57  ;;  %6590 = vmatprep.mubr.msk.bf16.mxu0 %vm594_vm1, %v8078_v55  ;;  %v7329_v55 = vmov 0.0  }
 0x1fe   : > { %6726 = vmatprep.mubr.msk.bf16.mxu1 %vm594_vm1, %v7300_v19  ;;  %186 = vst [vmem:[%s8225_s8] sm:$0x3] %v7329_v55 }
 0x204   : > { %6591 = vmatmul.mubr.msk.bf16.gmra.mrb[56].mxu0 %vm594_vm1, %v8095_v32 }
 0x205   : > { %6727 = vmatmul.mubr.msk.bf16.gmra.mrb[56].mxu1 %vm594_vm1, %v7301_v21  ;;  %6594 = vmatprep.mubr.msk.bf16.mxu0 %vm594_vm1, %v8101_v46 }
 0x206   : > { %6730 = vmatprep.mubr.msk.bf16.mxu1 %vm594_vm1, %v7302_v23 }
 0x20c   : > { %6595 = vmatmul.mubr.msk.bf16.gmra.mrb[60].mxu0 %vm594_vm1, %v8117_v25 }
 0x20d   : > { %6731 = vmatmul.mubr.msk.bf16.gmra.mrb[60].mxu1 %vm594_vm1, %v7303_v42 }
 0x2a7   : > { %v6568_v32 = vpop.f32.mrb[32].mxu0 }
 0x2a8   : > { %v6704_v24 = vpop.f32.mrb[32].mxu1  ;;  %v3848_v46 = vpop.f32.mrb[33].mxu0  ;;  %v4009_v31 = vadd.f32 %v6568_v32, %v8022_v14 }
 0x2a9   : > { %v4007_v11 = vadd.f32 %v8022_v14, %v3848_v46  ;;  %v4844_v26 = vpop.f32.mrb[33].mxu1  ;;  %v6569_v28 = vpop.f32.mrb[34].mxu0  ;;  %v5005_v35 = vadd.f32 %v6704_v24, %v8022_v14 }
 0x2aa   : > { %v5003_v25 = vadd.f32 %v8022_v14, %v4844_v26  ;;  %v6705_v29 = vpop.f32.mrb[34].mxu1  ;;  %v3851_v30 = vpop.f32.mrb[35].mxu0  ;;  %v4010_v37 = vadd.f32 %v6569_v28, %v8022_v14  ;;  %v4079_v45 = vmul.f32 %v4009_v31, %v4009_v31 }
 0x2ab   : > { %v4008_v33 = vadd.f32 %v8022_v14, %v3851_v30  ;;  %v4847_v34 = vpop.f32.mrb[35].mxu1  ;;  %v4077_v38 = vmul.f32 %v4007_v11, %v4007_v11  ;;  %v5006_v40 = vadd.f32 %v6705_v29, %v8022_v14  ;;  %v5075_v49 = vmul.f32 %v5005_v35, %v5005_v35 }
 0x2ac   : > { %v5004_v36 = vadd.f32 %v8022_v14, %v4847_v34  ;;  %v5073_v7 = vmul.f32 %v5003_v25, %v5003_v25  ;;  %v4080_v52 = vmul.f32 %v4010_v37, %v4010_v37 }
 0x2ad   : > { %v4039_v13 = vadd.f32 %v4008_v33, %v4007_v11  ;;  %v4078_v39 = vmul.f32 %v4008_v33, %v4008_v33  ;;  %v5076_v59 = vmul.f32 %v5006_v40, %v5006_v40 }
 0x2ae   : > { %v5035_v41 = vadd.f32 %v5004_v36, %v5003_v25  ;;  %v5074_v43 = vmul.f32 %v5004_v36, %v5004_v36 }
 0x2af   : > { %v4040_v44 = vadd.f32 %v4039_v13, %v4009_v31  ;;  %v4109_v47 = vadd.f32 %v4078_v39, %v4077_v38  ;;  %v6572_v48 = vpop.f32.mrb[36].mxu0 }
 0x2b0   : > { %v5036_v1 = vadd.f32 %v5035_v41, %v5005_v35  ;;  %v5105_v50 = vadd.f32 %v5074_v43, %v5073_v7  ;;  %v6708_v9 = vpop.f32.mrb[36].mxu1  ;;  %v3864_v51 = vpop.f32.mrb[37].mxu0  ;;  %v4013_v8 = vadd.f32 %v6572_v48, %v8022_v14 }
 0x2b1   : > { %v4110_v53 = vadd.f32 %v4109_v47, %v4079_v45  ;;  %v4011_v54 = vadd.f32 %v8022_v14, %v3864_v51  ;;  %v4041_v56 = vadd.f32 %v4040_v44, %v4010_v37  ;;  %v4860_v58 = vpop.f32.mrb[37].mxu1  ;;  %v6573_v22 = vpop.f32.mrb[38].mxu0  ;;  %v5009_v15 = vadd.f32 %v6708_v9, %v8022_v14  ;;  %v8249_v44 = vld [vmem:[%s8312_s2] ss:$0 sm:$0xff] }
 0x2b2   : > { %v5106_v60 = vadd.f32 %v5105_v50, %v5075_v49  ;;  %v5007_v61 = vadd.f32 %v8022_v14, %v4860_v58  ;;  %v5037_v62 = vadd.f32 %v5036_v1, %v5006_v40  ;;  %v6709_v5 = vpop.f32.mrb[38].mxu1  ;;  %v3867_v0 = vpop.f32.mrb[39].mxu0  ;;  %v4014_v3 = vadd.f32 %v6573_v22, %v8022_v14 }
 0x2b3   : > { %v4042_v27 = vadd.f32 %v4041_v56, %v4011_v54  ;;  %v4081_v2 = vmul.f32 %v4011_v54, %v4011_v54  ;;  %v4111_v4 = vadd.f32 %v4110_v53, %v4080_v52  ;;  %v4863_v6 = vpop.f32.mrb[39].mxu1  ;;  %v4012_v57 = vadd.f32 %v8022_v14, %v3867_v0 }
 0x2b4   : > { %v5038_v10 = vadd.f32 %v5037_v62, %v5007_v61  ;;  %v5077_v12 = vmul.f32 %v5007_v61, %v5007_v61  ;;  %v5107_v63 = vadd.f32 %v5106_v60, %v5076_v59  ;;  %v5008_v17 = vadd.f32 %v8022_v14, %v4863_v6 }
 0x2b5   : > { %v4112_v16 = vadd.f32 %v4111_v4, %v4081_v2  ;;  %v5010_v21 = vadd.f32 %v6709_v5, %v8022_v14  ;;  %v4043_v23 = vadd.f32 %v4042_v27, %v4012_v57  ;;  %v4082_v42 = vmul.f32 %v4012_v57, %v4012_v57 }
 0x2b6   : > { %v5108_v19 = vadd.f32 %v5107_v63, %v5077_v12  ;;  %v5039_v55 = vadd.f32 %v5038_v10, %v5008_v17  ;;  %v4083_v24 = vmul.f32 %v4013_v8, %v4013_v8  ;;  %v5078_v46 = vmul.f32 %v5008_v17, %v5008_v17 }
 0x2b7   : > { %v6576_v32 = vpop.f32.mrb[40].mxu0  ;;  %v5079_v28 = vmul.f32 %v5009_v15, %v5009_v15  ;;  %v4044_v25 = vadd.f32 %v4043_v23, %v4013_v8  ;;  %v4113_v29 = vadd.f32 %v4112_v16, %v4082_v42  ;;  %v4084_v34 = vmul.f32 %v4014_v3, %v4014_v3 }
 0x2b8   : > { %v6712_v11 = vpop.f32.mrb[40].mxu1  ;;  %v3880_v26 = vpop.f32.mrb[41].mxu0  ;;  %v5040_v30 = vadd.f32 %v5039_v55, %v5009_v15  ;;  %v5109_v35 = vadd.f32 %v5108_v19, %v5078_v46  ;;  %v5080_v39 = vmul.f32 %v5010_v21, %v5010_v21  ;;  %v4017_v47 = vadd.f32 %v8249_v44, %v6576_v32 }
 0x2b9   : > { %v4876_v31 = vpop.f32.mrb[41].mxu1  ;;  %v6577_v33 = vpop.f32.mrb[42].mxu0  ;;  %v4015_v36 = vadd.f32 %v8022_v14, %v3880_v26  ;;  %v4114_v7 = vadd.f32 %v4113_v29, %v4083_v24  ;;  %v4045_v40 = vadd.f32 %v4044_v25, %v4014_v3  ;;  %v5013_v1 = vadd.f32 %v8249_v44, %v6712_v11 }
 0x2ba   : > { %v5011_v38 = vadd.f32 %v8022_v14, %v4876_v31  ;;  %v6713_v37 = vpop.f32.mrb[42].mxu1  ;;  %v3883_v13 = vpop.f32.mrb[43].mxu0  ;;  %v5041_v41 = vadd.f32 %v5040_v30, %v5010_v21  ;;  %v5110_v45 = vadd.f32 %v5109_v35, %v5079_v28  ;;  %v4018_v56 = vadd.f32 %v8249_v44, %v6577_v33 }
 0x2bb   : > { %v4879_v43 = vpop.f32.mrb[43].mxu1  ;;  %v4085_v48 = vmul.f32 %v4015_v36, %v4015_v36  ;;  %v4046_v14 = vadd.f32 %v4045_v40, %v4015_v36  ;;  %v4115_v50 = vadd.f32 %v4114_v7, %v4084_v34  ;;  %v4016_v52 = vadd.f32 %v8249_v44, %v3883_v13 }
 0x2bc   : > { %v5081_v49 = vmul.f32 %v5011_v38, %v5011_v38  ;;  %v5042_v9 = vadd.f32 %v5041_v41, %v5011_v38  ;;  %v5111_v51 = vadd.f32 %v5110_v45, %v5080_v39  ;;  %v5012_v53 = vadd.f32 %v8249_v44, %v4879_v43 }
 0x2bd   : > { %v4116_v54 = vadd.f32 %v4115_v50, %v4085_v48  ;;  %v5014_v58 = vadd.f32 %v8249_v44, %v6713_v37  ;;  %v4047_v60 = vadd.f32 %v4046_v14, %v4016_v52  ;;  %v4086_v61 = vmul.f32 %v4016_v52, %v4016_v52 }
 0x2be   : > { %v5112_v59 = vadd.f32 %v5111_v51, %v5081_v49  ;;  %v5043_v62 = vadd.f32 %v5042_v9, %v5012_v53  ;;  %v4087_v27 = vmul.f32 %v4017_v47, %v4017_v47  ;;  %v5083_v2 = vmul.f32 %v5013_v1, %v5013_v1 }
 0x2bf   : > { %v6580_v22 = vpop.f32.mrb[44].mxu0  ;;  %v5082_v4 = vmul.f32 %v5012_v53, %v5012_v53  ;;  %v4048_v12 = vadd.f32 %v4047_v60, %v4017_v47  ;;  %v4117_v63 = vadd.f32 %v4116_v54, %v4086_v61  ;;  %v4088_v19 = vmul.f32 %v4018_v56, %v4018_v56 }
 0x2c0   : > { %v6716_v5 = vpop.f32.mrb[44].mxu1  ;;  %v3896_v0 = vpop.f32.mrb[45].mxu0  ;;  %v5044_v15 = vadd.f32 %v5043_v62, %v5013_v1  ;;  %v5084_v3 = vmul.f32 %v5014_v58, %v5014_v58  ;;  %v4021_v23 = vadd.f32 %v8249_v44, %v6580_v22 }
 0x2c1   : > { %v4019_v6 = vadd.f32 %v8249_v44, %v3896_v0  ;;  %v4892_v8 = vpop.f32.mrb[45].mxu1  ;;  %v6581_v10 = vpop.f32.mrb[46].mxu0  ;;  %v5113_v21 = vadd.f32 %v5112_v59, %v5082_v4  ;;  %v4118_v55 = vadd.f32 %v4117_v63, %v4087_v27  ;;  %v4049_v32 = vadd.f32 %v4048_v12, %v4018_v56 }
 0x2c2   : > { %v5015_v16 = vadd.f32 %v8249_v44, %v4892_v8  ;;  %v6717_v57 = vpop.f32.mrb[46].mxu1  ;;  %v3899_v17 = vpop.f32.mrb[47].mxu0  ;;  %v5045_v46 = vadd.f32 %v5044_v15, %v5014_v58  ;;  %v5017_v26 = vadd.f32 %v8249_v44, %v6716_v5  ;;  %v4022_v35 = vadd.f32 %v8249_v44, %v6581_v10 }
 0x2c3   : > { %v4895_v42 = vpop.f32.mrb[47].mxu1  ;;  %v4089_v24 = vmul.f32 %v4019_v6, %v4019_v6  ;;  %v5114_v11 = vadd.f32 %v5113_v21, %v5083_v2  ;;  %v4020_v25 = vadd.f32 %v8249_v44, %v3899_v17  ;;  %v4050_v29 = vadd.f32 %v4049_v32, %v4019_v6 }
 0x2c4   : > { %v5085_v28 = vmul.f32 %v5015_v16, %v5015_v16  ;;  %v4119_v30 = vadd.f32 %v4118_v55, %v4088_v19  ;;  %v5046_v31 = vadd.f32 %v5045_v46, %v5015_v16  ;;  %v5016_v33 = vadd.f32 %v8249_v44, %v4895_v42 }
 0x2c5   : > { %v5115_v34 = vadd.f32 %v5114_v11, %v5084_v3  ;;  %v5018_v36 = vadd.f32 %v8249_v44, %v6717_v57  ;;  %v4090_v38 = vmul.f32 %v4020_v25, %v4020_v25  ;;  %v4051_v39 = vadd.f32 %v4050_v29, %v4020_v25 }
 0x2c6   : > { %v4120_v13 = vadd.f32 %v4119_v30, %v4089_v24  ;;  %v5047_v7 = vadd.f32 %v5046_v31, %v5016_v33  ;;  %v5086_v40 = vmul.f32 %v5016_v33, %v5016_v33  ;;  %v4091_v45 = vmul.f32 %v4021_v23, %v4021_v23 }
 0x2c7   : > { %v6584_v37 = vpop.f32.mrb[48].mxu0  ;;  %v5087_v47 = vmul.f32 %v5017_v26, %v5017_v26  ;;  %v5116_v48 = vadd.f32 %v5115_v34, %v5085_v28  ;;  %v4052_v50 = vadd.f32 %v4051_v39, %v4021_v23  ;;  %v4092_v56 = vmul.f32 %v4022_v35, %v4022_v35 }
 0x2c8   : > { %v6720_v41 = vpop.f32.mrb[48].mxu1  ;;  %v3912_v43 = vpop.f32.mrb[49].mxu0  ;;  %v4121_v9 = vadd.f32 %v4120_v13, %v4090_v38  ;;  %v5048_v51 = vadd.f32 %v5047_v7, %v5017_v26  ;;  %v5088_v58 = vmul.f32 %v5018_v36, %v5018_v36  ;;  %v4025_v59 = vadd.f32 %v8249_v44, %v6584_v37 }
 0x2c9   : > { %v4023_v49 = vadd.f32 %v8249_v44, %v3912_v43  ;;  %v4908_v1 = vpop.f32.mrb[49].mxu1  ;;  %v6585_v14 = vpop.f32.mrb[50].mxu0  ;;  %v5117_v22 = vadd.f32 %v5116_v48, %v5086_v40  ;;  %v4053_v62 = vadd.f32 %v4052_v50, %v4022_v35  ;;  %v5021_v2 = vadd.f32 %v8249_v44, %v6720_v41 }
 0x2ca   : > { %v5019_v52 = vadd.f32 %v8249_v44, %v4908_v1  ;;  %v6721_v53 = vpop.f32.mrb[50].mxu1  ;;  %v3915_v54 = vpop.f32.mrb[51].mxu0  ;;  %v4122_v61 = vadd.f32 %v4121_v9, %v4091_v45  ;;  %v5049_v0 = vadd.f32 %v5048_v51, %v5018_v36  ;;  %v4026_v16 = vadd.f32 %v8249_v44, %v6585_v14 }
 0x2cb   : > { %v4911_v60 = vpop.f32.mrb[51].mxu1  ;;  %v4093_v5 = vmul.f32 %v4023_v49, %v4023_v49  ;;  %v5118_v27 = vadd.f32 %v5117_v22, %v5087_v47  ;;  %v4024_v6 = vadd.f32 %v8249_v44, %v3915_v54  ;;  %v4054_v8 = vadd.f32 %v4053_v62, %v4023_v49 }
 0x2cc   : > { %v5089_v4 = vmul.f32 %v5019_v52, %v5019_v52  ;;  %v4123_v10 = vadd.f32 %v4122_v61, %v4092_v56  ;;  %v5050_v12 = vadd.f32 %v5049_v0, %v5019_v52  ;;  %v5020_v63 = vadd.f32 %v8249_v44, %v4911_v60 }
 0x2cd   : > { %v5119_v15 = vadd.f32 %v5118_v27, %v5088_v58  ;;  %v5022_v57 = vadd.f32 %v8249_v44, %v6721_v53  ;;  %v4094_v17 = vmul.f32 %v4024_v6, %v4024_v6  ;;  %v4055_v21 = vadd.f32 %v4054_v8, %v4024_v6 }
 0x2ce   : > { %v4124_v3 = vadd.f32 %v4123_v10, %v4093_v5  ;;  %v5051_v23 = vadd.f32 %v5050_v12, %v5020_v63  ;;  %v5090_v42 = vmul.f32 %v5020_v63, %v5020_v63  ;;  %v4095_v24 = vmul.f32 %v4025_v59, %v4025_v59 }
 0x2cf   : > { %v6588_v19 = vpop.f32.mrb[52].mxu0  ;;  %v5091_v46 = vmul.f32 %v5021_v2, %v5021_v2  ;;  %v5120_v11 = vadd.f32 %v5119_v15, %v5089_v4  ;;  %v4056_v29 = vadd.f32 %v4055_v21, %v4025_v59  ;;  %v4096_v36 = vmul.f32 %v4026_v16, %v4026_v16 }
 0x2d0   : > { %v6724_v55 = vpop.f32.mrb[52].mxu1  ;;  %v3928_v32 = vpop.f32.mrb[53].mxu0  ;;  %v4125_v30 = vadd.f32 %v4124_v3, %v4094_v17  ;;  %v5052_v31 = vadd.f32 %v5051_v23, %v5021_v2  ;;  %v5092_v38 = vmul.f32 %v5022_v57, %v5022_v57  ;;  %v4029_v13 = vadd.f32 %v8249_v44, %v6588_v19 }
 0x2d1   : > { %v4027_v26 = vadd.f32 %v8249_v44, %v3928_v32  ;;  %v4924_v28 = vpop.f32.mrb[53].mxu1  ;;  %v6589_v25 = vpop.f32.mrb[54].mxu0  ;;  %v5121_v37 = vadd.f32 %v5120_v11, %v5090_v42  ;;  %v4057_v40 = vadd.f32 %v4056_v29, %v4026_v16  ;;  %v5025_v47 = vadd.f32 %v8249_v44, %v6724_v55 }
 0x2d2   : > { %v5023_v33 = vadd.f32 %v8249_v44, %v4924_v28  ;;  %v6725_v34 = vpop.f32.mrb[54].mxu1  ;;  %v3931_v35 = vpop.f32.mrb[55].mxu0  ;;  %v4126_v7 = vadd.f32 %v4125_v30, %v4095_v24  ;;  %v5053_v43 = vadd.f32 %v5052_v31, %v5022_v57  ;;  %v4030_v52 = vadd.f32 %v8249_v44, %v6589_v25 }
 0x2d3   : > { %v4927_v39 = vpop.f32.mrb[55].mxu1  ;;  %v4097_v41 = vmul.f32 %v4027_v26, %v4027_v26  ;;  %v5122_v45 = vadd.f32 %v5121_v37, %v5091_v46  ;;  %v4028_v49 = vadd.f32 %v8249_v44, %v3931_v35  ;;  %v4058_v1 = vadd.f32 %v4057_v40, %v4027_v26 }
 0x2d4   : > { %v5093_v48 = vmul.f32 %v5023_v33, %v5023_v33  ;;  %v4127_v14 = vadd.f32 %v4126_v7, %v4096_v36  ;;  %v5054_v50 = vadd.f32 %v5053_v43, %v5023_v33  ;;  %v5024_v9 = vadd.f32 %v8249_v44, %v4927_v39 }
 0x2d5   : > { %v5123_v51 = vadd.f32 %v5122_v45, %v5092_v38  ;;  %v5026_v53 = vadd.f32 %v8249_v44, %v6725_v34  ;;  %v4098_v54 = vmul.f32 %v4028_v49, %v4028_v49  ;;  %v4059_v22 = vadd.f32 %v4058_v1, %v4028_v49 }
 0x2d6   : > { %v4128_v58 = vadd.f32 %v4127_v14, %v4097_v41  ;;  %v5055_v59 = vadd.f32 %v5054_v50, %v5024_v9  ;;  %v5094_v60 = vmul.f32 %v5024_v9, %v5024_v9  ;;  %v4099_v5 = vmul.f32 %v4029_v13, %v4029_v13 }
 0x2d7   : > { %v6592_v56 = vpop.f32.mrb[56].mxu0  ;;  %v5095_v0 = vmul.f32 %v5025_v47, %v5025_v47  ;;  %v5124_v27 = vadd.f32 %v5123_v51, %v5093_v48  ;;  %v4060_v8 = vadd.f32 %v4059_v22, %v4029_v13  ;;  %v4100_v57 = vmul.f32 %v4030_v52, %v4030_v52 }
 0x2d8   : > { %v6728_v61 = vpop.f32.mrb[56].mxu1  ;;  %v3944_v62 = vpop.f32.mrb[57].mxu0  ;;  %v4129_v10 = vadd.f32 %v4128_v58, %v4098_v54  ;;  %v5056_v12 = vadd.f32 %v5055_v59, %v5025_v47  ;;  %v5096_v17 = vmul.f32 %v5026_v53, %v5026_v53  ;;  %v4033_v3 = vadd.f32 %v8249_v44, %v6592_v56 }
 0x2d9   : > { %v4031_v2 = vadd.f32 %v8249_v44, %v3944_v62  ;;  %v4940_v4 = vpop.f32.mrb[57].mxu1  ;;  %v6593_v6 = vpop.f32.mrb[58].mxu0  ;;  %v5125_v19 = vadd.f32 %v5124_v27, %v5094_v60  ;;  %v4061_v42 = vadd.f32 %v4060_v8, %v4030_v52  ;;  %v5029_v46 = vadd.f32 %v8249_v44, %v6728_v61 }
 0x2da   : > { %v5027_v63 = vadd.f32 %v8249_v44, %v4940_v4  ;;  %v6729_v15 = vpop.f32.mrb[58].mxu1  ;;  %v3947_v16 = vpop.f32.mrb[59].mxu0  ;;  %v4130_v23 = vadd.f32 %v4129_v10, %v4099_v5  ;;  %v5057_v32 = vadd.f32 %v5056_v12, %v5026_v53  ;;  %v4034_v33 = vadd.f32 %v8249_v44, %v6593_v6 }
 0x2db   : > { %v4943_v21 = vpop.f32.mrb[59].mxu1  ;;  %v4101_v55 = vmul.f32 %v4031_v2, %v4031_v2  ;;  %v5126_v24 = vadd.f32 %v5125_v19, %v5095_v0  ;;  %v4032_v26 = vadd.f32 %v8249_v44, %v3947_v16  ;;  %v4062_v28 = vadd.f32 %v4061_v42, %v4031_v2 }
 0x2dc   : > { %v5097_v11 = vmul.f32 %v5027_v63, %v5027_v63  ;;  %v4131_v25 = vadd.f32 %v4130_v23, %v4100_v57  ;;  %v5058_v29 = vadd.f32 %v5057_v32, %v5027_v63  ;;  %v5028_v30 = vadd.f32 %v8249_v44, %v4943_v21 }
 0x2dd   : > { %v5127_v31 = vadd.f32 %v5126_v24, %v5096_v17  ;;  %v5030_v34 = vadd.f32 %v8249_v44, %v6729_v15  ;;  %v4102_v35 = vmul.f32 %v4032_v26, %v4032_v26  ;;  %v4063_v37 = vadd.f32 %v4062_v28, %v4032_v26 }
 0x2de   : > { %v4132_v38 = vadd.f32 %v4131_v25, %v4101_v55  ;;  %v5059_v13 = vadd.f32 %v5058_v29, %v5028_v30  ;;  %v5098_v39 = vmul.f32 %v5028_v30, %v5028_v30  ;;  %v4103_v41 = vmul.f32 %v4033_v3, %v4033_v3 }
 0x2df   : > { %v6596_v36 = vpop.f32.mrb[60].mxu0  ;;  %v5099_v43 = vmul.f32 %v5029_v46, %v5029_v46  ;;  %v5128_v45 = vadd.f32 %v5127_v31, %v5097_v11  ;;  %v4064_v1 = vadd.f32 %v4063_v37, %v4033_v3  ;;  %v4104_v53 = vmul.f32 %v4034_v33, %v4034_v33 }
 0x2e0   : > { %v6732_v7 = vpop.f32.mrb[60].mxu1  ;;  %v3960_v40 = vpop.f32.mrb[61].mxu0  ;;  %v4133_v14 = vadd.f32 %v4132_v38, %v4102_v35  ;;  %v5060_v50 = vadd.f32 %v5059_v13, %v5029_v46  ;;  %v5100_v54 = vmul.f32 %v5030_v34, %v5030_v34  ;;  %v4037_v58 = vadd.f32 %v8249_v44, %v6596_v36 }
 0x2e1   : > { %v4035_v47 = vadd.f32 %v8249_v44, %v3960_v40  ;;  %v4956_v48 = vpop.f32.mrb[61].mxu1  ;;  %v6597_v49 = vpop.f32.mrb[62].mxu0  ;;  %v5129_v56 = vadd.f32 %v5128_v45, %v5098_v39  ;;  %v4065_v60 = vadd.f32 %v4064_v1, %v4034_v33  ;;  %v5033_v12 = vadd.f32 %v8249_v44, %v6732_v7 }
 0x2e2   : > { %v5031_v9 = vadd.f32 %v8249_v44, %v4956_v48  ;;  %v6733_v51 = vpop.f32.mrb[62].mxu1  ;;  %v3963_v52 = vpop.f32.mrb[63].mxu0  ;;  %v4134_v59 = vadd.f32 %v4133_v14, %v4103_v41  ;;  %v5061_v62 = vadd.f32 %v5060_v50, %v5030_v34  ;;  %v4038_v15 = vadd.f32 %v8249_v44, %v6597_v49 }
 0x2e3   : > { %v4959_v22 = vpop.f32.mrb[63].mxu1  ;;  %v4105_v61 = vmul.f32 %v4035_v47, %v4035_v47  ;;  %v5130_v5 = vadd.f32 %v5129_v56, %v5099_v43  ;;  %v5034_v27 = vadd.f32 %v8249_v44, %v6733_v51  ;;  %v4036_v2 = vadd.f32 %v8249_v44, %v3963_v52 }
 0x2e4   : > { %v5101_v0 = vmul.f32 %v5031_v9, %v5031_v9  ;;  %v4066_v4 = vadd.f32 %v4065_v60, %v4035_v47  ;;  %v4135_v6 = vadd.f32 %v4134_v59, %v4104_v53  ;;  %v5062_v8 = vadd.f32 %v5061_v62, %v5031_v9  ;;  %v5143_v60 = vld [vmem:[%s8225_s8] sm:$0x3] }
 0x2e5   : > { %v5032_v10 = vadd.f32 %v8249_v44, %v4959_v22  ;;  %v5131_v63 = vadd.f32 %v5130_v5, %v5100_v54  ;;  %v4106_v16 = vmul.f32 %v4036_v2, %v4036_v2  ;;  %v4107_v23 = vmul.f32 %v4037_v58, %v4037_v58 }
 0x2e6   : > { %v4136_v57 = vadd.f32 %v4135_v6, %v4105_v61  ;;  %v4067_v17 = vadd.f32 %v4066_v4, %v4036_v2  ;;  %v5103_v24 = vmul.f32 %v5033_v12, %v5033_v12  ;;  %v4108_v11 = vmul.f32 %v4038_v15, %v4038_v15 }
 0x2e7   : > { %v5063_v19 = vadd.f32 %v5062_v8, %v5032_v10  ;;  %v5102_v3 = vmul.f32 %v5032_v10, %v5032_v10  ;;  %v5132_v21 = vadd.f32 %v5131_v63, %v5101_v0  ;;  %v5104_v29 = vmul.f32 %v5034_v27, %v5034_v27 }
 0x2e8   : > { %v4068_v42 = vadd.f32 %v4067_v17, %v4037_v58  ;;  %v4137_v55 = vadd.f32 %v4136_v57, %v4106_v16 }
 0x2e9   : > { %v5064_v32 = vadd.f32 %v5063_v19, %v5033_v12  ;;  %v5133_v46 = vadd.f32 %v5132_v21, %v5102_v3 }
 0x2ea   : > { %v4069_v26 = vadd.f32 %v4068_v42, %v4038_v15  ;;  %v4138_v28 = vadd.f32 %v4137_v55, %v4107_v23 }
 0x2eb   : > { %v5065_v25 = vadd.f32 %v5064_v32, %v5034_v27  ;;  %v5134_v30 = vadd.f32 %v5133_v46, %v5103_v24 }
 0x2ec   : > { %v4070_v31 = vrot.slane %v4069_v26, 4  ;;  %v4139_v44 = vadd.f32 %v4138_v28, %v4108_v11 }
 0x2ed   : > { %v5066_v33 = vrot.slane %v5065_v25, 4  ;;  %v5135_v34 = vadd.f32 %v5134_v30, %v5104_v29 }
 0x2ee   : > { %v4071_v35 = vadd.f32 %v4070_v31, %v4069_v26  ;;  %v4140_v36 = vrot.slane %v4139_v44, 4 }
 0x2ef   : > { %v5067_v38 = vadd.f32 %v5066_v33, %v5065_v25  ;;  %v5136_v37 = vrot.slane %v5135_v34, 4 }
 0x2f0   : > { %v4072_v13 = vrot.slane %v4071_v35, 2  ;;  %v4141_v39 = vadd.f32 %v4140_v36, %v4139_v44 }
 0x2f1   : > { %v5068_v7 = vrot.slane %v5067_v38, 2  ;;  %v5137_v40 = vadd.f32 %v5136_v37, %v5135_v34 }
 0x2f2   : > { %v4073_v41 = vadd.f32 %v4072_v13, %v4071_v35  ;;  %v4142_v43 = vrot.slane %v4141_v39, 2 }
 0x2f3   : > { %v5069_v45 = vadd.f32 %v5068_v7, %v5067_v38  ;;  %v5138_v47 = vrot.slane %v5137_v40, 2 }
 0x2f4   : > { %v4074_v48 = vrot.slane %v4073_v41, 1  ;;  %v4143_v49 = vadd.f32 %v4142_v43, %v4141_v39 }
 0x2f5   : > { %v5070_v1 = vrot.slane %v5069_v45, 1  ;;  %v5139_v14 = vadd.f32 %v5138_v47, %v5137_v40 }
 0x2f6   : > { %v4075_v50 = vadd.f32 %v4074_v48, %v4073_v41  ;;  %v4144_v9 = vrot.slane %v4143_v49, 1 }
 0x2f7   : > { %v5140_v51 = vrot.slane %v5139_v14, 1  ;;  %v5071_v54 = vadd.f32 %v5070_v1, %v5069_v45 }
 0x2f8   : > { %v4076_v52 = vadd.f32 %v4075_v50, %v8198_v18  ;;  %v4145_v53 = vadd.f32 %v4144_v9, %v4143_v49 }
 0x2f9   : > { %v5141_v22 = vadd.f32 %v5140_v51, %v5139_v14 }
 0x2fa   : > { %v4146_v56 = vadd.f32 %v4145_v53, %v8203_v20  ;;  %v5072_v58 = vadd.f32 %v5071_v54, %v4076_v52 }
 0x2fc   : > { %v5142_v59 = vadd.f32 %v5141_v22, %v4146_v56 }
 0x2fe   : > { %v5145_v61 = vsel %vm5144_vm2, %v5072_v58, %v5142_v59 }
 0x2ff   : > { %v5146_v62 = vadd.f32 %v5145_v61, %v5143_v60 }
 0x301   : > { %5147 = vst [vmem:[%s8225_s8] sm:$0x3] %v5146_v62 }
 0x302 PF: > { %s13_s14 = sadd.s32 1, %s7327_s14   ;;  %s8314_s12 = smov %s7323_s13 }
 0x303   : > { %p10_p5 = scmp.ge.s32.totalorder %s13_s14, 4   ;;  %s8315_s13 = smov %s8317_s15 }
 0x305   :  { %12 = sbr.rel (!%p10_p5) target bundleno = 2 (0x2), region = 90 }

// kernel: resblock_up.3
= control target key start
LH: loop header
LB: loop body
LE: loop exit
PB: predicated region body
PF: predicated region fallthrough
CT: control target
= control target key end

     0   :  { %s8069_s21 = smov 0   ;;  %s8071_s22 = smov 0   ;;  %s9866_s0 = inlined_call_operand.vmem [shape: bf16[2,3,288,4], index: 0, kind: input, shape index: {}]   ;;  %s9867_s1 = inlined_call_operand.vmem [shape: bf16[16,4,128], index: 1, kind: input, shape index: {}]   ;;  %s9868_s2 = inlined_call_operand.vmem [shape: f32[1,128], index: 2, kind: input, shape index: {}]   ;;  %s9869_s3 = inlined_call_operand.vmem [shape: bf16[4,128], index: 3, kind: input, shape index: {}]   ;;  %s9870_s4 = inlined_call_operand.vmem [shape: f32[1,128], index: 4, kind: input, shape index: {}]   ;;  %s9871_s5 = inlined_call_operand.vmem [shape: f32[1,128], index: 5, kind: input, shape index: {}]   ;;  %s9872_s6 = inlined_call_operand.vmem [shape: f32[2,4,256,128], index: 6, kind: output, shape index: {}]  }
   0x1   :  { %s8073_s23 = smov 0  }
   0x2 LB: > { %s28_s24 = sadd.s32 1, %s8028_s22  ;;  %p5752_p0 = scmp.ge.s32.totalorder %s8032_s23, 1  ;;  %s8032_s23 = sphi %s8073_s23, %s16_s23   ;;  %s8028_s22 = sphi %s8071_s22, %s9945_s22   ;;  %s8024_s21 = sphi %s8069_s21, %s9944_s21  }
   0x3   : > { %p30_p1 = scmp.ge.s32.totalorder %s28_s24, 2  ;;  %p226_p2 = scmp.lt.s32.totalorder %s8032_s23, 3 }
   0x5   : > { %s9947_s24 = smov (%p30_p1, %s28_s24), 0  ;;  %p227_p3 = pnand %p5752_p0, %p226_p2 }
   0x7   : > { %230 = sbr.rel (%p227_p3) target bundleno = 804 (0x324), region = 44 }
   0xe   : > { %v600_v0 = vld [vmem:[%s9869_s3] sm:$0x3]  ;;  %vm730_vm0 = vcmask 1041408   ;;  %p260_p4 = scmp.lt.s32.totalorder %s8024_s21, 1  ;;  %v6048_v2 = vld [vmem:[%s9867_s1 + $0x2] sm:$0x3] }
   0xf   : > { %7805 = vmatprep.subr.msk.bf16.mxu0 %vm730_vm0, %v600_v0  ;;  %7806 = vmatprep.subr.msk.bf16.mxu1 %vm730_vm0, %v600_v0  ;;  %v732_v1 = vsel %vm730_vm0, %v600_v0, 0  ;;  %v6167_v3 = vld [vmem:[%s9867_s1 + $0xa] sm:$0x3]  ;;  %vm681_vm1 = vcmask 31744   ;;  %v897_v8 = vld [vmem:[%s9867_s1] sm:$0x3] }
  0x10   : > { %6842 = vmatpush3.bf16.msra.mxu0 %v732_v1  ;;  %7420 = vmatpush3.bf16.msra.mxu1 %v732_v1  ;;  %s9949_s21 = smov (!%p260_p4, %s8024_s21), 1  ;;  %v2352_v7 = vsel %vm730_vm0, %v6167_v3, 0  ;;  %v1029_v10 = vsel %vm730_vm0, %v6048_v2, 0  ;;  %v6166_v11 = vld [vmem:[%s9867_s1 + $0x8] sm:$0x3]  ;;  %v1321_v30 = vsel %vm730_vm0, %v897_v8, 0 }
  0x11   : > { %7807 = vmatprep.subr.msk.bf16.mxu1 %vm730_vm0, %v6048_v2  ;;  %7811 = vmatprep.subr.msk.bf16.mxu0 %vm730_vm0, %v6167_v3  ;;  %s7823_s7 = smul.u32 432, %s9949_s21  ;;  %v2516_v28 = vsel %vm730_vm0, %v6166_v11, 0  ;;  %v8220_v32 = vld [vmem:[%s9867_s1 + $0x4] sm:$0x3]  ;;  %v6216_v33 = vld [vmem:[%s9867_s1 + $0xc] sm:$0x3] }
  0x12   : > { %v2682_v62 = vsel %vm730_vm0, %v6216_v33, 0  ;;  %v1615_v0 = vsel %vm730_vm0, %v8220_v32, 0  ;;  %v6146_v1 = vld [vmem:[%s9867_s1 + $0x6] sm:$0x3]  ;;  %v6233_v2 = vld [vmem:[%s9867_s1 + $0xe] sm:$0x3] }
  0x13   : > { %s8107_s10 = scalar_lea.vmem %s9866_s0, %s7823_s7  ;;  %s6551_s30 = sshll.u32 %s9949_s21, 10 }
  0x14   : > { %v8110_v4 = vld [vmem:[%s8107_s10 + $0x98] sm:$0xff]   ;;  %v8118_v6 = vld [vmem:[%s8107_s10 + $0xa0] sm:$0xff]   ;;  %v8136_v12 = vld [vmem:[%s8107_s10 + $0xa8] sm:$0xff]   ;;  %s8964_s8 = scalar_lea.vmem %s9872_s6, %s6551_s30 }
  0x15   : > { %v8113_v5 = vld [vmem:[%s8107_s10 + $0xd8] sm:$0xff]   ;;  %6843 = vmatprep.mubr.msk.bf16.mxu0 %vm681_vm1, %v8110_v4  ;;  %v8127_v9 = vld [vmem:[%s8107_s10 + $0xe0] sm:$0xff]   ;;  %v8141_v13 = vld [vmem:[%s8107_s10 + $0xe8] sm:$0xff]  }
  0x16   : > { %6859 = vmatprep.mubr.msk.bf16.mxu1 %vm681_vm1, %v8113_v5  ;;  %6844 = vmatmul.mubr.msk.bf16.vlgmr.msra.gmra.mrb[0].mxu0 %vm681_vm1, %v8118_v6  ;;  %v8148_v14 = vld [vmem:[%s8107_s10 + $0xb0] sm:$0xff]   ;;  %v8156_v16 = vld [vmem:[%s8107_s10 + $0xb8] sm:$0xff]   ;;  %v8170_v18 = vld [vmem:[%s8107_s10 + $0xc0] sm:$0xff]  }
  0x17   : > { %6860 = vmatmul.mubr.msk.bf16.vlgmr.msra.gmra.mrb[0].mxu1 %vm681_vm1, %v8127_v9  ;;  %7012 = vmatpush3.bf16.msra.mxu0 %v2352_v7  ;;  %v8152_v15 = vld [vmem:[%s8107_s10 + $0xf0] sm:$0xff]   ;;  %v8159_v17 = vld [vmem:[%s8107_s10 + $0xf8] sm:$0xff]   ;;  %v8173_v19 = vld [vmem:[%s8107_s10 + $0x100] sm:$0xff]  }
  0x18   : > { %6876 = vmatpush3.bf16.msra.mxu1 %v1029_v10  ;;  %6847 = vmatprep.mubr.msk.bf16.mxu0 %vm681_vm1, %v8136_v12  ;;  %v8176_v20 = vld [vmem:[%s8107_s10 + $0xc8] sm:$0xff]   ;;  %v8190_v22 = vld [vmem:[%s8107_s10 + $0xd0] sm:$0xff]   ;;  %v7865_v24 = vld [vmem:[%s8107_s10 + $0x120] sm:$0xff]  }
  0x19   : > { %6863 = vmatprep.mubr.msk.bf16.mxu1 %vm681_vm1, %v8141_v13  ;;  %7808 = vmatprep.subr.msk.bf16.mxu1 %vm730_vm0, %v897_v8  ;;  %v8179_v21 = vld [vmem:[%s8107_s10 + $0x108] sm:$0xff]   ;;  %v8193_v23 = vld [vmem:[%s8107_s10 + $0x110] sm:$0xff]   ;;  %v8208_v27 = vld [vmem:[%s8107_s10 + $0x98] sm:$0xff]  }
  0x1a   : > { %7812 = vmatprep.subr.msk.bf16.mxu0 %vm730_vm0, %v6166_v11  ;;  %v8197_v25 = vld [vmem:[%s8107_s10 + $0x90] sm:$0xff]   ;;  %v7867_v26 = vld [vmem:[%s8107_s10 + $0x128] sm:$0xff]   ;;  %v8212_v29 = vld [vmem:[%s8107_s10 + $0xa0] sm:$0xff]  }
  0x1b   : > { %v7869_v31 = vld [vmem:[%s8107_s10 + $0x130] sm:$0xff]   ;;  %v8231_v34 = vld [vmem:[%s8107_s10 + $0xa8] sm:$0xff]   ;;  %v7871_v35 = vld [vmem:[%s8107_s10 + $0x138] sm:$0xff]  }
  0x1c   : > { %v7873_v36 = vld [vmem:[%s8107_s10 + $0x140] sm:$0xff]   ;;  %v8239_v37 = vld [vmem:[%s8107_s10 + $0xb0] sm:$0xff]   ;;  %v8248_v38 = vld [vmem:[%s8107_s10 + $0xb8] sm:$0xff]  }
  0x1d   : > { %v7875_v39 = vld [vmem:[%s8107_s10 + $0x148] sm:$0xff]   ;;  %v7877_v40 = vld [vmem:[%s8107_s10 + $0x150] sm:$0xff]   ;;  %v8253_v41 = vld [vmem:[%s8107_s10 + $0xc0] sm:$0xff]  }
  0x1e   : > { %6848 = vmatmul.mubr.msk.bf16.gmra.mrb[4].mxu0 %vm681_vm1, %v8148_v14  ;;  %v8262_v42 = vld [vmem:[%s8107_s10 + $0xc8] sm:$0xff]   ;;  %v7879_v43 = vld [vmem:[%s8107_s10 + $0x158] sm:$0xff]   ;;  %v7881_v44 = vld [vmem:[%s8107_s10 + $0x160] sm:$0xff]  }
  0x1f   : > { %6864 = vmatmul.mubr.msk.bf16.gmra.mrb[4].mxu1 %vm681_vm1, %v8152_v15  ;;  %6851 = vmatprep.mubr.msk.bf16.mxu0 %vm681_vm1, %v8156_v16  ;;  %v8267_v45 = vld [vmem:[%s8107_s10 + $0xd0] sm:$0xff]   ;;  %v7883_v46 = vld [vmem:[%s8107_s10 + $0x168] sm:$0xff]   ;;  %v8277_v47 = vld [vmem:[%s8107_s10 + $0xd8] sm:$0xff]  }
  0x20   : > { %6867 = vmatprep.mubr.msk.bf16.mxu1 %vm681_vm1, %v8159_v17  ;;  %v7885_v48 = vld [vmem:[%s8107_s10 + $0x170] sm:$0xff]   ;;  %v8281_v49 = vld [vmem:[%s8107_s10 + $0xe0] sm:$0xff]   ;;  %v8290_v50 = vld [vmem:[%s8107_s10 + $0xe8] sm:$0xff]  }
  0x21   : > { %v7887_v51 = vld [vmem:[%s8107_s10 + $0x178] sm:$0xff]   ;;  %v7889_v52 = vld [vmem:[%s8107_s10 + $0x180] sm:$0xff]   ;;  %v7888_v53 = vld [vmem:[%s8107_s10 + $0xf0] sm:$0xff]  }
  0x22   : > { %v7891_v54 = vld [vmem:[%s8107_s10 + $0x188] sm:$0xff]   ;;  %v7890_v55 = vld [vmem:[%s8107_s10 + $0xf8] sm:$0xff]   ;;  %v7893_v56 = vld [vmem:[%s8107_s10 + $0x190] sm:$0xff]  }
  0x23   : > { %v7892_v57 = vld [vmem:[%s8107_s10 + $0x100] sm:$0xff]   ;;  %v7895_v58 = vld [vmem:[%s8107_s10 + $0x198] sm:$0xff]   ;;  %v7894_v59 = vld [vmem:[%s8107_s10 + $0x108] sm:$0xff]  }
  0x24   : > { %v7896_v60 = vld [vmem:[%s8107_s10] sm:$0xff]   ;;  %v7897_v61 = vld [vmem:[%s8107_s10 + $0x8] sm:$0xff]   ;;  %v7898_v63 = vld [vmem:[%s8107_s10 + $0x10] sm:$0xff]  }
  0x25   : > { %v7899_v3 = vld [vmem:[%s8107_s10 + $0x18] sm:$0xff]   ;;  %v7900_v7 = vld [vmem:[%s8107_s10 + $0x20] sm:$0xff]   ;;  %v7901_v8 = vld [vmem:[%s8107_s10 + $0x28] sm:$0xff]  }
  0x26   : > { %6852 = vmatmul.mubr.msk.bf16.gmra.mrb[8].mxu0 %vm681_vm1, %v8170_v18  ;;  %v7902_v10 = vld [vmem:[%s8107_s10 + $0x30] sm:$0xff]   ;;  %v7903_v11 = vld [vmem:[%s8107_s10 + $0x38] sm:$0xff]  }
  0x27   : > { %6868 = vmatmul.mubr.msk.bf16.gmra.mrb[8].mxu1 %vm681_vm1, %v8173_v19  ;;  %6855 = vmatprep.mubr.msk.bf16.mxu0 %vm681_vm1, %v8176_v20 }
  0x28   : > { %6871 = vmatprep.mubr.msk.bf16.mxu1 %vm681_vm1, %v8179_v21 }
  0x2e   : > { %6856 = vmatmul.mubr.msk.bf16.gmra.mrb[12].mxu0 %vm681_vm1, %v8190_v22 }
  0x2f   : > { %6872 = vmatmul.mubr.msk.bf16.gmra.mrb[12].mxu1 %vm681_vm1, %v8193_v23  ;;  %7013 = vmatprep.mubr.msk.bf16.mxu0 %vm681_vm1, %v7865_v24  ;;  %v7904_v24 = vld [vmem:[%s8107_s10 + $0x40] sm:$0xff]  }
  0x30   : > { %6877 = vmatprep.mubr.msk.bf16.mxu1 %vm681_vm1, %v8197_v25 }
  0x36   : > { %7014 = vmatmul.mubr.msk.bf16.vlgmr.msra.gmra.mrb[16].mxu0 %vm681_vm1, %v7867_v26  ;;  %v7906_v26 = vld [vmem:[%s8107_s10 + $0x50] sm:$0xff]  }
  0x37   : > { %6878 = vmatmul.mubr.msk.bf16.vlgmr.msra.gmra.mrb[16].mxu1 %vm681_vm1, %v8208_v27  ;;  %7046 = vmatpush3.bf16.msra.mxu0 %v2516_v28  ;;  %v7908_v28 = vld [vmem:[%s8107_s10 + $0x60] sm:$0xff]  }
  0x38   : > { %6910 = vmatpush3.bf16.msra.mxu1 %v1321_v30  ;;  %6881 = vmatprep.mubr.msk.bf16.mxu1 %vm681_vm1, %v8212_v29  ;;  %v7910_v30 = vld [vmem:[%s8107_s10 + $0x70] sm:$0xff]  }
  0x39   : > { %7017 = vmatprep.mubr.msk.bf16.mxu0 %vm681_vm1, %v7869_v31  ;;  %7809 = vmatprep.subr.msk.bf16.mxu1 %vm730_vm0, %v8220_v32  ;;  %v7911_v31 = vld [vmem:[%s8107_s10 + $0x78] sm:$0xff]   ;;  %v8382_v32 = vld [vmem:[%s8107_s10 + $0x8] sm:$0xff]  }
  0x3a   : > { %7813 = vmatprep.subr.msk.bf16.mxu0 %vm730_vm0, %v6216_v33  ;;  %v8391_v33 = vld [vmem:[%s8107_s10 + $0x10] sm:$0xff]  }
  0x3e   : > { %7018 = vmatmul.mubr.msk.bf16.gmra.mrb[20].mxu0 %vm681_vm1, %v7871_v35  ;;  %v8395_v35 = vld [vmem:[%s8107_s10 + $0x18] sm:$0xff]  }
  0x3f   : > { %6882 = vmatmul.mubr.msk.bf16.gmra.mrb[20].mxu1 %vm681_vm1, %v8231_v34  ;;  %7021 = vmatprep.mubr.msk.bf16.mxu0 %vm681_vm1, %v7873_v36  ;;  %v1813_v36 = vsel %vm730_vm0, %v6146_v1, 0 }
  0x40   : > { %6885 = vmatprep.mubr.msk.bf16.mxu1 %vm681_vm1, %v8239_v37 }
  0x46   : > { %7022 = vmatmul.mubr.msk.bf16.gmra.mrb[24].mxu0 %vm681_vm1, %v7875_v39  ;;  %v8438_v39 = vld [vmem:[%s8107_s10 + $0x38] sm:$0xff]  }
  0x47   : > { %6886 = vmatmul.mubr.msk.bf16.gmra.mrb[24].mxu1 %vm681_vm1, %v8248_v38  ;;  %7025 = vmatprep.mubr.msk.bf16.mxu0 %vm681_vm1, %v7877_v40  ;;  %v8466_v40 = vld [vmem:[%s8107_s10 + $0x58] sm:$0xff]  }
  0x48   : > { %6889 = vmatprep.mubr.msk.bf16.mxu1 %vm681_vm1, %v8253_v41 }
  0x4e   : > { %7026 = vmatmul.mubr.msk.bf16.gmra.mrb[28].mxu0 %vm681_vm1, %v7879_v43 }
  0x4f   : > { %6890 = vmatmul.mubr.msk.bf16.gmra.mrb[28].mxu1 %vm681_vm1, %v8262_v42  ;;  %7029 = vmatprep.mubr.msk.bf16.mxu0 %vm681_vm1, %v7881_v44  ;;  %v8515_v44 = vld [vmem:[%s8107_s10 + $0x80] sm:$0xff]  }
  0x50   : > { %6893 = vmatprep.mubr.msk.bf16.mxu1 %vm681_vm1, %v8267_v45 }
  0x56   : > { %7030 = vmatmul.mubr.msk.bf16.gmra.mrb[32].mxu0 %vm681_vm1, %v7883_v46 }
  0x57   : > { %6894 = vmatmul.mubr.msk.bf16.gmra.mrb[32].mxu1 %vm681_vm1, %v8277_v47  ;;  %7033 = vmatprep.mubr.msk.bf16.mxu0 %vm681_vm1, %v7885_v48  ;;  %v8533_v48 = vld [vmem:[%s8107_s10 + $0x98] sm:$0xff]  }
  0x58   : > { %6897 = vmatprep.mubr.msk.bf16.mxu1 %vm681_vm1, %v8281_v49 }
  0x5e   : > { %7034 = vmatmul.mubr.msk.bf16.gmra.mrb[36].mxu0 %vm681_vm1, %v7887_v51 }
  0x5f   : > { %6898 = vmatmul.mubr.msk.bf16.gmra.mrb[36].mxu1 %vm681_vm1, %v8290_v50  ;;  %7037 = vmatprep.mubr.msk.bf16.mxu0 %vm681_vm1, %v7889_v52 }
  0x60   : > { %6901 = vmatprep.mubr.msk.bf16.mxu1 %vm681_vm1, %v7888_v53 }
  0x66   : > { %7038 = vmatmul.mubr.msk.bf16.gmra.mrb[40].mxu0 %vm681_vm1, %v7891_v54 }
  0x67   : > { %6902 = vmatmul.mubr.msk.bf16.gmra.mrb[40].mxu1 %vm681_vm1, %v7890_v55  ;;  %7041 = vmatprep.mubr.msk.bf16.mxu0 %vm681_vm1, %v7893_v56 }
  0x68   : > { %6905 = vmatprep.mubr.msk.bf16.mxu1 %vm681_vm1, %v7892_v57 }
  0x6e   : > { %7042 = vmatmul.mubr.msk.bf16.gmra.mrb[44].mxu0 %vm681_vm1, %v7895_v58 }
  0x6f   : > { %6906 = vmatmul.mubr.msk.bf16.gmra.mrb[44].mxu1 %vm681_vm1, %v7894_v59  ;;  %7047 = vmatprep.mubr.msk.bf16.mxu0 %vm681_vm1, %v8197_v25  ;;  %v7905_v25 = vld [vmem:[%s8107_s10 + $0x48] sm:$0xff]  }
  0x70   : > { %6911 = vmatprep.mubr.msk.bf16.mxu1 %vm681_vm1, %v7896_v60  ;;  %v8568_v60 = vld [vmem:[%s9867_s1 + $0x10] sm:$0x3] }
  0x76   : > { %7048 = vmatmul.mubr.msk.bf16.vlgmr.msra.gmra.mrb[16].mxu0 %vm681_vm1, %v8208_v27  ;;  %v7907_v27 = vld [vmem:[%s8107_s10 + $0x58] sm:$0xff]  }
  0x77   : > { %6912 = vmatmul.mubr.msk.bf16.vlgmr.msra.gmra.mrb[16].mxu1 %vm681_vm1, %v7897_v61  ;;  %7080 = vmatpush3.bf16.msra.mxu0 %v2682_v62  ;;  %v8571_v61 = vld [vmem:[%s8107_s10 + $0xa0] sm:$0xff]   ;;  %v8578_v62 = vld [vmem:[%s9867_s1 + $0x18] sm:$0x3] }
  0x78   : > { %6944 = vmatpush3.bf16.msra.mxu1 %v1615_v0  ;;  %6915 = vmatprep.mubr.msk.bf16.mxu1 %vm681_vm1, %v7898_v63  ;;  %v8581_v63 = vld [vmem:[%s8107_s10 + $0xa8] sm:$0xff]  }
  0x79   : > { %7051 = vmatprep.mubr.msk.bf16.mxu0 %vm681_vm1, %v8212_v29  ;;  %7810 = vmatprep.subr.msk.bf16.mxu1 %vm730_vm0, %v6146_v1  ;;  %v7909_v29 = vld [vmem:[%s8107_s10 + $0x68] sm:$0xff]  }
  0x7a   : > { %7814 = vmatprep.subr.msk.bf16.mxu0 %vm730_vm0, %v6233_v2 }
  0x7e   : > { %7052 = vmatmul.mubr.msk.bf16.gmra.mrb[20].mxu0 %vm681_vm1, %v8231_v34  ;;  %v3008_v34 = vsel %vm730_vm0, %v6233_v2, 0 }
  0x7f   : > { %6916 = vmatmul.mubr.msk.bf16.gmra.mrb[20].mxu1 %vm681_vm1, %v7899_v3  ;;  %7055 = vmatprep.mubr.msk.bf16.mxu0 %vm681_vm1, %v8239_v37  ;;  %v8410_v37 = vld [vmem:[%s9867_s1 + $0x1a] sm:$0x3]  ;;  %v8596_v3 = vld [vmem:[%s8107_s10 + $0x140] sm:$0xff]  }
  0x80   : > { %6919 = vmatprep.mubr.msk.bf16.mxu1 %vm681_vm1, %v7900_v7  ;;  %v4592_v56 = vsel %vm730_vm0, %v8410_v37, 0 }
  0x86   : > { %7056 = vmatmul.mubr.msk.bf16.gmra.mrb[24].mxu0 %vm681_vm1, %v8248_v38  ;;  %v8424_v38 = vld [vmem:[%s8107_s10 + $0x28] sm:$0xff]  }
  0x87   : > { %6920 = vmatmul.mubr.msk.bf16.gmra.mrb[24].mxu1 %vm681_vm1, %v7901_v8  ;;  %7059 = vmatprep.mubr.msk.bf16.mxu0 %vm681_vm1, %v8253_v41  ;;  %v8480_v41 = vld [vmem:[%s8107_s10 + $0x68] sm:$0xff]  }
  0x88   : > { %6923 = vmatprep.mubr.msk.bf16.mxu1 %vm681_vm1, %v7902_v10  ;;  %v8605_v10 = vld [vmem:[%s8107_s10 + $0x148] sm:$0xff]  }
  0x8e   : > { %7060 = vmatmul.mubr.msk.bf16.gmra.mrb[28].mxu0 %vm681_vm1, %v8262_v42 }
  0x8f   : > { %6924 = vmatmul.mubr.msk.bf16.gmra.mrb[28].mxu1 %vm681_vm1, %v7903_v11  ;;  %7063 = vmatprep.mubr.msk.bf16.mxu0 %vm681_vm1, %v8267_v45  ;;  %v8518_v45 = vld [vmem:[%s8107_s10 + $0x128] sm:$0xff]  }
  0x90   : > { %6927 = vmatprep.mubr.msk.bf16.mxu1 %vm681_vm1, %v7904_v24 }
  0x96   : > { %7064 = vmatmul.mubr.msk.bf16.gmra.mrb[32].mxu0 %vm681_vm1, %v8277_v47 }
  0x97   : > { %6928 = vmatmul.mubr.msk.bf16.gmra.mrb[32].mxu1 %vm681_vm1, %v7905_v25  ;;  %7067 = vmatprep.mubr.msk.bf16.mxu0 %vm681_vm1, %v8281_v49 }
  0x98   : > { %6931 = vmatprep.mubr.msk.bf16.mxu1 %vm681_vm1, %v7906_v26  ;;  %v8616_v26 = vld [vmem:[%s8107_s10 + $0xb0] sm:$0xff]  }
  0x9e   : > { %7068 = vmatmul.mubr.msk.bf16.gmra.mrb[36].mxu0 %vm681_vm1, %v8290_v50 }
  0x9f   : > { %6932 = vmatmul.mubr.msk.bf16.gmra.mrb[36].mxu1 %vm681_vm1, %v7907_v27  ;;  %7071 = vmatprep.mubr.msk.bf16.mxu0 %vm681_vm1, %v7888_v53  ;;  %v8623_v27 = vld [vmem:[%s8107_s10 + $0xb8] sm:$0xff]  }
  0xa0   : > { %6935 = vmatprep.mubr.msk.bf16.mxu1 %vm681_vm1, %v7908_v28 }
  0xa6   : > { %7072 = vmatmul.mubr.msk.bf16.gmra.mrb[40].mxu0 %vm681_vm1, %v7890_v55 }
  0xa7   : > { %6936 = vmatmul.mubr.msk.bf16.gmra.mrb[40].mxu1 %vm681_vm1, %v7909_v29  ;;  %7075 = vmatprep.mubr.msk.bf16.mxu0 %vm681_vm1, %v7892_v57 }
  0xa8   : > { %6939 = vmatprep.mubr.msk.bf16.mxu1 %vm681_vm1, %v7910_v30 }
  0xae   : > { %7076 = vmatmul.mubr.msk.bf16.gmra.mrb[44].mxu0 %vm681_vm1, %v7894_v59  ;;  %v8561_v59 = vld [vmem:[%s8107_s10 + $0x138] sm:$0xff]  }
  0xaf   : > { %6940 = vmatmul.mubr.msk.bf16.gmra.mrb[44].mxu1 %vm681_vm1, %v7911_v31  ;;  %7081 = vmatprep.mubr.msk.bf16.mxu0 %vm681_vm1, %v8110_v4  ;;  %v8403_v4 = vld [vmem:[%s9867_s1 + $0x12] sm:$0x3] }
  0xb0   : > { %6945 = vmatprep.mubr.msk.bf16.mxu1 %vm681_vm1, %v8382_v32  ;;  %v3408_v58 = vsel %vm730_vm0, %v8403_v4, 0  ;;  %v8634_v31 = vld [vmem:[%s8107_s10 + $0x150] sm:$0xff]  }
  0xb6   : > { %7082 = vmatmul.mubr.msk.bf16.vlgmr.msra.gmra.mrb[16].mxu0 %vm681_vm1, %v8118_v6  ;;  %v8421_v6 = vld [vmem:[%s8107_s10 + $0x20] sm:$0xff]  }
  0xb7   : > { %6946 = vmatmul.mubr.msk.bf16.vlgmr.msra.gmra.mrb[16].mxu1 %vm681_vm1, %v8391_v33  ;;  %7114 = vmatpush3.bf16.msra.mxu0 %v3008_v34 }
  0xb8   : > { %6978 = vmatpush3.bf16.msra.mxu1 %v1813_v36  ;;  %6949 = vmatprep.mubr.msk.bf16.mxu1 %vm681_vm1, %v8395_v35 }
  0xb9   : > { %7085 = vmatprep.mubr.msk.bf16.mxu0 %vm681_vm1, %v8136_v12  ;;  %7815 = vmatprep.subr.msk.bf16.mxu1 %vm730_vm0, %v8403_v4  ;;  %v8435_v12 = vld [vmem:[%s8107_s10 + $0x30] sm:$0xff]   ;;  %v8641_v4 = vld [vmem:[%s8107_s10 + $0x158] sm:$0xff]  }
  0xba   : > { %7819 = vmatprep.subr.msk.bf16.mxu0 %vm730_vm0, %v8410_v37 }
  0xbe   : > { %7086 = vmatmul.mubr.msk.bf16.gmra.mrb[20].mxu0 %vm681_vm1, %v8148_v14  ;;  %v8449_v14 = vld [vmem:[%s8107_s10 + $0x40] sm:$0xff]  }
  0xbf   : > { %6950 = vmatmul.mubr.msk.bf16.gmra.mrb[20].mxu1 %vm681_vm1, %v8421_v6  ;;  %7089 = vmatprep.mubr.msk.bf16.mxu0 %vm681_vm1, %v8156_v16  ;;  %v8452_v16 = vld [vmem:[%s8107_s10 + $0x48] sm:$0xff]  }
  0xc0   : > { %6953 = vmatprep.mubr.msk.bf16.mxu1 %vm681_vm1, %v8424_v38 }
  0xc6   : > { %7090 = vmatmul.mubr.msk.bf16.gmra.mrb[24].mxu0 %vm681_vm1, %v8170_v18  ;;  %v8463_v18 = vld [vmem:[%s8107_s10 + $0x50] sm:$0xff]  }
  0xc7   : > { %6954 = vmatmul.mubr.msk.bf16.gmra.mrb[24].mxu1 %vm681_vm1, %v8435_v12  ;;  %7093 = vmatprep.mubr.msk.bf16.mxu0 %vm681_vm1, %v8176_v20 }
  0xc8   : > { %6957 = vmatprep.mubr.msk.bf16.mxu1 %vm681_vm1, %v8438_v39 }
  0xce   : > { %7094 = vmatmul.mubr.msk.bf16.gmra.mrb[28].mxu0 %vm681_vm1, %v8190_v22 }
  0xcf   : > { %6958 = vmatmul.mubr.msk.bf16.gmra.mrb[28].mxu1 %vm681_vm1, %v8449_v14  ;;  %7097 = vmatprep.mubr.msk.bf16.mxu0 %vm681_vm1, %v8113_v5  ;;  %v8477_v5 = vld [vmem:[%s8107_s10 + $0x60] sm:$0xff]  }
  0xd0   : > { %6961 = vmatprep.mubr.msk.bf16.mxu1 %vm681_vm1, %v8452_v16 }
  0xd6   : > { %7098 = vmatmul.mubr.msk.bf16.gmra.mrb[32].mxu0 %vm681_vm1, %v8127_v9  ;;  %v8491_v9 = vld [vmem:[%s8107_s10 + $0x70] sm:$0xff]  }
  0xd7   : > { %6962 = vmatmul.mubr.msk.bf16.gmra.mrb[32].mxu1 %vm681_vm1, %v8463_v18  ;;  %7101 = vmatprep.mubr.msk.bf16.mxu0 %vm681_vm1, %v8141_v13  ;;  %v8494_v13 = vld [vmem:[%s8107_s10 + $0x78] sm:$0xff]  }
  0xd8   : > { %6965 = vmatprep.mubr.msk.bf16.mxu1 %vm681_vm1, %v8466_v40 }
  0xde   : > { %7102 = vmatmul.mubr.msk.bf16.gmra.mrb[36].mxu0 %vm681_vm1, %v8152_v15 }
  0xdf   : > { %6966 = vmatmul.mubr.msk.bf16.gmra.mrb[36].mxu1 %vm681_vm1, %v8477_v5  ;;  %7105 = vmatprep.mubr.msk.bf16.mxu0 %vm681_vm1, %v8159_v17 }
  0xe0   : > { %6969 = vmatprep.mubr.msk.bf16.mxu1 %vm681_vm1, %v8480_v41 }
  0xe6   : > { %7106 = vmatmul.mubr.msk.bf16.gmra.mrb[40].mxu0 %vm681_vm1, %v8173_v19 }
  0xe7   : > { %6970 = vmatmul.mubr.msk.bf16.gmra.mrb[40].mxu1 %vm681_vm1, %v8491_v9  ;;  %7109 = vmatprep.mubr.msk.bf16.mxu0 %vm681_vm1, %v8179_v21 }
  0xe8   : > { %6973 = vmatprep.mubr.msk.bf16.mxu1 %vm681_vm1, %v8494_v13 }
  0xe9   : > { %v8504_v15 = vpop.f32.mrb[0].mxu0 }
  0xea   : > { %v8506_v17 = vpop.f32.mrb[0].mxu1  ;;  %v8508_v42 = vpop.f32.mrb[1].mxu0 }
  0xeb   : > { %9899 = vst [vmem:[#allocation2_spill] sm:$0xff] %v8506_v17  ;;  %v8510_v43 = vpop.f32.mrb[1].mxu1  ;;  %v8512_v19 = vpop.f32.mrb[2].mxu0  ;;  %v8716_v17 = vld [vmem:[%s8107_s10 + $0x110] sm:$0xff]  }
  0xec   : > { %9900 = vst [vmem:[#allocation3_spill] sm:$0xff] %v8510_v43  ;;  %v8520_v46 = vpop.f32.mrb[2].mxu1  ;;  %v8522_v21 = vpop.f32.mrb[3].mxu0  ;;  %v7943_v43 = vld [vmem:[%s8107_s10 + $0x1a0] sm:$0xff]  }
  0xed   : > { %9901 = vst [vmem:[#allocation4_spill] sm:$0xff] %v8520_v46  ;;  %v8524_v47 = vpop.f32.mrb[3].mxu1  ;;  %v8709_v46 = vld [vmem:[%s8107_s10 + $0x108] sm:$0xff]  }
  0xee   : > { %9902 = vst [vmem:[#allocation5_spill] sm:$0xff] %v8524_v47  ;;  %7110 = vmatmul.mubr.msk.bf16.gmra.mrb[44].mxu0 %vm681_vm1, %v8193_v23  ;;  %v8544_v23 = vld [vmem:[%s8107_s10 + $0x130] sm:$0xff]   ;;  %v8703_v47 = vld [vmem:[%s8107_s10 + $0x100] sm:$0xff]  }
  0xef   : > { %6974 = vmatmul.mubr.msk.bf16.gmra.mrb[44].mxu1 %vm681_vm1, %v8515_v44  ;;  %7115 = vmatprep.mubr.msk.bf16.mxu0 %vm681_vm1, %v8518_v45 }
  0xf0   : > { %6979 = vmatprep.mubr.msk.bf16.mxu1 %vm681_vm1, %v8533_v48 }
  0xf1   : > { %v8537_v49 = vpop.f32.mrb[4].mxu0 }
  0xf2   : > { %v8539_v50 = vpop.f32.mrb[4].mxu1  ;;  %v8541_v51 = vpop.f32.mrb[5].mxu0 }
  0xf3   : > { %9903 = vst [vmem:[#allocation6_spill] sm:$0xff] %v8539_v50  ;;  %v8546_v52 = vpop.f32.mrb[5].mxu1  ;;  %v8548_v53 = vpop.f32.mrb[6].mxu0  ;;  %v7942_v50 = vld [vmem:[%s8107_s10 + $0x198] sm:$0xff]  }
  0xf4   : > { %9904 = vst [vmem:[#allocation7_spill] sm:$0xff] %v8546_v52  ;;  %v8550_v54 = vpop.f32.mrb[6].mxu1  ;;  %v8552_v55 = vpop.f32.mrb[7].mxu0  ;;  %v7941_v52 = vld [vmem:[%s8107_s10 + $0x190] sm:$0xff]  }
  0xf5   : > { %9905 = vst [vmem:[#allocation8_spill] sm:$0xff] %v8550_v54  ;;  %v8556_v57 = vpop.f32.mrb[7].mxu1  ;;  %v8695_v54 = vld [vmem:[%s8107_s10 + $0xf8] sm:$0xff]  }
  0xf6   : > { %9906 = vst [vmem:[#allocation9_spill] sm:$0xff] %v8556_v57  ;;  %7116 = vmatmul.mubr.msk.bf16.vlgmr.msra.gmra.mrb[16].mxu0 %vm681_vm1, %v8544_v23  ;;  %v8689_v57 = vld [vmem:[%s8107_s10 + $0xf0] sm:$0xff]  }
  0xf7   : > { %6980 = vmatmul.mubr.msk.bf16.vlgmr.msra.gmra.mrb[16].mxu1 %vm681_vm1, %v8571_v61  ;;  %7284 = vmatpush3.bf16.msra.mxu0 %v4592_v56 }
  0xf8   : > { %7148 = vmatpush3.bf16.msra.mxu1 %v3408_v58  ;;  %6983 = vmatprep.mubr.msk.bf16.mxu1 %vm681_vm1, %v8581_v63 }
  0xf9   : > { %v8585_v0 = vpop.f32.mrb[8].mxu0  ;;  %7119 = vmatprep.mubr.msk.bf16.mxu0 %vm681_vm1, %v8561_v59  ;;  %7816 = vmatprep.subr.msk.bf16.mxu1 %vm730_vm0, %v8568_v60 }
  0xfa   : > { %v8591_v1 = vpop.f32.mrb[8].mxu1  ;;  %v8593_v2 = vpop.f32.mrb[9].mxu0  ;;  %7820 = vmatprep.subr.msk.bf16.mxu0 %vm730_vm0, %v8578_v62 }
  0xfb   : > { %9907 = vst [vmem:[#allocation10_spill] sm:$0xff] %v8591_v1  ;;  %v8600_v7 = vpop.f32.mrb[9].mxu1  ;;  %v8602_v8 = vpop.f32.mrb[10].mxu0  ;;  %v7940_v1 = vld [vmem:[%s8107_s10 + $0x188] sm:$0xff]  }
  0xfc   : > { %9908 = vst [vmem:[#allocation11_spill] sm:$0xff] %v8600_v7  ;;  %v8607_v11 = vpop.f32.mrb[10].mxu1  ;;  %v8609_v24 = vpop.f32.mrb[11].mxu0  ;;  %v7939_v7 = vld [vmem:[%s8107_s10 + $0x180] sm:$0xff]  }
  0xfd   : > { %9909 = vst [vmem:[#allocation12_spill] sm:$0xff] %v8607_v11  ;;  %v8611_v25 = vpop.f32.mrb[11].mxu1  ;;  %v8675_v11 = vld [vmem:[%s8107_s10 + $0xe0] sm:$0xff]  }
  0xfe   : > { %9910 = vst [vmem:[#allocation13_spill] sm:$0xff] %v8611_v25  ;;  %7120 = vmatmul.mubr.msk.bf16.gmra.mrb[20].mxu0 %vm681_vm1, %v8596_v3  ;;  %v7937_v25 = vld [vmem:[%s8107_s10 + $0x170] sm:$0xff]  }
  0xff   : > { %6984 = vmatmul.mubr.msk.bf16.gmra.mrb[20].mxu1 %vm681_vm1, %v8616_v26  ;;  %7123 = vmatprep.mubr.msk.bf16.mxu0 %vm681_vm1, %v8605_v10 }
 0x100   : > { %6987 = vmatprep.mubr.msk.bf16.mxu1 %vm681_vm1, %v8623_v27 }
 0x101   : > { %v8627_v28 = vpop.f32.mrb[12].mxu0 }
 0x102   : > { %v8629_v29 = vpop.f32.mrb[12].mxu1  ;;  %v8631_v30 = vpop.f32.mrb[13].mxu0 }
 0x103   : > { %9911 = vst [vmem:[#allocation14_spill] sm:$0xff] %v8629_v29  ;;  %9912 = vst [vmem:[#allocation15_spill] sm:$0xff] %v8631_v30  ;;  %v8636_v34 = vpop.f32.mrb[13].mxu1  ;;  %v8638_v36 = vpop.f32.mrb[14].mxu0  ;;  %v8652_v29 = vld [vmem:[%s8107_s10 + $0xc0] sm:$0xff]  }
 0x104   : > { %9913 = vst [vmem:[#allocation16_spill] sm:$0xff] %v8636_v34  ;;  %9914 = vst [vmem:[#allocation17_spill] sm:$0xff] %v8638_v36  ;;  %v8643_v37 = vpop.f32.mrb[14].mxu1  ;;  %v8645_v56 = vpop.f32.mrb[15].mxu0  ;;  %v8667_v34 = vld [vmem:[%s8107_s10 + $0xd8] sm:$0xff]   ;;  %v3572_v36 = vsel %vm730_vm0, %v8568_v60, 0 }
 0x105   : > { %9915 = vst [vmem:[#allocation18_spill] sm:$0xff] %v8643_v37  ;;  %9916 = vst [vmem:[#allocation19_spill] sm:$0xff] %v8645_v56  ;;  %v8647_v58 = vpop.f32.mrb[15].mxu1  ;;  %v7935_v37 = vld [vmem:[%s8107_s10 + $0x160] sm:$0xff]   ;;  %v4756_v56 = vsel %vm730_vm0, %v8578_v62, 0 }
 0x106   : > { %9917 = vst [vmem:[#allocation20_spill] sm:$0xff] %v8647_v58  ;;  %7124 = vmatmul.mubr.msk.bf16.gmra.mrb[24].mxu0 %vm681_vm1, %v8634_v31  ;;  %v7936_v58 = vld [vmem:[%s8107_s10 + $0x168] sm:$0xff]   ;;  %v6333_v30 = vld [vmem:[%s9867_s1 + $0x14] sm:$0x3]  ;;  %v8927_v62 = vld [vmem:[%s9871_s5] ss:$0 sm:$0xff] }
 0x107   : > { %6988 = vmatmul.mubr.msk.bf16.gmra.mrb[24].mxu1 %vm681_vm1, %v8652_v29  ;;  %7127 = vmatprep.mubr.msk.bf16.mxu0 %vm681_vm1, %v8641_v4  ;;  %v3866_v60 = vsel %vm730_vm0, %v6333_v30, 0 }
 0x108   : > { %6991 = vmatprep.mubr.msk.bf16.mxu1 %vm681_vm1, %v8176_v20  ;;  %v7938_v20 = vld [vmem:[%s8107_s10 + $0x178] sm:$0xff]  }
 0x10e   : > { %7128 = vmatmul.mubr.msk.bf16.gmra.mrb[28].mxu0 %vm681_vm1, %v7935_v37 }
 0x10f   : > { %6992 = vmatmul.mubr.msk.bf16.gmra.mrb[28].mxu1 %vm681_vm1, %v8190_v22  ;;  %7131 = vmatprep.mubr.msk.bf16.mxu0 %vm681_vm1, %v7936_v58  ;;  %v8681_v22 = vld [vmem:[%s8107_s10 + $0xe8] sm:$0xff]  }
 0x110   : > { %6995 = vmatprep.mubr.msk.bf16.mxu1 %vm681_vm1, %v8667_v34 }
 0x116   : > { %7132 = vmatmul.mubr.msk.bf16.gmra.mrb[32].mxu0 %vm681_vm1, %v7937_v25 }
 0x117   : > { %6996 = vmatmul.mubr.msk.bf16.gmra.mrb[32].mxu1 %vm681_vm1, %v8675_v11  ;;  %7135 = vmatprep.mubr.msk.bf16.mxu0 %vm681_vm1, %v7938_v20 }
 0x118   : > { %6999 = vmatprep.mubr.msk.bf16.mxu1 %vm681_vm1, %v8681_v22 }
 0x11e   : > { %7136 = vmatmul.mubr.msk.bf16.gmra.mrb[36].mxu0 %vm681_vm1, %v7939_v7 }
 0x11f   : > { %7000 = vmatmul.mubr.msk.bf16.gmra.mrb[36].mxu1 %vm681_vm1, %v8689_v57  ;;  %7139 = vmatprep.mubr.msk.bf16.mxu0 %vm681_vm1, %v7940_v1 }
 0x120   : > { %7003 = vmatprep.mubr.msk.bf16.mxu1 %vm681_vm1, %v8695_v54 }
 0x126   : > { %7140 = vmatmul.mubr.msk.bf16.gmra.mrb[40].mxu0 %vm681_vm1, %v7941_v52 }
 0x127   : > { %7004 = vmatmul.mubr.msk.bf16.gmra.mrb[40].mxu1 %vm681_vm1, %v8703_v47  ;;  %7143 = vmatprep.mubr.msk.bf16.mxu0 %vm681_vm1, %v7942_v50 }
 0x128   : > { %7007 = vmatprep.mubr.msk.bf16.mxu1 %vm681_vm1, %v8709_v46 }
 0x12e   : > { %7144 = vmatmul.mubr.msk.bf16.gmra.mrb[44].mxu0 %vm681_vm1, %v7943_v43 }
 0x12f   : > { %7008 = vmatmul.mubr.msk.bf16.gmra.mrb[44].mxu1 %vm681_vm1, %v8716_v17  ;;  %7285 = vmatprep.mubr.msk.bf16.mxu0 %vm681_vm1, %v8518_v45  ;;  %v6466_v45 = vld [vmem:[%s9867_s1 + $0x1c] sm:$0x3] }
 0x130   : > { %7149 = vmatprep.mubr.msk.bf16.mxu1 %vm681_vm1, %v8533_v48 }
 0x136   : > { %7286 = vmatmul.mubr.msk.bf16.vlgmr.msra.gmra.mrb[48].mxu0 %vm681_vm1, %v8544_v23  ;;  %v8006_v23 = vld [vmem:[%s8107_s10 + $0xc8] sm:$0xff]  }
 0x137   : > { %7150 = vmatmul.mubr.msk.bf16.vlgmr.msra.gmra.mrb[48].mxu1 %vm681_vm1, %v8571_v61  ;;  %7318 = vmatpush3.bf16.msra.mxu0 %v4756_v56 }
 0x138   : > { %7182 = vmatpush3.bf16.msra.mxu1 %v3572_v36  ;;  %7153 = vmatprep.mubr.msk.bf16.mxu1 %vm681_vm1, %v8581_v63 }
 0x139   : > { %7289 = vmatprep.mubr.msk.bf16.mxu0 %vm681_vm1, %v8561_v59  ;;  %7817 = vmatprep.subr.msk.bf16.mxu1 %vm730_vm0, %v6333_v30  ;;  %v8007_v59 = vld [vmem:[%s8107_s10 + $0xd0] sm:$0xff]  }
 0x13a   : > { %7821 = vmatprep.subr.msk.bf16.mxu0 %vm730_vm0, %v6466_v45  ;;  %v7960_v30 = vld [vmem:[%s8107_s10 + $0x50] sm:$0xff]  }
 0x13e   : > { %7290 = vmatmul.mubr.msk.bf16.gmra.mrb[52].mxu0 %vm681_vm1, %v8596_v3 }
 0x13f   : > { %7154 = vmatmul.mubr.msk.bf16.gmra.mrb[52].mxu1 %vm681_vm1, %v8616_v26  ;;  %7293 = vmatprep.mubr.msk.bf16.mxu0 %vm681_vm1, %v8605_v10  ;;  %v7958_v10 = vld [vmem:[%s8107_s10 + $0x48] sm:$0xff]  }
 0x140   : > { %7157 = vmatprep.mubr.msk.bf16.mxu1 %vm681_vm1, %v8623_v27 }
 0x146   : > { %7294 = vmatmul.mubr.msk.bf16.gmra.mrb[56].mxu0 %vm681_vm1, %v8634_v31  ;;  %v8937_v31 = vld [vmem:[%s8107_s10 + $0xe0] sm:$0xff]  }
 0x147   : > { %7158 = vmatmul.mubr.msk.bf16.gmra.mrb[56].mxu1 %vm681_vm1, %v8652_v29  ;;  %7297 = vmatprep.mubr.msk.bf16.mxu0 %vm681_vm1, %v8641_v4 }
 0x148   : > { %7161 = vmatprep.mubr.msk.bf16.mxu1 %vm681_vm1, %v8006_v23 }
 0x14e   : > { %7298 = vmatmul.mubr.msk.bf16.gmra.mrb[60].mxu0 %vm681_vm1, %v7935_v37 }
 0x14f   : > { %7162 = vmatmul.mubr.msk.bf16.gmra.mrb[60].mxu1 %vm681_vm1, %v8007_v59  ;;  %7301 = vmatprep.mubr.msk.bf16.mxu0 %vm681_vm1, %v7936_v58 }
 0x150   : > { %7165 = vmatprep.mubr.msk.bf16.mxu1 %vm681_vm1, %v8667_v34 }
 0x156   : > { %7302 = vmatmul.mubr.msk.bf16.gmra.mrb[64].mxu0 %vm681_vm1, %v7937_v25 }
 0x157   : > { %7166 = vmatmul.mubr.msk.bf16.gmra.mrb[64].mxu1 %vm681_vm1, %v8675_v11  ;;  %7305 = vmatprep.mubr.msk.bf16.mxu0 %vm681_vm1, %v7938_v20 }
 0x158   : > { %7169 = vmatprep.mubr.msk.bf16.mxu1 %vm681_vm1, %v8681_v22 }
 0x15e   : > { %7306 = vmatmul.mubr.msk.bf16.gmra.mrb[68].mxu0 %vm681_vm1, %v7939_v7 }
 0x15f   : > { %7170 = vmatmul.mubr.msk.bf16.gmra.mrb[68].mxu1 %vm681_vm1, %v8689_v57  ;;  %7309 = vmatprep.mubr.msk.bf16.mxu0 %vm681_vm1, %v7940_v1 }
 0x160   : > { %7173 = vmatprep.mubr.msk.bf16.mxu1 %vm681_vm1, %v8695_v54 }
 0x166   : > { %7310 = vmatmul.mubr.msk.bf16.gmra.mrb[72].mxu0 %vm681_vm1, %v7941_v52  ;;  %v4922_v52 = vsel %vm730_vm0, %v6466_v45, 0 }
 0x167   : > { %7174 = vmatmul.mubr.msk.bf16.gmra.mrb[72].mxu1 %vm681_vm1, %v8703_v47  ;;  %7313 = vmatprep.mubr.msk.bf16.mxu0 %vm681_vm1, %v7942_v50 }
 0x168   : > { %7177 = vmatprep.mubr.msk.bf16.mxu1 %vm681_vm1, %v8709_v46 }
 0x16e   : > { %7314 = vmatmul.mubr.msk.bf16.gmra.mrb[76].mxu0 %vm681_vm1, %v7943_v43  ;;  %v6366_v43 = vld [vmem:[%s9867_s1 + $0x16] sm:$0x3] }
 0x16f   : > { %7178 = vmatmul.mubr.msk.bf16.gmra.mrb[76].mxu1 %vm681_vm1, %v8716_v17  ;;  %7319 = vmatprep.mubr.msk.bf16.mxu0 %vm681_vm1, %v8533_v48  ;;  %v6483_v48 = vld [vmem:[%s9867_s1 + $0x1e] sm:$0x3] }
 0x170   : > { %7183 = vmatprep.mubr.msk.bf16.mxu1 %vm681_vm1, %v8382_v32  ;;  %v8856_v32 = vld [vmem:[%s8107_s10 + $0xa0] sm:$0xff]  }
 0x176   : > { %7320 = vmatmul.mubr.msk.bf16.vlgmr.msra.gmra.mrb[48].mxu0 %vm681_vm1, %v8571_v61  ;;  %v8922_v61 = vld [vmem:[%s8107_s10 + $0xd8] sm:$0xff]  }
 0x177   : > { %7184 = vmatmul.mubr.msk.bf16.vlgmr.msra.gmra.mrb[48].mxu1 %vm681_vm1, %v8391_v33  ;;  %7352 = vmatpush3.bf16.msra.mxu0 %v4922_v52  ;;  %v7944_v33 = vld [vmem:[%s8107_s10 + $0x10] sm:$0xff]  }
 0x178   : > { %7216 = vmatpush3.bf16.msra.mxu1 %v3866_v60  ;;  %7187 = vmatprep.mubr.msk.bf16.mxu1 %vm681_vm1, %v8395_v35  ;;  %v8867_v35 = vld [vmem:[%s8107_s10 + $0xa8] sm:$0xff]  }
 0x179   : > { %7323 = vmatprep.mubr.msk.bf16.mxu0 %vm681_vm1, %v8581_v63  ;;  %7818 = vmatprep.subr.msk.bf16.mxu1 %vm730_vm0, %v6366_v43 }
 0x17a   : > { %7822 = vmatprep.subr.msk.bf16.mxu0 %vm730_vm0, %v6483_v48 }
 0x17e   : > { %7324 = vmatmul.mubr.msk.bf16.gmra.mrb[52].mxu0 %vm681_vm1, %v8616_v26 }
 0x17f   : > { %7188 = vmatmul.mubr.msk.bf16.gmra.mrb[52].mxu1 %vm681_vm1, %v8421_v6  ;;  %7327 = vmatprep.mubr.msk.bf16.mxu0 %vm681_vm1, %v8623_v27  ;;  %v7946_v6 = vld [vmem:[%s8107_s10 + $0x18] sm:$0xff]  }
 0x180   : > { %7191 = vmatprep.mubr.msk.bf16.mxu1 %vm681_vm1, %v8424_v38  ;;  %v5248_v38 = vsel %vm730_vm0, %v6483_v48, 0 }
 0x186   : > { %7328 = vmatmul.mubr.msk.bf16.gmra.mrb[56].mxu0 %vm681_vm1, %v8652_v29 }
 0x187   : > { %7192 = vmatmul.mubr.msk.bf16.gmra.mrb[56].mxu1 %vm681_vm1, %v8435_v12  ;;  %7331 = vmatprep.mubr.msk.bf16.mxu0 %vm681_vm1, %v8006_v23  ;;  %v7948_v12 = vld [vmem:[%s8107_s10 + $0x20] sm:$0xff]  }
 0x188   : > { %7195 = vmatprep.mubr.msk.bf16.mxu1 %vm681_vm1, %v8438_v39  ;;  %v4192_v39 = vsel %vm730_vm0, %v6366_v43, 0 }
 0x18e   : > { %7332 = vmatmul.mubr.msk.bf16.gmra.mrb[60].mxu0 %vm681_vm1, %v8007_v59 }
 0x18f   : > { %7196 = vmatmul.mubr.msk.bf16.gmra.mrb[60].mxu1 %vm681_vm1, %v8449_v14  ;;  %7335 = vmatprep.mubr.msk.bf16.mxu0 %vm681_vm1, %v8667_v34  ;;  %v8874_v14 = vld [vmem:[%s8107_s10 + $0xb0] sm:$0xff]  }
 0x190   : > { %7199 = vmatprep.mubr.msk.bf16.mxu1 %vm681_vm1, %v8452_v16  ;;  %v8883_v16 = vld [vmem:[%s8107_s10 + $0xb8] sm:$0xff]  }
 0x196   : > { %7336 = vmatmul.mubr.msk.bf16.gmra.mrb[64].mxu0 %vm681_vm1, %v8675_v11 }
 0x197   : > { %7200 = vmatmul.mubr.msk.bf16.gmra.mrb[64].mxu1 %vm681_vm1, %v8463_v18  ;;  %7339 = vmatprep.mubr.msk.bf16.mxu0 %vm681_vm1, %v8681_v22  ;;  %v7950_v18 = vld [vmem:[%s8107_s10 + $0x28] sm:$0xff]  }
 0x198   : > { %7203 = vmatprep.mubr.msk.bf16.mxu1 %vm681_vm1, %v8466_v40  ;;  %v8887_v40 = vld [vmem:[%s8107_s10 + $0xc0] sm:$0xff]  }
 0x19e   : > { %7340 = vmatmul.mubr.msk.bf16.gmra.mrb[68].mxu0 %vm681_vm1, %v8689_v57 }
 0x19f   : > { %7204 = vmatmul.mubr.msk.bf16.gmra.mrb[68].mxu1 %vm681_vm1, %v8477_v5  ;;  %7343 = vmatprep.mubr.msk.bf16.mxu0 %vm681_vm1, %v8695_v54  ;;  %v7952_v5 = vld [vmem:[%s8107_s10 + $0x30] sm:$0xff]  }
 0x1a0   : > { %7207 = vmatprep.mubr.msk.bf16.mxu1 %vm681_vm1, %v8480_v41  ;;  %v8897_v41 = vld [vmem:[%s8107_s10 + $0xc8] sm:$0xff]  }
 0x1a6   : > { %7344 = vmatmul.mubr.msk.bf16.gmra.mrb[72].mxu0 %vm681_vm1, %v8703_v47 }
 0x1a7   : > { %7208 = vmatmul.mubr.msk.bf16.gmra.mrb[72].mxu1 %vm681_vm1, %v8491_v9  ;;  %7347 = vmatprep.mubr.msk.bf16.mxu0 %vm681_vm1, %v8709_v46  ;;  %v7954_v9 = vld [vmem:[%s8107_s10 + $0x38] sm:$0xff]   ;;  %v8918_v46 = vld [vmem:[%s9870_s4] ss:$0 sm:$0xff] }
 0x1a8   : > { %7211 = vmatprep.mubr.msk.bf16.mxu1 %vm681_vm1, %v8494_v13  ;;  %v8901_v13 = vld [vmem:[%s8107_s10 + $0xd0] sm:$0xff]  }
 0x1ae   : > { %7348 = vmatmul.mubr.msk.bf16.gmra.mrb[76].mxu0 %vm681_vm1, %v8716_v17  ;;  %v7956_v17 = vld [vmem:[%s8107_s10 + $0x40] sm:$0xff]  }
 0x1af   : > { %7212 = vmatmul.mubr.msk.bf16.gmra.mrb[76].mxu1 %vm681_vm1, %v8515_v44  ;;  %7353 = vmatprep.mubr.msk.bf16.mxu0 %vm681_vm1, %v8856_v32  ;;  %v8910_v44 = vld [vmem:[%s9868_s2] ss:$0 sm:$0xff] }
 0x1b0   : > { %7217 = vmatprep.mubr.msk.bf16.mxu1 %vm681_vm1, %v7944_v33 }
 0x1b6   : > { %7354 = vmatmul.mubr.msk.bf16.vlgmr.msra.gmra.mrb[48].mxu0 %vm681_vm1, %v8867_v35 }
 0x1b7   : > { %7218 = vmatmul.mubr.msk.bf16.vlgmr.msra.gmra.mrb[48].mxu1 %vm681_vm1, %v7946_v6  ;;  %7386 = vmatpush3.bf16.msra.mxu0 %v5248_v38 }
 0x1b8   : > { %7250 = vmatpush3.bf16.msra.mxu1 %v4192_v39  ;;  %7221 = vmatprep.mubr.msk.bf16.mxu1 %vm681_vm1, %v7948_v12 }
 0x1b9   : > { %7357 = vmatprep.mubr.msk.bf16.mxu0 %vm681_vm1, %v8874_v14 }
 0x1be   : > { %7358 = vmatmul.mubr.msk.bf16.gmra.mrb[52].mxu0 %vm681_vm1, %v8883_v16 }
 0x1bf   : > { %7222 = vmatmul.mubr.msk.bf16.gmra.mrb[52].mxu1 %vm681_vm1, %v7950_v18  ;;  %7361 = vmatprep.mubr.msk.bf16.mxu0 %vm681_vm1, %v8887_v40 }
 0x1c0   : > { %7225 = vmatprep.mubr.msk.bf16.mxu1 %vm681_vm1, %v7952_v5 }
 0x1c6   : > { %7362 = vmatmul.mubr.msk.bf16.gmra.mrb[56].mxu0 %vm681_vm1, %v8897_v41 }
 0x1c7   : > { %7226 = vmatmul.mubr.msk.bf16.gmra.mrb[56].mxu1 %vm681_vm1, %v7954_v9  ;;  %7365 = vmatprep.mubr.msk.bf16.mxu0 %vm681_vm1, %v8901_v13 }
 0x1c8   : > { %7229 = vmatprep.mubr.msk.bf16.mxu1 %vm681_vm1, %v7956_v17 }
 0x1c9   : > { %v7117_v47 = vpop.f32.mrb[16].mxu0 }
 0x1ca   : > { %v6981_v50 = vpop.f32.mrb[16].mxu1  ;;  %v3212_v54 = vadd.f32 %v7117_v47, %v8910_v44  ;;  %v3044_v57 = vpop.f32.mrb[17].mxu0 }
 0x1cb   : > { %v2017_v63 = vadd.f32 %v6981_v50, %v8910_v44  ;;  %v1849_v1 = vpop.f32.mrb[17].mxu1  ;;  %v3210_v3 = vadd.f32 %v8910_v44, %v3044_v57  ;;  %v7118_v7 = vpop.f32.mrb[18].mxu0 }
 0x1cc   : > { %v3244_v11 = vmul.f32 %v8918_v46, %v3212_v54  ;;  %v2015_v25 = vadd.f32 %v8910_v44, %v1849_v1  ;;  %v6982_v26 = vpop.f32.mrb[18].mxu1  ;;  %v3213_v27 = vadd.f32 %v7118_v7, %v8910_v44  ;;  %v3047_v29 = vpop.f32.mrb[19].mxu0 }
 0x1cd   : > { %v2055_v34 = vmul.f32 %v8918_v46, %v2017_v63  ;;  %v3242_v36 = vmul.f32 %v8918_v46, %v3210_v3  ;;  %v2018_v4 = vadd.f32 %v6982_v26, %v8910_v44  ;;  %v1852_v37 = vpop.f32.mrb[19].mxu1  ;;  %v3211_v56 = vadd.f32 %v8910_v44, %v3047_v29  ;;  %v8971_v63 = vld [vmem:[%s8107_s10 + $0xe8] sm:$0xff]   ;;  %v7962_v26 = vld [vmem:[%s8107_s10 + $0x58] sm:$0xff]  }
 0x1ce   : > { %v3276_v58 = vadd.f32 %v8927_v62, %v3244_v11  ;;  %v2053_v20 = vmul.f32 %v8918_v46, %v2015_v25  ;;  %v3245_v22 = vmul.f32 %v8918_v46, %v3213_v27  ;;  %v2016_v45 = vadd.f32 %v8910_v44, %v1852_v37  ;;  %7366 = vmatmul.mubr.msk.bf16.gmra.mrb[60].mxu0 %vm681_vm1, %v8922_v61  ;;  %v7964_v37 = vld [vmem:[%s8107_s10 + $0x60] sm:$0xff]  }
 0x1cf   : > { %v2093_v23 = vadd.f32 %v8927_v62, %v2055_v34  ;;  %v3274_v59 = vadd.f32 %v8927_v62, %v3242_v36  ;;  %v2056_v52 = vmul.f32 %v8918_v46, %v2018_v4  ;;  %v3243_v60 = vmul.f32 %v8918_v46, %v3211_v56  ;;  %7230 = vmatmul.mubr.msk.bf16.gmra.mrb[60].mxu1 %vm681_vm1, %v7958_v10 }
 0x1d0   : > { %v3308_v43 = vmax.f32 %v3276_v58, 0.0  ;;  %v2091_v48 = vadd.f32 %v8927_v62, %v2053_v20  ;;  %v3277_v33 = vadd.f32 %v8927_v62, %v3245_v22  ;;  %v2054_v6 = vmul.f32 %v8918_v46, %v2016_v45  ;;  %7233 = vmatprep.mubr.msk.bf16.mxu1 %vm681_vm1, %v7960_v30  ;;  %7369 = vmatprep.mubr.msk.bf16.mxu0 %vm681_vm1, %v8937_v31 }
 0x1d1   : > { %v2125_v38 = vmax.f32 %v2093_v23, 0.0  ;;  %v3306_v12 = vmax.f32 %v3274_v59, 0.0  ;;  %v2094_v39 = vadd.f32 %v8927_v62, %v2056_v52  ;;  %v3275_v18 = vadd.f32 %v8927_v62, %v3243_v60  ;;  %v7121_v5 = vpop.f32.mrb[20].mxu0  ;;  %v8988_v23 = vld [vmem:[%s8107_s10 + $0xf0] sm:$0xff]  }
 0x1d2   : > { %v3340_v9 = vadd.f32 %v8504_v15, %v3308_v43  ;;  %v2123_v17 = vmax.f32 %v2091_v48, 0.0  ;;  %v3309_v47 = vmax.f32 %v3277_v33, 0.0  ;;  %v2092_v50 = vadd.f32 %v8927_v62, %v2054_v6  ;;  %v6985_v54 = vpop.f32.mrb[20].mxu1  ;;  %v3060_v57 = vpop.f32.mrb[21].mxu0 }
 0x1d3   : > { %v2157_v1 = vadd.f32 %v8504_v15, %v2125_v38  ;;  %v3338_v3 = vadd.f32 %v3306_v12, %v8508_v42  ;;  %v2126_v7 = vmax.f32 %v2094_v39, 0.0  ;;  %v3307_v10 = vmax.f32 %v3275_v18, 0.0  ;;  %v1865_v11 = vpop.f32.mrb[21].mxu1  ;;  %v7122_v25 = vpop.f32.mrb[22].mxu0 }
 0x1d4   : > { %6269 = vst [vmem:[%s8964_s8 + $0x110] sm:$0xff] %v3340_v9  ;;  %v2155_v27 = vadd.f32 %v2123_v17, %v8508_v42  ;;  %v3341_v29 = vadd.f32 %v8512_v19, %v3309_v47  ;;  %v2124_v30 = vmax.f32 %v2092_v50, 0.0  ;;  %v2021_v34 = vadd.f32 %v6985_v54, %v8910_v44  ;;  %v6986_v36 = vpop.f32.mrb[22].mxu1  ;;  %v3063_v4 = vpop.f32.mrb[23].mxu0 }
 0x1d5   : > { %2189 = vst [vmem:[%s8964_s8 + $0x10] sm:$0xff] %v2157_v1  ;;  %6267 = vst [vmem:[%s8964_s8 + $0x100] sm:$0xff] %v3338_v3  ;;  %v2158_v56 = vadd.f32 %v8512_v19, %v2126_v7  ;;  %v3339_v58 = vadd.f32 %v3307_v10, %v8522_v21  ;;  %v3216_v20 = vadd.f32 %v7121_v5, %v8910_v44  ;;  %v1868_v45 = vpop.f32.mrb[23].mxu1 }
 0x1d6   : > { %v2019_v22 = vadd.f32 %v8910_v44, %v1865_v11  ;;  %2187 = vst [vmem:[%s8964_s8] sm:$0xff] %v2155_v27  ;;  %6270 = vst [vmem:[%s8964_s8 + $0x118] sm:$0xff] %v3341_v29  ;;  %v2156_v59 = vadd.f32 %v2124_v30, %v8522_v21  ;;  %v2059_v52 = vmul.f32 %v8918_v46, %v2021_v34  ;;  %7370 = vmatmul.mubr.msk.bf16.gmra.mrb[64].mxu0 %vm681_vm1, %v8971_v63 }
 0x1d7   : > { %v3214_v60 = vadd.f32 %v8910_v44, %v3060_v57  ;;  %v2022_v43 = vadd.f32 %v6986_v36, %v8910_v44  ;;  %2190 = vst [vmem:[%s8964_s8 + $0x18] sm:$0xff] %v2158_v56  ;;  %6268 = vst [vmem:[%s8964_s8 + $0x108] sm:$0xff] %v3339_v58  ;;  %v3248_v48 = vmul.f32 %v8918_v46, %v3216_v20  ;;  %7234 = vmatmul.mubr.msk.bf16.gmra.mrb[64].mxu1 %vm681_vm1, %v7962_v26 }
 0x1d8   : > { %v2057_v33 = vmul.f32 %v8918_v46, %v2019_v22  ;;  %v3217_v6 = vadd.f32 %v7122_v25, %v8910_v44  ;;  %v2020_v38 = vadd.f32 %v8910_v44, %v1868_v45  ;;  %2188 = vst [vmem:[%s8964_s8 + $0x8] sm:$0xff] %v2156_v59  ;;  %v2097_v12 = vadd.f32 %v8927_v62, %v2059_v52  ;;  %v9021_v25 = vld [vmem:[%s8107_s10 + $0xf8] sm:$0xff]   ;;  %v7968_v59 = vld [vmem:[%s8107_s10 + $0x70] sm:$0xff]  }
 0x1d9   : > { %v3246_v39 = vmul.f32 %v8918_v46, %v3214_v60  ;;  %v2060_v18 = vmul.f32 %v8918_v46, %v2022_v43  ;;  %v3215_v5 = vadd.f32 %v8910_v44, %v3063_v4  ;;  %7237 = vmatprep.mubr.msk.bf16.mxu1 %vm681_vm1, %v7964_v37  ;;  %v3280_v9 = vadd.f32 %v8927_v62, %v3248_v48  ;;  %v7125_v54 = vpop.f32.mrb[24].mxu0  ;;  %v7966_v4 = vld [vmem:[%s8107_s10 + $0x68] sm:$0xff]  }
 0x1da   : > { %v2095_v17 = vadd.f32 %v8927_v62, %v2057_v33  ;;  %v3249_v47 = vmul.f32 %v8918_v46, %v3217_v6  ;;  %v2058_v50 = vmul.f32 %v8918_v46, %v2020_v38  ;;  %7373 = vmatprep.mubr.msk.bf16.mxu0 %vm681_vm1, %v8988_v23  ;;  %v2129_v57 = vmax.f32 %v2097_v12, 0.0  ;;  %v6989_v10 = vpop.f32.mrb[24].mxu1  ;;  %v3076_v11 = vpop.f32.mrb[25].mxu0  ;;  %v9032_v6 = vld [vmem:[%s8107_s10 + $0x100] sm:$0xff]  }
 0x1db   : > { %v3278_v1 = vadd.f32 %v8927_v62, %v3246_v39  ;;  %v2098_v3 = vadd.f32 %v8927_v62, %v2060_v18  ;;  %v3247_v7 = vmul.f32 %v8918_v46, %v3215_v5  ;;  %v3312_v26 = vmax.f32 %v3280_v9, 0.0  ;;  %v1881_v34 = vpop.f32.mrb[25].mxu1  ;;  %v7126_v36 = vpop.f32.mrb[26].mxu0 }
 0x1dc   : > { %v2127_v27 = vmax.f32 %v2095_v17, 0.0  ;;  %v3281_v29 = vadd.f32 %v8927_v62, %v3249_v47  ;;  %v2096_v30 = vadd.f32 %v8927_v62, %v2058_v50  ;;  %v2161_v37 = vadd.f32 %v8537_v49, %v2129_v57  ;;  %v6990_v22 = vpop.f32.mrb[26].mxu1  ;;  %v3079_v45 = vpop.f32.mrb[27].mxu0 }
 0x1dd   : > { %v3310_v56 = vmax.f32 %v3278_v1, 0.0  ;;  %v2130_v58 = vmax.f32 %v2098_v3, 0.0  ;;  %v3279_v20 = vadd.f32 %v8927_v62, %v3247_v7  ;;  %v3344_v52 = vadd.f32 %v8537_v49, %v3312_v26  ;;  %v1884_v33 = vpop.f32.mrb[27].mxu1 }
 0x1de   : > { %v2159_v60 = vadd.f32 %v2127_v27, %v8541_v51  ;;  %v3313_v43 = vmax.f32 %v3281_v29, 0.0  ;;  %v2128_v48 = vmax.f32 %v2096_v30, 0.0  ;;  %2193 = vst [vmem:[%s8964_s8 + $0x30] sm:$0xff] %v2161_v37  ;;  %v2025_v18 = vadd.f32 %v6989_v10, %v8910_v44  ;;  %7374 = vmatmul.mubr.msk.bf16.gmra.mrb[68].mxu0 %vm681_vm1, %v9021_v25 }
 0x1df   : > { %v3342_v38 = vadd.f32 %v3310_v56, %v8541_v51  ;;  %v2162_v12 = vadd.f32 %v8548_v53, %v2130_v58  ;;  %v3311_v39 = vmax.f32 %v3279_v20, 0.0  ;;  %6273 = vst [vmem:[%s8964_s8 + $0x130] sm:$0xff] %v3344_v52  ;;  %v3220_v17 = vadd.f32 %v7125_v54, %v8910_v44  ;;  %7238 = vmatmul.mubr.msk.bf16.gmra.mrb[68].mxu1 %vm681_vm1, %v7966_v4 }
 0x1e0   : > { %2191 = vst [vmem:[%s8964_s8 + $0x20] sm:$0xff] %v2159_v60  ;;  %v3345_v5 = vadd.f32 %v8548_v53, %v3313_v43  ;;  %v2160_v9 = vadd.f32 %v2128_v48, %v8552_v55  ;;  %v2023_v47 = vadd.f32 %v8910_v44, %v1881_v34  ;;  %v2063_v57 = vmul.f32 %v8918_v46, %v2025_v18  ;;  %v7970_v60 = vld [vmem:[%s8107_s10 + $0x78] sm:$0xff]   ;;  %v9076_v43 = vld [vmem:[%s8107_s10 + $0x110] sm:$0xff]   ;;  %v7972_v18 = vld [vmem:[%s8107_s10 + $0x80] sm:$0xff]  }
 0x1e1   : > { %6271 = vst [vmem:[%s8964_s8 + $0x120] sm:$0xff] %v3342_v38  ;;  %2194 = vst [vmem:[%s8964_s8 + $0x38] sm:$0xff] %v2162_v12  ;;  %v3343_v50 = vadd.f32 %v3311_v39, %v8552_v55  ;;  %v3218_v1 = vadd.f32 %v8910_v44, %v3076_v11  ;;  %v2026_v3 = vadd.f32 %v6990_v22, %v8910_v44  ;;  %7241 = vmatprep.mubr.msk.bf16.mxu1 %vm681_vm1, %v7968_v59  ;;  %v7129_v27 = vpop.f32.mrb[28].mxu0 }
 0x1e2   : > { %6274 = vst [vmem:[%s8964_s8 + $0x138] sm:$0xff] %v3345_v5  ;;  %2192 = vst [vmem:[%s8964_s8 + $0x28] sm:$0xff] %v2160_v9  ;;  %v3252_v54 = vmul.f32 %v8918_v46, %v3220_v17  ;;  %v2061_v7 = vmul.f32 %v8918_v46, %v2023_v47  ;;  %v3221_v10 = vadd.f32 %v7126_v36, %v8910_v44  ;;  %7377 = vmatprep.mubr.msk.bf16.mxu0 %vm681_vm1, %v9032_v6  ;;  %v6993_v4 = vpop.f32.mrb[28].mxu1  ;;  %v3092_v37 = vpop.f32.mrb[29].mxu0  ;;  %v9068_v36 = vld [vmem:[%s8107_s10 + $0x108] sm:$0xff]  }
 0x1e3   : > { %v2024_v26 = vadd.f32 %v8910_v44, %v1884_v33  ;;  %6272 = vst [vmem:[%s8964_s8 + $0x128] sm:$0xff] %v3343_v50  ;;  %v2101_v11 = vadd.f32 %v8927_v62, %v2063_v57  ;;  %v3250_v29 = vmul.f32 %v8918_v46, %v3218_v1  ;;  %v2064_v30 = vmul.f32 %v8918_v46, %v2026_v3  ;;  %v1897_v59 = vpop.f32.mrb[29].mxu1  ;;  %v7130_v52 = vpop.f32.mrb[30].mxu0 }
 0x1e4   : > { %v3219_v34 = vadd.f32 %v8910_v44, %v3079_v45  ;;  %v3284_v56 = vadd.f32 %v8927_v62, %v3252_v54  ;;  %v2099_v58 = vadd.f32 %v8927_v62, %v2061_v7  ;;  %v3253_v20 = vmul.f32 %v8918_v46, %v3221_v10  ;;  %v6994_v12 = vpop.f32.mrb[30].mxu1  ;;  %v3095_v39 = vpop.f32.mrb[31].mxu0 }
 0x1e5   : > { %v2062_v22 = vmul.f32 %v8918_v46, %v2024_v26  ;;  %v2133_v48 = vmax.f32 %v2101_v11, 0.0  ;;  %v3282_v45 = vadd.f32 %v8927_v62, %v3250_v29  ;;  %v2102_v33 = vadd.f32 %v8927_v62, %v2064_v30  ;;  %v1900_v50 = vpop.f32.mrb[31].mxu1 }
 0x1e6   : > { %v3251_v38 = vmul.f32 %v8918_v46, %v3219_v34  ;;  %v3316_v5 = vmax.f32 %v3284_v56, 0.0  ;;  %v2131_v9 = vmax.f32 %v2099_v58, 0.0  ;;  %v3285_v17 = vadd.f32 %v8927_v62, %v3253_v20  ;;  %7378 = vmatmul.mubr.msk.bf16.gmra.mrb[72].mxu0 %vm681_vm1, %v9068_v36 }
 0x1e7   : > { %v2100_v47 = vadd.f32 %v8927_v62, %v2062_v22  ;;  %v2165_v57 = vadd.f32 %v8585_v0, %v2133_v48  ;;  %v3314_v1 = vmax.f32 %v3282_v45, 0.0  ;;  %v2134_v3 = vmax.f32 %v2102_v33, 0.0  ;;  %7242 = vmatmul.mubr.msk.bf16.gmra.mrb[72].mxu1 %vm681_vm1, %v7970_v60  ;;  %7381 = vmatprep.mubr.msk.bf16.mxu0 %vm681_vm1, %v9076_v43 }
 0x1e8   : > { %v3283_v54 = vadd.f32 %v8927_v62, %v3251_v38  ;;  %v3348_v7 = vadd.f32 %v8585_v0, %v3316_v5  ;;  %v2163_v10 = vadd.f32 %v2131_v9, %v8593_v2  ;;  %v3317_v26 = vmax.f32 %v3285_v17, 0.0  ;;  %7245 = vmatprep.mubr.msk.bf16.mxu1 %vm681_vm1, %v7972_v18 }
 0x1e9   : > { %v2132_v11 = vmax.f32 %v2100_v47, 0.0  ;;  %2197 = vst [vmem:[%s8964_s8 + $0x50] sm:$0xff] %v2165_v57  ;;  %v3346_v29 = vadd.f32 %v3314_v1, %v8593_v2  ;;  %v2166_v30 = vadd.f32 %v8602_v8, %v2134_v3  ;;  %v2029_v56 = vadd.f32 %v6993_v4, %v8910_v44  ;;  %v9104_v48 = vpop.f32.mrb[32].mxu0 }
 0x1ea   : > { %v3315_v34 = vmax.f32 %v3283_v54, 0.0  ;;  %6277 = vst [vmem:[%s8964_s8 + $0x150] sm:$0xff] %v3348_v7  ;;  %2195 = vst [vmem:[%s8964_s8 + $0x40] sm:$0xff] %v2163_v10  ;;  %v3349_v58 = vadd.f32 %v8602_v8, %v3317_v26  ;;  %v3224_v22 = vadd.f32 %v7129_v27, %v8910_v44  ;;  %v2027_v60 = vadd.f32 %v8910_v44, %v1897_v59  ;;  %v6997_v18 = vpop.f32.mrb[32].mxu1  ;;  %v9112_v5 = vpop.f32.mrb[33].mxu0  ;;  %v9115_v27 = vld [vmem:[%s8107_s10 + $0x118] sm:$0xff]  }
 0x1eb   : > { %v2164_v20 = vadd.f32 %v2132_v11, %v8609_v24  ;;  %6275 = vst [vmem:[%s8964_s8 + $0x140] sm:$0xff] %v3346_v29  ;;  %2198 = vst [vmem:[%s8964_s8 + $0x58] sm:$0xff] %v2166_v30  ;;  %v2067_v45 = vmul.f32 %v8918_v46, %v2029_v56  ;;  %v3222_v33 = vadd.f32 %v8910_v44, %v3092_v37  ;;  %v1913_v57 = vpop.f32.mrb[33].mxu1  ;;  %v9123_v1 = vpop.f32.mrb[34].mxu0  ;;  %v7974_v37 = vld [vmem:[%s8107_s10 + $0x88] sm:$0xff]  }
 0x1ec   : > { %v3347_v4 = vadd.f32 %v3315_v34, %v8609_v24  ;;  %v2030_v38 = vadd.f32 %v6994_v12, %v8910_v44  ;;  %6278 = vst [vmem:[%s8964_s8 + $0x158] sm:$0xff] %v3349_v58  ;;  %v3256_v59 = vmul.f32 %v8918_v46, %v3224_v22  ;;  %v2065_v9 = vmul.f32 %v8918_v46, %v2027_v60  ;;  %v7976_v12 = vld [vmem:[%s8107_s10 + $0x130] sm:$0xff]   ;;  %v6998_v26 = vpop.f32.mrb[34].mxu1  ;;  %v9132_v11 = vpop.f32.mrb[35].mxu0 }
 0x1ed   : > { %2196 = vst [vmem:[%s8964_s8 + $0x48] sm:$0xff] %v2164_v20  ;;  %v3225_v17 = vadd.f32 %v7130_v52, %v8910_v44  ;;  %v2028_v47 = vadd.f32 %v8910_v44, %v1900_v50  ;;  %v2105_v3 = vadd.f32 %v8927_v62, %v2067_v45  ;;  %v3254_v54 = vmul.f32 %v8918_v46, %v3222_v33  ;;  %v1916_v34 = vpop.f32.mrb[35].mxu1 }
 0x1ee   : > { %6276 = vst [vmem:[%s8964_s8 + $0x148] sm:$0xff] %v3347_v4  ;;  %v2068_v7 = vmul.f32 %v8918_v46, %v2030_v38  ;;  %v3223_v10 = vadd.f32 %v8910_v44, %v3095_v39  ;;  %v3288_v52 = vadd.f32 %v8927_v62, %v3256_v59  ;;  %v2103_v50 = vadd.f32 %v8927_v62, %v2065_v9 }
 0x1ef   : > { %v3257_v29 = vmul.f32 %v8918_v46, %v3225_v17  ;;  %v2066_v30 = vmul.f32 %v8918_v46, %v2028_v47  ;;  %v2137_v56 = vmax.f32 %v2105_v3, 0.0  ;;  %v3286_v58 = vadd.f32 %v8927_v62, %v3254_v54  ;;  %7382 = vmatmul.mubr.msk.bf16.gmra.mrb[76].mxu0 %vm681_vm1, %v9115_v27  ;;  %7246 = vmatmul.mubr.msk.bf16.gmra.mrb[76].mxu1 %vm681_vm1, %v7974_v37  ;;  %v9918_v47 = vld [vmem:[#allocation15_spill] sm:$0xff] }
 0x1f0   : > { %v2106_v20 = vadd.f32 %v8927_v62, %v2068_v7  ;;  %v3255_v22 = vmul.f32 %v8918_v46, %v3223_v10  ;;  %v3320_v39 = vmax.f32 %v3288_v52, 0.0  ;;  %v2135_v60 = vmax.f32 %v2103_v50, 0.0  ;;  %7387 = vmatprep.mubr.msk.bf16.mxu0 %vm681_vm1, %v7976_v12  ;;  %7251 = vmatprep.mubr.msk.bf16.mxu1 %vm681_vm1, %v8856_v32  ;;  %v9919_v10 = vld [vmem:[#allocation17_spill] sm:$0xff] }
 0x1f1   : > { %v3289_v4 = vadd.f32 %v8927_v62, %v3257_v29  ;;  %v2104_v45 = vadd.f32 %v8927_v62, %v2066_v30  ;;  %v2169_v33 = vadd.f32 %v8627_v28, %v2137_v56  ;;  %v3318_v38 = vmax.f32 %v3286_v58, 0.0  ;;  %v9153_v7 = vpop.f32.mrb[36].mxu0  ;;  %v7977_v56 = vld [vmem:[%s8107_s10 + $0x138] sm:$0xff]  }
 0x1f2   : > { %v2138_v59 = vmax.f32 %v2106_v20, 0.0  ;;  %v3287_v9 = vadd.f32 %v8927_v62, %v3255_v22  ;;  %v3352_v17 = vadd.f32 %v8627_v28, %v3320_v39  ;;  %v2167_v3 = vadd.f32 %v2135_v60, %v9918_v47  ;;  %v9159_v30 = vpop.f32.mrb[36].mxu1  ;;  %v9161_v32 = vpop.f32.mrb[37].mxu0  ;;  %v9920_v20 = vld [vmem:[#allocation19_spill] sm:$0xff] }
 0x1f3   : > { %v3321_v54 = vmax.f32 %v3289_v4, 0.0  ;;  %v2136_v37 = vmax.f32 %v2104_v45, 0.0  ;;  %2201 = vst [vmem:[%s8964_s8 + $0x70] sm:$0xff] %v2169_v33  ;;  %v3350_v12 = vadd.f32 %v3318_v38, %v9918_v47  ;;  %v2033_v29 = vadd.f32 %v6997_v18, %v8910_v44  ;;  %v9171_v18 = vpop.f32.mrb[37].mxu1  ;;  %v9173_v4 = vpop.f32.mrb[38].mxu0 }
 0x1f4   : > { %v2170_v52 = vadd.f32 %v9919_v10, %v2138_v59  ;;  %v3319_v50 = vmax.f32 %v3287_v9, 0.0  ;;  %6281 = vst [vmem:[%s8964_s8 + $0x170] sm:$0xff] %v3352_v17  ;;  %2199 = vst [vmem:[%s8964_s8 + $0x60] sm:$0xff] %v2167_v3  ;;  %v3228_v39 = vadd.f32 %v9104_v48, %v8910_v44  ;;  %v2031_v60 = vadd.f32 %v8910_v44, %v1913_v57  ;;  %v9182_v9 = vpop.f32.mrb[38].mxu1  ;;  %v9184_v48 = vpop.f32.mrb[39].mxu0  ;;  %v7978_v57 = vld [vmem:[%s8107_s10 + $0x140] sm:$0xff]  }
 0x1f5   : > { %v3353_v58 = vadd.f32 %v9919_v10, %v3321_v54  ;;  %v2168_v22 = vadd.f32 %v2136_v37, %v9920_v20  ;;  %6279 = vst [vmem:[%s8964_s8 + $0x160] sm:$0xff] %v3350_v12  ;;  %v2071_v33 = vmul.f32 %v8918_v46, %v2033_v29  ;;  %v3226_v38 = vadd.f32 %v8910_v44, %v9112_v5  ;;  %v9194_v12 = vpop.f32.mrb[39].mxu1 }
 0x1f6   : > { %2202 = vst [vmem:[%s8964_s8 + $0x78] sm:$0xff] %v2170_v52  ;;  %v3351_v45 = vadd.f32 %v3319_v50, %v9920_v20  ;;  %v2034_v59 = vadd.f32 %v6998_v26, %v8910_v44  ;;  %v3260_v17 = vmul.f32 %v8918_v46, %v3228_v39  ;;  %v2069_v3 = vmul.f32 %v8918_v46, %v2031_v60 }
 0x1f7   : > { %6282 = vst [vmem:[%s8964_s8 + $0x178] sm:$0xff] %v3353_v58  ;;  %2200 = vst [vmem:[%s8964_s8 + $0x68] sm:$0xff] %v2168_v22  ;;  %v3229_v54 = vadd.f32 %v9123_v1, %v8910_v44  ;;  %v2032_v37 = vadd.f32 %v8910_v44, %v1916_v34  ;;  %v2109_v5 = vadd.f32 %v8927_v62, %v2071_v33  ;;  %7388 = vmatmul.mubr.msk.bf16.vlgmr.msra.gmra.mrb[48].mxu0 %vm681_vm1, %v7977_v56 }
 0x1f8   : > { %6280 = vst [vmem:[%s8964_s8 + $0x168] sm:$0xff] %v3351_v45  ;;  %v3258_v26 = vmul.f32 %v8918_v46, %v3226_v38  ;;  %v2072_v52 = vmul.f32 %v8918_v46, %v2034_v59  ;;  %v3227_v50 = vadd.f32 %v8910_v44, %v9132_v11  ;;  %v3292_v29 = vadd.f32 %v8927_v62, %v3260_v17  ;;  %v9921_v59 = vld [vmem:[#allocation2_spill] sm:$0xff] }
 0x1f9   : > { %v2107_v1 = vadd.f32 %v8927_v62, %v2069_v3  ;;  %v3261_v34 = vmul.f32 %v8918_v46, %v3229_v54  ;;  %v2070_v58 = vmul.f32 %v8918_v46, %v2032_v37  ;;  %7252 = vmatmul.mubr.msk.bf16.vlgmr.msra.gmra.mrb[48].mxu1 %vm681_vm1, %v8867_v35  ;;  %v2141_v22 = vmax.f32 %v2109_v5, 0.0  ;;  %7391 = vmatprep.mubr.msk.bf16.mxu0 %vm681_vm1, %v7978_v57  ;;  %v9217_v38 = vpop.f32.mrb[40].mxu0  ;;  %v7979_v57 = vld [vmem:[%s8107_s10 + $0x148] sm:$0xff]  }
 0x1fa   : > { %v3290_v39 = vadd.f32 %v8927_v62, %v3258_v26  ;;  %v2110_v60 = vadd.f32 %v8927_v62, %v2072_v52  ;;  %v3259_v11 = vmul.f32 %v8918_v46, %v3227_v50  ;;  %7255 = vmatprep.mubr.msk.bf16.mxu1 %vm681_vm1, %v8874_v14  ;;  %v3324_v56 = vmax.f32 %v3292_v29, 0.0  ;;  %v9221_v5 = vpop.f32.mrb[40].mxu1  ;;  %v9223_v14 = vpop.f32.mrb[41].mxu0  ;;  %v9922_v52 = vld [vmem:[#allocation3_spill] sm:$0xff] }
 0x1fb   : > { %v2139_v45 = vmax.f32 %v2107_v1, 0.0  ;;  %v3293_v33 = vadd.f32 %v8927_v62, %v3261_v34  ;;  %v2108_v35 = vadd.f32 %v8927_v62, %v2070_v58  ;;  %v2173_v17 = vadd.f32 %v9921_v59, %v2141_v22  ;;  %v9228_v34 = vpop.f32.mrb[41].mxu1  ;;  %v9230_v58 = vpop.f32.mrb[42].mxu0 }
 0x1fc   : > { %v3322_v3 = vmax.f32 %v3290_v39, 0.0  ;;  %v2142_v54 = vmax.f32 %v2110_v60, 0.0  ;;  %v3291_v37 = vadd.f32 %v8927_v62, %v3259_v11  ;;  %v3356_v26 = vadd.f32 %v9921_v59, %v3324_v56  ;;  %v9923_v39 = vld [vmem:[#allocation4_spill] sm:$0xff]  ;;  %v9237_v59 = vpop.f32.mrb[42].mxu1 }
 0x1fd   : > { %v2171_v50 = vadd.f32 %v2139_v45, %v9922_v52  ;;  %v3325_v29 = vmax.f32 %v3293_v33, 0.0  ;;  %v2140_v1 = vmax.f32 %v2108_v35, 0.0  ;;  %2205 = vst [vmem:[%s8964_s8 + $0x90] sm:$0xff] %v2173_v17  ;;  %v2037_v56 = vadd.f32 %v9159_v30, %v8910_v44  ;;  %v9239_v45 = vpop.f32.mrb[43].mxu0  ;;  %v9924_v35 = vld [vmem:[#allocation5_spill] sm:$0xff]  ;;  %v7980_v30 = vld [vmem:[%s8107_s10 + $0x150] sm:$0xff]  }
 0x1fe   : > { %v3354_v22 = vadd.f32 %v3322_v3, %v9922_v52  ;;  %v2174_v60 = vadd.f32 %v9923_v39, %v2142_v54  ;;  %v3323_v11 = vmax.f32 %v3291_v37, 0.0  ;;  %6285 = vst [vmem:[%s8964_s8 + $0x190] sm:$0xff] %v3356_v26  ;;  %v3232_v3 = vadd.f32 %v9153_v7, %v8910_v44  ;;  %v9249_v37 = vpop.f32.mrb[43].mxu1 }
 0x1ff   : > { %2203 = vst [vmem:[%s8964_s8 + $0x80] sm:$0xff] %v2171_v50  ;;  %v3357_v33 = vadd.f32 %v9923_v39, %v3325_v29  ;;  %v2172_v17 = vadd.f32 %v2140_v1, %v9924_v35  ;;  %v2035_v54 = vadd.f32 %v8910_v44, %v9171_v18  ;;  %v2075_v50 = vmul.f32 %v8918_v46, %v2037_v56 }
 0x200   : > { %6283 = vst [vmem:[%s8964_s8 + $0x180] sm:$0xff] %v3354_v22  ;;  %2206 = vst [vmem:[%s8964_s8 + $0x98] sm:$0xff] %v2174_v60  ;;  %v3355_v26 = vadd.f32 %v3323_v11, %v9924_v35  ;;  %v3230_v29 = vadd.f32 %v8910_v44, %v9161_v32  ;;  %v2038_v1 = vadd.f32 %v9182_v9, %v8910_v44  ;;  %7392 = vmatmul.mubr.msk.bf16.gmra.mrb[52].mxu0 %vm681_vm1, %v7979_v57  ;;  %v9926_v35 = vld [vmem:[#allocation7_spill] sm:$0xff] }
 0x201   : > { %6286 = vst [vmem:[%s8964_s8 + $0x198] sm:$0xff] %v3357_v33  ;;  %2204 = vst [vmem:[%s8964_s8 + $0x88] sm:$0xff] %v2172_v17  ;;  %v3264_v7 = vmul.f32 %v8918_v46, %v3232_v3  ;;  %v2073_v18 = vmul.f32 %v8918_v46, %v2035_v54  ;;  %v3233_v22 = vadd.f32 %v9173_v4, %v8910_v44  ;;  %7256 = vmatmul.mubr.msk.bf16.gmra.mrb[52].mxu1 %vm681_vm1, %v8883_v16  ;;  %v9283_v33 = vpop.f32.mrb[44].mxu0 }
 0x202   : > { %v2036_v60 = vadd.f32 %v8910_v44, %v9194_v12  ;;  %6284 = vst [vmem:[%s8964_s8 + $0x188] sm:$0xff] %v3355_v26  ;;  %v2113_v32 = vadd.f32 %v8927_v62, %v2075_v50  ;;  %v3262_v9 = vmul.f32 %v8918_v46, %v3230_v29  ;;  %v2076_v57 = vmul.f32 %v8918_v46, %v2038_v1  ;;  %v9291_v26 = vpop.f32.mrb[45].mxu0  ;;  %v7981_v50 = vld [vmem:[%s8107_s10 + $0x158] sm:$0xff]  }
 0x203   : > { %v3231_v11 = vadd.f32 %v8910_v44, %v9184_v48  ;;  %7259 = vmatprep.mubr.msk.bf16.mxu1 %vm681_vm1, %v8887_v40  ;;  %v3296_v4 = vadd.f32 %v8927_v62, %v3264_v7  ;;  %v2111_v12 = vadd.f32 %v8927_v62, %v2073_v18  ;;  %v3265_v16 = vmul.f32 %v8918_v46, %v3233_v22  ;;  %v9289_v40 = vpop.f32.mrb[44].mxu1  ;;  %v9298_v22 = vpop.f32.mrb[46].mxu0 }
 0x204   : > { %v2074_v56 = vmul.f32 %v8918_v46, %v2036_v60  ;;  %7395 = vmatprep.mubr.msk.bf16.mxu0 %vm681_vm1, %v7980_v30  ;;  %v2145_v17 = vmax.f32 %v2113_v32, 0.0  ;;  %v3294_v3 = vadd.f32 %v8927_v62, %v3262_v9  ;;  %v2114_v48 = vadd.f32 %v8927_v62, %v2076_v57  ;;  %v9296_v18 = vpop.f32.mrb[45].mxu1  ;;  %v9925_v60 = vld [vmem:[#allocation6_spill] sm:$0xff] }
 0x205   : > { %v3263_v54 = vmul.f32 %v8918_v46, %v3231_v11  ;;  %v3328_v29 = vmax.f32 %v3296_v4, 0.0  ;;  %v2143_v1 = vmax.f32 %v2111_v12, 0.0  ;;  %v3297_v7 = vadd.f32 %v8927_v62, %v3265_v16  ;;  %v9302_v4 = vpop.f32.mrb[46].mxu1  ;;  %v9304_v12 = vpop.f32.mrb[47].mxu0 }
 0x206   : > { %v2112_v30 = vadd.f32 %v8927_v62, %v2074_v56  ;;  %v2177_v32 = vadd.f32 %v9925_v60, %v2145_v17  ;;  %v3326_v9 = vmax.f32 %v3294_v3, 0.0  ;;  %v2146_v57 = vmax.f32 %v2114_v48, 0.0  ;;  %v9308_v20 = vpop.f32.mrb[47].mxu1  ;;  %v7982_v17 = vld [vmem:[%s8107_s10 + $0x160] sm:$0xff]   ;;  %v9927_v48 = vld [vmem:[#allocation8_spill] sm:$0xff] }
 0x207   : > { %v3295_v11 = vadd.f32 %v8927_v62, %v3263_v54  ;;  %v3360_v16 = vadd.f32 %v9925_v60, %v3328_v29  ;;  %v2175_v56 = vadd.f32 %v2143_v1, %v9926_v35  ;;  %v3329_v39 = vmax.f32 %v3297_v7, 0.0  ;;  %v9928_v1 = vld [vmem:[#allocation9_spill] sm:$0xff] }
 0x208   : > { %v2144_v52 = vmax.f32 %v2112_v30, 0.0  ;;  %2209 = vst [vmem:[%s8964_s8 + $0xb0] sm:$0xff] %v2177_v32  ;;  %v3358_v3 = vadd.f32 %v3326_v9, %v9926_v35  ;;  %v2178_v54 = vadd.f32 %v9927_v48, %v2146_v57  ;;  %v2041_v47 = vadd.f32 %v9221_v5, %v8910_v44  ;;  %7396 = vmatmul.mubr.msk.bf16.gmra.mrb[56].mxu0 %vm681_vm1, %v7981_v50  ;;  %v7983_v9 = vld [vmem:[%s8107_s10 + $0x168] sm:$0xff]  }
 0x209   : > { %v3327_v10 = vmax.f32 %v3295_v11, 0.0  ;;  %6289 = vst [vmem:[%s8964_s8 + $0x1b0] sm:$0xff] %v3360_v16  ;;  %2207 = vst [vmem:[%s8964_s8 + $0xa0] sm:$0xff] %v2175_v56  ;;  %v3361_v29 = vadd.f32 %v9927_v48, %v3329_v39  ;;  %v3236_v30 = vadd.f32 %v9217_v38, %v8910_v44  ;;  %v2039_v32 = vadd.f32 %v8910_v44, %v9228_v34  ;;  %v7984_v16 = vld [vmem:[%s8107_s10 + $0x170] sm:$0xff]  }
 0x20a   : > { %v2176_v7 = vadd.f32 %v2144_v52, %v9928_v1  ;;  %7260 = vmatmul.mubr.msk.bf16.gmra.mrb[56].mxu1 %vm681_vm1, %v8897_v41  ;;  %6287 = vst [vmem:[%s8964_s8 + $0x1a0] sm:$0xff] %v3358_v3  ;;  %2210 = vst [vmem:[%s8964_s8 + $0xb8] sm:$0xff] %v2178_v54  ;;  %v2079_v50 = vmul.f32 %v8918_v46, %v2041_v47  ;;  %v3234_v52 = vadd.f32 %v8910_v44, %v9223_v14 }
 0x20b   : > { %v3359_v5 = vadd.f32 %v3327_v10, %v9928_v1  ;;  %v2042_v38 = vadd.f32 %v9237_v59, %v8910_v44  ;;  %7263 = vmatprep.mubr.msk.bf16.mxu1 %vm681_vm1, %v8901_v13  ;;  %6290 = vst [vmem:[%s8964_s8 + $0x1b8] sm:$0xff] %v3361_v29  ;;  %v3268_v41 = vmul.f32 %v8918_v46, %v3236_v30 }
 0x20c   : > { %2208 = vst [vmem:[%s8964_s8 + $0xa8] sm:$0xff] %v2176_v7  ;;  %v2077_v34 = vmul.f32 %v8918_v46, %v2039_v32  ;;  %v3237_v47 = vadd.f32 %v9230_v58, %v8910_v44  ;;  %v2040_v10 = vadd.f32 %v8910_v44, %v9249_v37  ;;  %7399 = vmatprep.mubr.msk.bf16.mxu0 %vm681_vm1, %v7982_v17  ;;  %v9929_v32 = vld [vmem:[#allocation10_spill] sm:$0xff] }
 0x20d   : > { %6288 = vst [vmem:[%s8964_s8 + $0x1a8] sm:$0xff] %v3359_v5  ;;  %v2117_v59 = vadd.f32 %v8927_v62, %v2079_v50  ;;  %v3266_v13 = vmul.f32 %v8918_v46, %v3234_v52  ;;  %v2080_v14 = vmul.f32 %v8918_v46, %v2042_v38  ;;  %v3235_v39 = vadd.f32 %v8910_v44, %v9239_v45 }
 0x20e   : > { %v3300_v57 = vadd.f32 %v8927_v62, %v3268_v41  ;;  %v2115_v58 = vadd.f32 %v8927_v62, %v2077_v34  ;;  %v3269_v11 = vmul.f32 %v8918_v46, %v3237_v47  ;;  %v2078_v37 = vmul.f32 %v8918_v46, %v2040_v10  ;;  %v9930_v34 = vld [vmem:[#allocation11_spill] sm:$0xff] }
 0x20f   : > { %v2149_v56 = vmax.f32 %v2117_v59, 0.0  ;;  %v3298_v17 = vadd.f32 %v8927_v62, %v3266_v13  ;;  %v2118_v3 = vadd.f32 %v8927_v62, %v2080_v14  ;;  %v3267_v54 = vmul.f32 %v8918_v46, %v3235_v39  ;;  %v9931_v14 = vld [vmem:[#allocation12_spill] sm:$0xff] }
 0x210   : > { %v3332_v29 = vmax.f32 %v3300_v57, 0.0  ;;  %v2147_v45 = vmax.f32 %v2115_v58, 0.0  ;;  %v3301_v7 = vadd.f32 %v8927_v62, %v3269_v11  ;;  %v2116_v30 = vadd.f32 %v8927_v62, %v2078_v37  ;;  %7400 = vmatmul.mubr.msk.bf16.gmra.mrb[60].mxu0 %vm681_vm1, %v7983_v9  ;;  %v9932_v58 = vld [vmem:[#allocation13_spill] sm:$0xff] }
 0x211   : > { %v2181_v5 = vadd.f32 %v9929_v32, %v2149_v56  ;;  %v3330_v50 = vmax.f32 %v3298_v17, 0.0  ;;  %v2150_v52 = vmax.f32 %v2118_v3, 0.0  ;;  %v3299_v38 = vadd.f32 %v8927_v62, %v3267_v54  ;;  %7403 = vmatprep.mubr.msk.bf16.mxu0 %vm681_vm1, %v7984_v16  ;;  %v7985_v3 = vld [vmem:[%s8107_s10 + $0x178] sm:$0xff]  }
 0x212   : > { %v3364_v41 = vadd.f32 %v9929_v32, %v3332_v29  ;;  %v2179_v47 = vadd.f32 %v2147_v45, %v9930_v34  ;;  %v3333_v10 = vmax.f32 %v3301_v7, 0.0  ;;  %v2148_v59 = vmax.f32 %v2116_v30, 0.0  ;;  %7264 = vmatmul.mubr.msk.bf16.gmra.mrb[60].mxu1 %vm681_vm1, %v8922_v61  ;;  %v7986_v45 = vld [vmem:[%s8107_s10 + $0x180] sm:$0xff]  }
 0x213   : > { %2213 = vst [vmem:[%s8964_s8 + $0xd0] sm:$0xff] %v2181_v5  ;;  %v3362_v13 = vadd.f32 %v3330_v50, %v9930_v34  ;;  %v2182_v39 = vadd.f32 %v9931_v14, %v2150_v52  ;;  %v3331_v9 = vmax.f32 %v3299_v38, 0.0  ;;  %v2045_v57 = vadd.f32 %v9289_v40, %v8910_v44  ;;  %7267 = vmatprep.mubr.msk.bf16.mxu1 %vm681_vm1, %v8937_v31 }
 0x214   : > { %6293 = vst [vmem:[%s8964_s8 + $0x1d0] sm:$0xff] %v3364_v41  ;;  %2211 = vst [vmem:[%s8964_s8 + $0xc0] sm:$0xff] %v2179_v47  ;;  %v3365_v61 = vadd.f32 %v9931_v14, %v3333_v10  ;;  %v2180_v11 = vadd.f32 %v2148_v59, %v9932_v58  ;;  %v3240_v37 = vadd.f32 %v9283_v33, %v8910_v44 }
 0x215   : > { %v2043_v16 = vadd.f32 %v8910_v44, %v9296_v18  ;;  %6291 = vst [vmem:[%s8964_s8 + $0x1c0] sm:$0xff] %v3362_v13  ;;  %2214 = vst [vmem:[%s8964_s8 + $0xd8] sm:$0xff] %v2182_v39  ;;  %v3363_v40 = vadd.f32 %v3331_v9, %v9932_v58  ;;  %v2083_v31 = vmul.f32 %v8918_v46, %v2045_v57  ;;  %v9933_v13 = vld [vmem:[#allocation14_spill] sm:$0xff] }
 0x216   : > { %v3238_v56 = vadd.f32 %v8910_v44, %v9291_v26  ;;  %v2046_v17 = vadd.f32 %v9302_v4, %v8910_v44  ;;  %6294 = vst [vmem:[%s8964_s8 + $0x1d8] sm:$0xff] %v3365_v61  ;;  %2212 = vst [vmem:[%s8964_s8 + $0xc8] sm:$0xff] %v2180_v11  ;;  %v3272_v33 = vmul.f32 %v8918_v46, %v3240_v37  ;;  %v9934_v11 = vld [vmem:[#allocation16_spill] sm:$0xff] }
 0x217   : > { %v2081_v54 = vmul.f32 %v8918_v46, %v2043_v16  ;;  %v3241_v18 = vadd.f32 %v9298_v22, %v8910_v44  ;;  %v2044_v29 = vadd.f32 %v8910_v44, %v9308_v20  ;;  %6292 = vst [vmem:[%s8964_s8 + $0x1c8] sm:$0xff] %v3363_v40  ;;  %v2121_v26 = vadd.f32 %v8927_v62, %v2083_v31  ;;  %v9935_v31 = vld [vmem:[#allocation18_spill] sm:$0xff] }
 0x218   : > { %v3270_v7 = vmul.f32 %v8918_v46, %v3238_v56  ;;  %v2084_v4 = vmul.f32 %v8918_v46, %v2046_v17  ;;  %v3239_v30 = vadd.f32 %v8910_v44, %v9304_v12  ;;  %v3304_v5 = vadd.f32 %v8927_v62, %v3272_v33  ;;  %7404 = vmatmul.mubr.msk.bf16.gmra.mrb[64].mxu0 %vm681_vm1, %v7985_v3  ;;  %v7987_v17 = vld [vmem:[%s8107_s10 + $0x188] sm:$0xff]   ;;  %v9936_v3 = vld [vmem:[#allocation20_spill] sm:$0xff] }
 0x219   : > { %v2119_v50 = vadd.f32 %v8927_v62, %v2081_v54  ;;  %v3273_v22 = vmul.f32 %v8918_v46, %v3241_v18  ;;  %v2082_v52 = vmul.f32 %v8918_v46, %v2044_v29  ;;  %v2153_v20 = vmax.f32 %v2121_v26, 0.0  ;;  %7407 = vmatprep.mubr.msk.bf16.mxu0 %vm681_vm1, %v7986_v45  ;;  %v7988_v54 = vld [vmem:[%s8107_s10 + $0x190] sm:$0xff]   ;;  %v7989_v29 = vld [vmem:[%s8107_s10 + $0x198] sm:$0xff]   ;;  %v7990_v45 = vld [vmem:[%s8107_s10 + $0x1a0] sm:$0xff]  }
 0x21a   : > { %v3302_v38 = vadd.f32 %v8927_v62, %v3270_v7  ;;  %v2122_v41 = vadd.f32 %v8927_v62, %v2084_v4  ;;  %v3271_v47 = vmul.f32 %v8918_v46, %v3239_v30  ;;  %v3336_v10 = vmax.f32 %v3304_v5, 0.0  ;;  %7268 = vmatmul.mubr.msk.bf16.gmra.mrb[64].mxu1 %vm681_vm1, %v8971_v63  ;;  %v7991_v26 = vld [vmem:[%s8107_s10 + $0x1a8] sm:$0xff]  }
 0x21b   : > { %v2151_v44 = vmax.f32 %v2119_v50, 0.0  ;;  %v3305_v12 = vadd.f32 %v8927_v62, %v3273_v22  ;;  %v2120_v59 = vadd.f32 %v8927_v62, %v2082_v52  ;;  %v2185_v39 = vadd.f32 %v9933_v13, %v2153_v20  ;;  %7271 = vmatprep.mubr.msk.bf16.mxu1 %vm681_vm1, %v8988_v23 }
 0x21c   : > { %v3334_v46 = vmax.f32 %v3302_v38, 0.0  ;;  %v2154_v9 = vmax.f32 %v2122_v41, 0.0  ;;  %v3303_v57 = vadd.f32 %v8927_v62, %v3271_v47  ;;  %v3368_v61 = vadd.f32 %v9933_v13, %v3336_v10 }
 0x21d   : > { %v2183_v63 = vadd.f32 %v2151_v44, %v9934_v11  ;;  %v3337_v37 = vmax.f32 %v3305_v12, 0.0  ;;  %v2152_v16 = vmax.f32 %v2120_v59, 0.0  ;;  %2217 = vst [vmem:[%s8964_s8 + $0xf0] sm:$0xff] %v2185_v39  ;;  %v9485_v39 = vld [vmem:[%s9871_s5] ss:$0 sm:$0xff] }
 0x21e   : > { %v3366_v40 = vadd.f32 %v3334_v46, %v9934_v11  ;;  %v2186_v56 = vadd.f32 %v9935_v31, %v2154_v9  ;;  %v3335_v62 = vmax.f32 %v3303_v57, 0.0  ;;  %6297 = vst [vmem:[%s8964_s8 + $0x1f0] sm:$0xff] %v3368_v61 }
 0x21f   : > { %2215 = vst [vmem:[%s8964_s8 + $0xe0] sm:$0xff] %v2183_v63  ;;  %v3369_v23 = vadd.f32 %v9935_v31, %v3337_v37  ;;  %v2184_v33 = vadd.f32 %v2152_v16, %v9936_v3 }
 0x220   : > { %6295 = vst [vmem:[%s8964_s8 + $0x1e0] sm:$0xff] %v3366_v40  ;;  %2218 = vst [vmem:[%s8964_s8 + $0xf8] sm:$0xff] %v2186_v56  ;;  %v3367_v18 = vadd.f32 %v3335_v62, %v9936_v3  ;;  %7408 = vmatmul.mubr.msk.bf16.gmra.mrb[68].mxu0 %vm681_vm1, %v7987_v17 }
 0x221   : > { %6298 = vst [vmem:[%s8964_s8 + $0x1f8] sm:$0xff] %v3369_v23  ;;  %2216 = vst [vmem:[%s8964_s8 + $0xe8] sm:$0xff] %v2184_v33  ;;  %7411 = vmatprep.mubr.msk.bf16.mxu0 %vm681_vm1, %v7988_v54 }
 0x222   : > { %6296 = vst [vmem:[%s8964_s8 + $0x1e8] sm:$0xff] %v3367_v18  ;;  %7272 = vmatmul.mubr.msk.bf16.gmra.mrb[68].mxu1 %vm681_vm1, %v9021_v25  ;;  %v9465_v25 = vld [vmem:[%s9868_s2] ss:$0 sm:$0xff] }
 0x223   : > { %7275 = vmatprep.mubr.msk.bf16.mxu1 %vm681_vm1, %v9032_v6 }
 0x228   : > { %7412 = vmatmul.mubr.msk.bf16.gmra.mrb[72].mxu0 %vm681_vm1, %v7989_v29 }
 0x229   : > { %7415 = vmatprep.mubr.msk.bf16.mxu0 %vm681_vm1, %v7990_v45 }
 0x22a   : > { %7276 = vmatmul.mubr.msk.bf16.gmra.mrb[72].mxu1 %vm681_vm1, %v9068_v36 }
 0x22b   : > { %7279 = vmatprep.mubr.msk.bf16.mxu1 %vm681_vm1, %v9076_v43 }
 0x230   : > { %7416 = vmatmul.mubr.msk.bf16.gmra.mrb[76].mxu0 %vm681_vm1, %v7991_v26 }
 0x232   : > { %7280 = vmatmul.mubr.msk.bf16.gmra.mrb[76].mxu1 %vm681_vm1, %v9115_v27  ;;  %v9473_v27 = vld [vmem:[%s9870_s4] ss:$0 sm:$0xff] }
 0x2ca   : > { %v7389_v6 = vpop.f32.mrb[48].mxu0 }
 0x2cb   : > { %v5452_v36 = vadd.f32 %v7389_v6, %v9465_v25  ;;  %v5284_v4 = vpop.f32.mrb[49].mxu0 }
 0x2cc   : > { %v7253_v7 = vpop.f32.mrb[48].mxu1  ;;  %v5450_v43 = vadd.f32 %v9465_v25, %v5284_v4  ;;  %v7390_v50 = vpop.f32.mrb[50].mxu0 }
 0x2cd   : > { %v4396_v30 = vadd.f32 %v7253_v7, %v9465_v25  ;;  %v4228_v5 = vpop.f32.mrb[49].mxu1  ;;  %v5484_v22 = vmul.f32 %v9473_v27, %v5452_v36  ;;  %v5453_v38 = vadd.f32 %v7390_v50, %v9465_v25  ;;  %v5287_v41 = vpop.f32.mrb[51].mxu0 }
 0x2ce   : > { %v4394_v52 = vadd.f32 %v9465_v25, %v4228_v5  ;;  %v7254_v20 = vpop.f32.mrb[50].mxu1  ;;  %v5482_v10 = vmul.f32 %v9473_v27, %v5450_v43  ;;  %v5451_v59 = vadd.f32 %v9465_v25, %v5287_v41 }
 0x2cf   : > { %v4428_v47 = vmul.f32 %v9473_v27, %v4396_v30  ;;  %v4397_v44 = vadd.f32 %v7254_v20, %v9465_v25  ;;  %v4231_v12 = vpop.f32.mrb[51].mxu1  ;;  %v5516_v46 = vadd.f32 %v9485_v39, %v5484_v22  ;;  %v5485_v57 = vmul.f32 %v9473_v27, %v5453_v38 }
 0x2d0   : > { %v4426_v9 = vmul.f32 %v9473_v27, %v4394_v52  ;;  %v4395_v61 = vadd.f32 %v9465_v25, %v4231_v12  ;;  %v5514_v37 = vadd.f32 %v9485_v39, %v5482_v10  ;;  %v5483_v40 = vmul.f32 %v9473_v27, %v5451_v59 }
 0x2d1   : > { %v4460_v63 = vadd.f32 %v9485_v39, %v4428_v47  ;;  %v4429_v16 = vmul.f32 %v9473_v27, %v4397_v44  ;;  %v5548_v56 = vmax.f32 %v5516_v46, 0.0  ;;  %v5517_v17 = vadd.f32 %v9485_v39, %v5485_v57 }
 0x2d2   : > { %v4458_v62 = vadd.f32 %v9485_v39, %v4426_v9  ;;  %v4427_v23 = vmul.f32 %v9473_v27, %v4395_v61  ;;  %v5546_v54 = vmax.f32 %v5514_v37, 0.0  ;;  %v5515_v29 = vadd.f32 %v9485_v39, %v5483_v40 }
 0x2d3   : > { %v4492_v33 = vmax.f32 %v4460_v63, 0.0  ;;  %v4461_v18 = vadd.f32 %v9485_v39, %v4429_v16  ;;  %v7393_v45 = vpop.f32.mrb[52].mxu0  ;;  %v5580_v26 = vadd.f32 %v8504_v15, %v5548_v56  ;;  %v5549_v7 = vmax.f32 %v5517_v17, 0.0 }
 0x2d4   : > { %v4490_v6 = vmax.f32 %v4458_v62, 0.0  ;;  %v4459_v36 = vadd.f32 %v9485_v39, %v4427_v23  ;;  %v7257_v4 = vpop.f32.mrb[52].mxu1  ;;  %v5300_v30 = vpop.f32.mrb[53].mxu0  ;;  %v5578_v43 = vadd.f32 %v5546_v54, %v8508_v42  ;;  %v5547_v22 = vmax.f32 %v5515_v29, 0.0 }
 0x2d5   : > { %v4524_v5 = vadd.f32 %v8504_v15, %v4492_v33  ;;  %v4493_v50 = vmax.f32 %v4461_v18, 0.0  ;;  %v4244_v52 = vpop.f32.mrb[53].mxu1  ;;  %v7394_v20 = vpop.f32.mrb[54].mxu0  ;;  %6519 = vst [vmem:[%s8964_s8 + $0x310] sm:$0xff] %v5580_v26  ;;  %v5581_v41 = vadd.f32 %v8512_v19, %v5549_v7  ;;  %v4400_v10 = vadd.f32 %v7257_v4, %v9465_v25 }
 0x2d6   : > { %v4522_v38 = vadd.f32 %v4490_v6, %v8508_v42  ;;  %v4491_v47 = vmax.f32 %v4459_v36, 0.0  ;;  %v7258_v44 = vpop.f32.mrb[54].mxu1  ;;  %v5303_v15 = vpop.f32.mrb[55].mxu0  ;;  %6517 = vst [vmem:[%s8964_s8 + $0x300] sm:$0xff] %v5578_v43  ;;  %v5579_v59 = vadd.f32 %v5547_v22, %v8522_v21  ;;  %v5456_v46 = vadd.f32 %v7393_v45, %v9465_v25 }
 0x2d7   : > { %6402 = vst [vmem:[%s8964_s8 + $0x210] sm:$0xff] %v4524_v5  ;;  %v4525_v12 = vadd.f32 %v8512_v19, %v4493_v50  ;;  %v4398_v42 = vadd.f32 %v9465_v25, %v4244_v52  ;;  %v4247_v9 = vpop.f32.mrb[55].mxu1  ;;  %6520 = vst [vmem:[%s8964_s8 + $0x318] sm:$0xff] %v5581_v41  ;;  %v4432_v61 = vmul.f32 %v9473_v27, %v4400_v10 }
 0x2d8   : > { %6400 = vst [vmem:[%s8964_s8 + $0x200] sm:$0xff] %v4522_v38  ;;  %v4523_v57 = vadd.f32 %v4491_v47, %v8522_v21  ;;  %v5454_v63 = vadd.f32 %v9465_v25, %v5300_v30  ;;  %v4401_v37 = vadd.f32 %v7258_v44, %v9465_v25  ;;  %6518 = vst [vmem:[%s8964_s8 + $0x308] sm:$0xff] %v5579_v59 }
 0x2d9   : > { %6403 = vst [vmem:[%s8964_s8 + $0x218] sm:$0xff] %v4525_v12  ;;  %v5488_v19 = vmul.f32 %v9473_v27, %v5456_v46  ;;  %v4430_v16 = vmul.f32 %v9473_v27, %v4398_v42  ;;  %v5457_v40 = vadd.f32 %v7394_v20, %v9465_v25  ;;  %v4399_v56 = vadd.f32 %v9465_v25, %v4247_v9 }
 0x2da   : > { %6401 = vst [vmem:[%s8964_s8 + $0x208] sm:$0xff] %v4523_v57  ;;  %v4464_v62 = vadd.f32 %v9485_v39, %v4432_v61  ;;  %v5486_v21 = vmul.f32 %v9473_v27, %v5454_v63  ;;  %v4433_v17 = vmul.f32 %v9473_v27, %v4401_v37  ;;  %v5455_v23 = vadd.f32 %v9465_v25, %v5303_v15 }
 0x2db   : > { %v5520_v33 = vadd.f32 %v9485_v39, %v5488_v19  ;;  %v4462_v54 = vadd.f32 %v9485_v39, %v4430_v16  ;;  %v5489_v18 = vmul.f32 %v9473_v27, %v5457_v40  ;;  %v4431_v29 = vmul.f32 %v9473_v27, %v4399_v56  ;;  %v7397_v45 = vpop.f32.mrb[56].mxu0 }
 0x2dc   : > { %v4496_v26 = vmax.f32 %v4464_v62, 0.0  ;;  %v5518_v6 = vadd.f32 %v9485_v39, %v5486_v21  ;;  %v4465_v7 = vadd.f32 %v9485_v39, %v4433_v17  ;;  %v5487_v36 = vmul.f32 %v9473_v27, %v5455_v23  ;;  %v5316_v30 = vpop.f32.mrb[57].mxu0 }
 0x2dd   : > { %v7261_v4 = vpop.f32.mrb[56].mxu1  ;;  %v5552_v5 = vmax.f32 %v5520_v33, 0.0  ;;  %v4494_v43 = vmax.f32 %v4462_v54, 0.0  ;;  %v5521_v50 = vadd.f32 %v9485_v39, %v5489_v18  ;;  %v4463_v22 = vadd.f32 %v9485_v39, %v4431_v29  ;;  %v7398_v20 = vpop.f32.mrb[58].mxu0 }
 0x2de   : > { %v4260_v52 = vpop.f32.mrb[57].mxu1  ;;  %v4528_v38 = vadd.f32 %v8537_v49, %v4496_v26  ;;  %v5550_v41 = vmax.f32 %v5518_v6, 0.0  ;;  %v4497_v47 = vmax.f32 %v4465_v7, 0.0  ;;  %v5519_v10 = vadd.f32 %v9485_v39, %v5487_v36  ;;  %v5319_v15 = vpop.f32.mrb[59].mxu0 }
 0x2df   : > { %v7262_v44 = vpop.f32.mrb[58].mxu1  ;;  %v5584_v12 = vadd.f32 %v8537_v49, %v5552_v5  ;;  %v4526_v59 = vadd.f32 %v4494_v43, %v8541_v51  ;;  %v5553_v46 = vmax.f32 %v5521_v50, 0.0  ;;  %v4495_v42 = vmax.f32 %v4463_v22, 0.0 }
 0x2e0   : > { %v4263_v9 = vpop.f32.mrb[59].mxu1  ;;  %6406 = vst [vmem:[%s8964_s8 + $0x230] sm:$0xff] %v4528_v38  ;;  %v5582_v57 = vadd.f32 %v5550_v41, %v8541_v51  ;;  %v4529_v61 = vadd.f32 %v8548_v53, %v4497_v47  ;;  %v5551_v63 = vmax.f32 %v5519_v10, 0.0  ;;  %v4404_v37 = vadd.f32 %v7261_v4, %v9465_v25 }
 0x2e1   : > { %6523 = vst [vmem:[%s8964_s8 + $0x330] sm:$0xff] %v5584_v12  ;;  %6404 = vst [vmem:[%s8964_s8 + $0x220] sm:$0xff] %v4526_v59  ;;  %v5585_v49 = vadd.f32 %v8548_v53, %v5553_v46  ;;  %v4527_v19 = vadd.f32 %v4495_v42, %v8552_v55  ;;  %v5460_v16 = vadd.f32 %v7397_v45, %v9465_v25 }
 0x2e2   : > { %v4402_v40 = vadd.f32 %v9465_v25, %v4260_v52  ;;  %6521 = vst [vmem:[%s8964_s8 + $0x320] sm:$0xff] %v5582_v57  ;;  %6407 = vst [vmem:[%s8964_s8 + $0x238] sm:$0xff] %v4529_v61  ;;  %v5583_v51 = vadd.f32 %v5551_v63, %v8552_v55  ;;  %v4436_v56 = vmul.f32 %v9473_v27, %v4404_v37 }
 0x2e3   : > { %v5458_v62 = vadd.f32 %v9465_v25, %v5316_v30  ;;  %v4405_v21 = vadd.f32 %v7262_v44, %v9465_v25  ;;  %6524 = vst [vmem:[%s8964_s8 + $0x338] sm:$0xff] %v5585_v49  ;;  %6405 = vst [vmem:[%s8964_s8 + $0x228] sm:$0xff] %v4527_v19  ;;  %v5492_v53 = vmul.f32 %v9473_v27, %v5460_v16  ;;  %v7401_v54 = vpop.f32.mrb[60].mxu0 }
 0x2e4   : > { %v4434_v17 = vmul.f32 %v9473_v27, %v4402_v40  ;;  %v5461_v23 = vadd.f32 %v7398_v20, %v9465_v25  ;;  %v4403_v33 = vadd.f32 %v9465_v25, %v4263_v9  ;;  %6522 = vst [vmem:[%s8964_s8 + $0x328] sm:$0xff] %v5583_v51  ;;  %v4468_v55 = vadd.f32 %v9485_v39, %v4436_v56  ;;  %v5332_v6 = vpop.f32.mrb[61].mxu0 }
 0x2e5   : > { %v5490_v18 = vmul.f32 %v9473_v27, %v5458_v62  ;;  %v4437_v29 = vmul.f32 %v9473_v27, %v4405_v21  ;;  %v5459_v45 = vadd.f32 %v9465_v25, %v5319_v15  ;;  %v7265_v26 = vpop.f32.mrb[60].mxu1  ;;  %v5524_v7 = vadd.f32 %v9485_v39, %v5492_v53  ;;  %v7402_v43 = vpop.f32.mrb[62].mxu0 }
 0x2e6   : > { %v4466_v36 = vadd.f32 %v9485_v39, %v4434_v17  ;;  %v5493_v4 = vmul.f32 %v9473_v27, %v5461_v23  ;;  %v4435_v30 = vmul.f32 %v9473_v27, %v4403_v33  ;;  %v4276_v5 = vpop.f32.mrb[61].mxu1  ;;  %v4500_v50 = vmax.f32 %v4468_v55, 0.0  ;;  %v5335_v41 = vpop.f32.mrb[63].mxu0 }
 0x2e7   : > { %v5522_v22 = vadd.f32 %v9485_v39, %v5490_v18  ;;  %v4469_v52 = vadd.f32 %v9485_v39, %v4437_v29  ;;  %v5491_v20 = vmul.f32 %v9473_v27, %v5459_v45  ;;  %v7266_v38 = vpop.f32.mrb[62].mxu1  ;;  %v5556_v47 = vmax.f32 %v5524_v7, 0.0 }
 0x2e8   : > { %v4498_v10 = vmax.f32 %v4466_v36, 0.0  ;;  %v5525_v44 = vadd.f32 %v9485_v39, %v5493_v4  ;;  %v4467_v15 = vadd.f32 %v9485_v39, %v4435_v30  ;;  %v4279_v12 = vpop.f32.mrb[63].mxu1  ;;  %v4532_v59 = vadd.f32 %v8585_v0, %v4500_v50 }
 0x2e9   : > { %v5554_v46 = vmax.f32 %v5522_v22, 0.0  ;;  %v4501_v42 = vmax.f32 %v4469_v52, 0.0  ;;  %v5523_v9 = vadd.f32 %v9485_v39, %v5491_v20  ;;  %v5588_v57 = vadd.f32 %v8585_v0, %v5556_v47 }
 0x2ea   : > { %v4530_v61 = vadd.f32 %v4498_v10, %v8593_v2  ;;  %v5557_v63 = vmax.f32 %v5525_v44, 0.0  ;;  %v4499_v37 = vmax.f32 %v4467_v15, 0.0  ;;  %6410 = vst [vmem:[%s8964_s8 + $0x250] sm:$0xff] %v4532_v59  ;;  %v4408_v40 = vadd.f32 %v7265_v26, %v9465_v25 }
 0x2eb   : > { %v5586_v49 = vadd.f32 %v5554_v46, %v8593_v2  ;;  %v4533_v19 = vadd.f32 %v8602_v8, %v4501_v42  ;;  %v5555_v16 = vmax.f32 %v5523_v9, 0.0  ;;  %6527 = vst [vmem:[%s8964_s8 + $0x350] sm:$0xff] %v5588_v57  ;;  %v5464_v56 = vadd.f32 %v7401_v54, %v9465_v25  ;;  %v7405_v21 = vpop.f32.mrb[64].mxu0 }
 0x2ec   : > { %6408 = vst [vmem:[%s8964_s8 + $0x240] sm:$0xff] %v4530_v61  ;;  %v5589_v0 = vadd.f32 %v8602_v8, %v5557_v63  ;;  %v4531_v51 = vadd.f32 %v4499_v37, %v8609_v24  ;;  %v4406_v62 = vadd.f32 %v9465_v25, %v4276_v5  ;;  %v4440_v53 = vmul.f32 %v9473_v27, %v4408_v40  ;;  %v5348_v8 = vpop.f32.mrb[65].mxu0  ;;  %v9937_v61 = vld [vmem:[#allocation15_spill] sm:$0xff]  ;;  %v9938_v40 = vld [vmem:[#allocation17_spill] sm:$0xff] }
 0x2ed   : > { %6525 = vst [vmem:[%s8964_s8 + $0x340] sm:$0xff] %v5586_v49  ;;  %6411 = vst [vmem:[%s8964_s8 + $0x258] sm:$0xff] %v4533_v19  ;;  %v5587_v2 = vadd.f32 %v5555_v16, %v8609_v24  ;;  %v5462_v17 = vadd.f32 %v9465_v25, %v5332_v6  ;;  %v4409_v23 = vadd.f32 %v7266_v38, %v9465_v25  ;;  %v7269_v33 = vpop.f32.mrb[64].mxu1  ;;  %v7406_v24 = vpop.f32.mrb[66].mxu0 }
 0x2ee   : > { %6528 = vst [vmem:[%s8964_s8 + $0x358] sm:$0xff] %v5589_v0  ;;  %6409 = vst [vmem:[%s8964_s8 + $0x248] sm:$0xff] %v4531_v51  ;;  %v5496_v54 = vmul.f32 %v9473_v27, %v5464_v56  ;;  %v4438_v55 = vmul.f32 %v9473_v27, %v4406_v62  ;;  %v5465_v18 = vadd.f32 %v7402_v43, %v9465_v25  ;;  %v4292_v45 = vpop.f32.mrb[65].mxu1  ;;  %v5351_v30 = vpop.f32.mrb[67].mxu0 }
 0x2ef   : > { %v4407_v29 = vadd.f32 %v9465_v25, %v4279_v12  ;;  %6526 = vst [vmem:[%s8964_s8 + $0x348] sm:$0xff] %v5587_v2  ;;  %v4472_v26 = vadd.f32 %v9485_v39, %v4440_v53  ;;  %v5494_v6 = vmul.f32 %v9473_v27, %v5462_v17  ;;  %v4441_v7 = vmul.f32 %v9473_v27, %v4409_v23  ;;  %v7270_v4 = vpop.f32.mrb[66].mxu1  ;;  %v9939_v53 = vld [vmem:[#allocation19_spill] sm:$0xff] }
 0x2f0   : > { %v5463_v36 = vadd.f32 %v9465_v25, %v5335_v41  ;;  %v5528_v5 = vadd.f32 %v9485_v39, %v5496_v54  ;;  %v4470_v50 = vadd.f32 %v9485_v39, %v4438_v55  ;;  %v5497_v43 = vmul.f32 %v9473_v27, %v5465_v18  ;;  %v4295_v52 = vpop.f32.mrb[67].mxu1 }
 0x2f1   : > { %v4439_v22 = vmul.f32 %v9473_v27, %v4407_v29  ;;  %v4504_v20 = vmax.f32 %v4472_v26, 0.0  ;;  %v5526_v38 = vadd.f32 %v9485_v39, %v5494_v6  ;;  %v4473_v47 = vadd.f32 %v9485_v39, %v4441_v7 }
 0x2f2   : > { %v5495_v10 = vmul.f32 %v9473_v27, %v5463_v36  ;;  %v5560_v41 = vmax.f32 %v5528_v5, 0.0  ;;  %v4502_v44 = vmax.f32 %v4470_v50, 0.0  ;;  %v5529_v15 = vadd.f32 %v9485_v39, %v5497_v43 }
 0x2f3   : > { %v4471_v12 = vadd.f32 %v9485_v39, %v4439_v22  ;;  %v4536_v59 = vadd.f32 %v8627_v28, %v4504_v20  ;;  %v5558_v46 = vmax.f32 %v5526_v38, 0.0  ;;  %v4505_v42 = vmax.f32 %v4473_v47, 0.0  ;;  %v9624_v19 = vpop.f32.mrb[68].mxu0 }
 0x2f4   : > { %v5527_v9 = vadd.f32 %v9485_v39, %v5495_v10  ;;  %v5592_v57 = vadd.f32 %v8627_v28, %v5560_v41  ;;  %v4534_v63 = vadd.f32 %v4502_v44, %v9937_v61  ;;  %v5561_v37 = vmax.f32 %v5529_v15, 0.0  ;;  %v9630_v2 = vpop.f32.mrb[69].mxu0 }
 0x2f5   : > { %v4503_v49 = vmax.f32 %v4471_v12, 0.0  ;;  %6414 = vst [vmem:[%s8964_s8 + $0x270] sm:$0xff] %v4536_v59  ;;  %v5590_v16 = vadd.f32 %v5558_v46, %v9937_v61  ;;  %v4537_v0 = vadd.f32 %v9938_v40, %v4505_v42  ;;  %v4412_v56 = vadd.f32 %v7269_v33, %v9465_v25  ;;  %v7273_v62 = vpop.f32.mrb[68].mxu1  ;;  %v9638_v18 = vpop.f32.mrb[70].mxu0 }
 0x2f6   : > { %v5559_v51 = vmax.f32 %v5527_v9, 0.0  ;;  %6531 = vst [vmem:[%s8964_s8 + $0x370] sm:$0xff] %v5592_v57  ;;  %6412 = vst [vmem:[%s8964_s8 + $0x260] sm:$0xff] %v4534_v63  ;;  %v5593_v28 = vadd.f32 %v9938_v40, %v5561_v37  ;;  %v5468_v23 = vadd.f32 %v7405_v21, %v9465_v25  ;;  %v4410_v54 = vadd.f32 %v9465_v25, %v4292_v45  ;;  %v4308_v55 = vpop.f32.mrb[69].mxu1  ;;  %v9646_v36 = vpop.f32.mrb[71].mxu0  ;;  %v9940_v9 = vld [vmem:[#allocation2_spill] sm:$0xff] }
 0x2f7   : > { %v4535_v17 = vadd.f32 %v4503_v49, %v9939_v53  ;;  %6529 = vst [vmem:[%s8964_s8 + $0x360] sm:$0xff] %v5590_v16  ;;  %6415 = vst [vmem:[%s8964_s8 + $0x278] sm:$0xff] %v4537_v0  ;;  %v4444_v29 = vmul.f32 %v9473_v27, %v4412_v56  ;;  %v5466_v26 = vadd.f32 %v9465_v25, %v5348_v8  ;;  %v7274_v7 = vpop.f32.mrb[70].mxu1  ;;  %v9941_v0 = vld [vmem:[#allocation3_spill] sm:$0xff] }
 0x2f8   : > { %v5591_v33 = vadd.f32 %v5559_v51, %v9939_v53  ;;  %v4413_v6 = vadd.f32 %v7270_v4, %v9465_v25  ;;  %6532 = vst [vmem:[%s8964_s8 + $0x378] sm:$0xff] %v5593_v28  ;;  %v5500_v21 = vmul.f32 %v9473_v27, %v5468_v23  ;;  %v4442_v45 = vmul.f32 %v9473_v27, %v4410_v54  ;;  %v4311_v43 = vpop.f32.mrb[71].mxu1  ;;  %v9942_v54 = vld [vmem:[#allocation4_spill] sm:$0xff] }
 0x2f9   : > { %6413 = vst [vmem:[%s8964_s8 + $0x268] sm:$0xff] %v4535_v17  ;;  %v5469_v5 = vadd.f32 %v7406_v24, %v9465_v25  ;;  %v4411_v50 = vadd.f32 %v9465_v25, %v4295_v52  ;;  %v4476_v22 = vadd.f32 %v9485_v39, %v4444_v29  ;;  %v5498_v8 = vmul.f32 %v9473_v27, %v5466_v26 }
 0x2fa   : > { %6530 = vst [vmem:[%s8964_s8 + $0x368] sm:$0xff] %v5591_v33  ;;  %v4445_v4 = vmul.f32 %v9473_v27, %v4413_v6  ;;  %v5467_v20 = vadd.f32 %v9465_v25, %v5351_v30  ;;  %v5532_v38 = vadd.f32 %v9485_v39, %v5500_v21  ;;  %v4474_v47 = vadd.f32 %v9485_v39, %v4442_v45 }
 0x2fb   : > { %v5501_v10 = vmul.f32 %v9473_v27, %v5469_v5  ;;  %v4443_v24 = vmul.f32 %v9473_v27, %v4411_v50  ;;  %v4508_v41 = vmax.f32 %v4476_v22, 0.0  ;;  %v5530_v52 = vadd.f32 %v9485_v39, %v5498_v8  ;;  %v9668_v42 = vpop.f32.mrb[72].mxu0  ;;  %v9943_v5 = vld [vmem:[#allocation5_spill] sm:$0xff] }
 0x2fc   : > { %v4477_v44 = vadd.f32 %v9485_v39, %v4445_v4  ;;  %v5499_v15 = vmul.f32 %v9473_v27, %v5467_v20  ;;  %v5564_v12 = vmax.f32 %v5532_v38, 0.0  ;;  %v4506_v59 = vmax.f32 %v4474_v47, 0.0  ;;  %v9674_v16 = vpop.f32.mrb[73].mxu0 }
 0x2fd   : > { %v5533_v30 = vadd.f32 %v9485_v39, %v5501_v10  ;;  %v4475_v46 = vadd.f32 %v9485_v39, %v4443_v24  ;;  %v4540_v57 = vadd.f32 %v9940_v9, %v4508_v41  ;;  %v5562_v61 = vmax.f32 %v5530_v52, 0.0  ;;  %v9672_v49 = vpop.f32.mrb[72].mxu1  ;;  %v9680_v17 = vpop.f32.mrb[74].mxu0 }
 0x2fe   : > { %v4509_v63 = vmax.f32 %v4477_v44, 0.0  ;;  %v5531_v37 = vadd.f32 %v9485_v39, %v5499_v15  ;;  %v5596_v40 = vadd.f32 %v9940_v9, %v5564_v12  ;;  %v4538_v51 = vadd.f32 %v4506_v59, %v9941_v0  ;;  %v9678_v53 = vpop.f32.mrb[73].mxu1  ;;  %v9688_v21 = vpop.f32.mrb[75].mxu0 }
 0x2ff   : > { %v5565_v56 = vmax.f32 %v5533_v30, 0.0  ;;  %v4507_v28 = vmax.f32 %v4475_v46, 0.0  ;;  %6418 = vst [vmem:[%s8964_s8 + $0x290] sm:$0xff] %v4540_v57  ;;  %v5594_v23 = vadd.f32 %v5562_v61, %v9941_v0  ;;  %v4416_v26 = vadd.f32 %v7273_v62, %v9465_v25  ;;  %v9686_v6 = vpop.f32.mrb[74].mxu1 }
 0x300   : > { %v4541_v33 = vadd.f32 %v9942_v54, %v4509_v63  ;;  %v5563_v29 = vmax.f32 %v5531_v37, 0.0  ;;  %6535 = vst [vmem:[%s8964_s8 + $0x390] sm:$0xff] %v5596_v40  ;;  %6416 = vst [vmem:[%s8964_s8 + $0x280] sm:$0xff] %v4538_v51  ;;  %v5472_v22 = vadd.f32 %v9624_v19, %v9465_v25  ;;  %v4414_v8 = vadd.f32 %v9465_v25, %v4308_v55  ;;  %v9697_v4 = vpop.f32.mrb[75].mxu1 }
 0x301   : > { %v5597_v45 = vadd.f32 %v9942_v54, %v5565_v56  ;;  %v4539_v50 = vadd.f32 %v4507_v28, %v9943_v5  ;;  %6533 = vst [vmem:[%s8964_s8 + $0x380] sm:$0xff] %v5594_v23  ;;  %v4448_v20 = vmul.f32 %v9473_v27, %v4416_v26  ;;  %v5470_v38 = vadd.f32 %v9465_v25, %v9630_v2 }
 0x302   : > { %6419 = vst [vmem:[%s8964_s8 + $0x298] sm:$0xff] %v4541_v33  ;;  %v5595_v62 = vadd.f32 %v5563_v29, %v9943_v5  ;;  %v4417_v47 = vadd.f32 %v7274_v7, %v9465_v25  ;;  %v5504_v10 = vmul.f32 %v9473_v27, %v5472_v22  ;;  %v4446_v19 = vmul.f32 %v9473_v27, %v4414_v8 }
 0x303   : > { %6536 = vst [vmem:[%s8964_s8 + $0x398] sm:$0xff] %v5597_v45  ;;  %6417 = vst [vmem:[%s8964_s8 + $0x288] sm:$0xff] %v4539_v50  ;;  %v5473_v55 = vadd.f32 %v9638_v18, %v9465_v25  ;;  %v4415_v24 = vadd.f32 %v9465_v25, %v4311_v43  ;;  %v4480_v41 = vadd.f32 %v9485_v39, %v4448_v20  ;;  %v9723_v59 = vpop.f32.mrb[76].mxu0 }
 0x304   : > { %6534 = vst [vmem:[%s8964_s8 + $0x388] sm:$0xff] %v5595_v62  ;;  %v5502_v52 = vmul.f32 %v9473_v27, %v5470_v38  ;;  %v4449_v2 = vmul.f32 %v9473_v27, %v4417_v47  ;;  %v5471_v7 = vadd.f32 %v9465_v25, %v9646_v36  ;;  %v5536_v44 = vadd.f32 %v9485_v39, %v5504_v10  ;;  %v9730_v36 = vpop.f32.mrb[77].mxu0 }
 0x305   : > { %v4478_v15 = vadd.f32 %v9485_v39, %v4446_v19  ;;  %v5505_v12 = vmul.f32 %v9473_v27, %v5473_v55  ;;  %v4447_v18 = vmul.f32 %v9473_v27, %v4415_v24  ;;  %v4512_v43 = vmax.f32 %v4480_v41, 0.0  ;;  %v9728_v57 = vpop.f32.mrb[76].mxu1  ;;  %v9736_v51 = vpop.f32.mrb[78].mxu0 }
 0x306   : > { %v5534_v30 = vadd.f32 %v9485_v39, %v5502_v52  ;;  %v4481_v46 = vadd.f32 %v9485_v39, %v4449_v2  ;;  %v5503_v9 = vmul.f32 %v9473_v27, %v5471_v7  ;;  %v5568_v61 = vmax.f32 %v5536_v44, 0.0  ;;  %v9734_v0 = vpop.f32.mrb[77].mxu1  ;;  %v9742_v29 = vpop.f32.mrb[79].mxu0 }
 0x307   : > { %v4510_v63 = vmax.f32 %v4478_v15, 0.0  ;;  %v5537_v37 = vadd.f32 %v9485_v39, %v5505_v12  ;;  %v4479_v40 = vadd.f32 %v9485_v39, %v4447_v18  ;;  %v4544_v56 = vadd.f32 %v9925_v60, %v4512_v43  ;;  %v9740_v33 = vpop.f32.mrb[78].mxu1 }
 0x308   : > { %v5566_v28 = vmax.f32 %v5534_v30, 0.0  ;;  %v4513_v23 = vmax.f32 %v4481_v46, 0.0  ;;  %v5535_v54 = vadd.f32 %v9485_v39, %v5503_v9  ;;  %v5600_v26 = vadd.f32 %v9925_v60, %v5568_v61  ;;  %v9746_v22 = vpop.f32.mrb[79].mxu1 }
 0x309   : > { %v4542_v45 = vadd.f32 %v4510_v63, %v9926_v35  ;;  %v5569_v5 = vmax.f32 %v5537_v37, 0.0  ;;  %v4511_v50 = vmax.f32 %v4479_v40, 0.0  ;;  %6422 = vst [vmem:[%s8964_s8 + $0x2b0] sm:$0xff] %v4544_v56  ;;  %v4420_v38 = vadd.f32 %v9672_v49, %v9465_v25 }
 0x30a   : > { %v5598_v8 = vadd.f32 %v5566_v28, %v9926_v35  ;;  %v4545_v62 = vadd.f32 %v9927_v48, %v4513_v23  ;;  %v5567_v20 = vmax.f32 %v5535_v54, 0.0  ;;  %6539 = vst [vmem:[%s8964_s8 + $0x3b0] sm:$0xff] %v5600_v26  ;;  %v5476_v10 = vadd.f32 %v9668_v42, %v9465_v25 }
 0x30b   : > { %6420 = vst [vmem:[%s8964_s8 + $0x2a0] sm:$0xff] %v4542_v45  ;;  %v5601_v60 = vadd.f32 %v9927_v48, %v5569_v5  ;;  %v4543_v47 = vadd.f32 %v4511_v50, %v9928_v1  ;;  %v4418_v35 = vadd.f32 %v9465_v25, %v9678_v53  ;;  %v4452_v55 = vmul.f32 %v9473_v27, %v4420_v38 }
 0x30c   : > { %6537 = vst [vmem:[%s8964_s8 + $0x3a0] sm:$0xff] %v5598_v8  ;;  %6423 = vst [vmem:[%s8964_s8 + $0x2b8] sm:$0xff] %v4545_v62  ;;  %v5599_v19 = vadd.f32 %v5567_v20, %v9928_v1  ;;  %v5474_v49 = vadd.f32 %v9465_v25, %v9674_v16  ;;  %v4421_v48 = vadd.f32 %v9686_v6, %v9465_v25 }
 0x30d   : > { %6540 = vst [vmem:[%s8964_s8 + $0x3b8] sm:$0xff] %v5601_v60  ;;  %6421 = vst [vmem:[%s8964_s8 + $0x2a8] sm:$0xff] %v4543_v47  ;;  %v5508_v24 = vmul.f32 %v9473_v27, %v5476_v10  ;;  %v4450_v42 = vmul.f32 %v9473_v27, %v4418_v35  ;;  %v5477_v53 = vadd.f32 %v9680_v17, %v9465_v25 }
 0x30e   : > { %v4419_v1 = vadd.f32 %v9465_v25, %v9697_v4  ;;  %6538 = vst [vmem:[%s8964_s8 + $0x3a8] sm:$0xff] %v5599_v19  ;;  %v4484_v41 = vadd.f32 %v9485_v39, %v4452_v55  ;;  %v5506_v16 = vmul.f32 %v9473_v27, %v5474_v49  ;;  %v4453_v52 = vmul.f32 %v9473_v27, %v4421_v48 }
 0x30f   : > { %v5475_v6 = vadd.f32 %v9465_v25, %v9688_v21  ;;  %v5540_v2 = vadd.f32 %v9485_v39, %v5508_v24  ;;  %v4482_v7 = vadd.f32 %v9485_v39, %v4450_v42  ;;  %v5509_v44 = vmul.f32 %v9473_v27, %v5477_v53 }
 0x310   : > { %v4451_v17 = vmul.f32 %v9473_v27, %v4419_v1  ;;  %v4516_v15 = vmax.f32 %v4484_v41, 0.0  ;;  %v5538_v4 = vadd.f32 %v9485_v39, %v5506_v16  ;;  %v4485_v12 = vadd.f32 %v9485_v39, %v4453_v52 }
 0x311   : > { %v5507_v18 = vmul.f32 %v9473_v27, %v5475_v6  ;;  %v5572_v43 = vmax.f32 %v5540_v2, 0.0  ;;  %v4514_v30 = vmax.f32 %v4482_v7, 0.0  ;;  %v5541_v21 = vadd.f32 %v9485_v39, %v5509_v44 }
 0x312   : > { %v4483_v46 = vadd.f32 %v9485_v39, %v4451_v17  ;;  %v4548_v9 = vadd.f32 %v9929_v32, %v4516_v15  ;;  %v5570_v61 = vmax.f32 %v5538_v4, 0.0  ;;  %v4517_v63 = vmax.f32 %v4485_v12, 0.0 }
 0x313   : > { %v5539_v37 = vadd.f32 %v9485_v39, %v5507_v18  ;;  %v5604_v40 = vadd.f32 %v9929_v32, %v5572_v43  ;;  %v4546_v56 = vadd.f32 %v4514_v30, %v9930_v34  ;;  %v5573_v28 = vmax.f32 %v5541_v21, 0.0 }
 0x314   : > { %v4515_v23 = vmax.f32 %v4483_v46, 0.0  ;;  %6426 = vst [vmem:[%s8964_s8 + $0x2d0] sm:$0xff] %v4548_v9  ;;  %v5602_v54 = vadd.f32 %v5570_v61, %v9930_v34  ;;  %v4549_v26 = vadd.f32 %v9931_v14, %v4517_v63  ;;  %v4424_v5 = vadd.f32 %v9728_v57, %v9465_v25 }
 0x315   : > { %v5571_v45 = vmax.f32 %v5539_v37, 0.0  ;;  %6543 = vst [vmem:[%s8964_s8 + $0x3d0] sm:$0xff] %v5604_v40  ;;  %6424 = vst [vmem:[%s8964_s8 + $0x2c0] sm:$0xff] %v4546_v56  ;;  %v5605_v32 = vadd.f32 %v9931_v14, %v5573_v28  ;;  %v5480_v8 = vadd.f32 %v9723_v59, %v9465_v25  ;;  %v4422_v34 = vadd.f32 %v9465_v25, %v9734_v0 }
 0x316   : > { %v4547_v50 = vadd.f32 %v4515_v23, %v9932_v58  ;;  %6541 = vst [vmem:[%s8964_s8 + $0x3c0] sm:$0xff] %v5602_v54  ;;  %6427 = vst [vmem:[%s8964_s8 + $0x2d8] sm:$0xff] %v4549_v26  ;;  %v4456_v20 = vmul.f32 %v9473_v27, %v4424_v5  ;;  %v5478_v57 = vadd.f32 %v9465_v25, %v9730_v36 }
 0x317   : > { %v5603_v62 = vadd.f32 %v5571_v45, %v9932_v58  ;;  %v4425_v14 = vadd.f32 %v9740_v33, %v9465_v25  ;;  %6544 = vst [vmem:[%s8964_s8 + $0x3d8] sm:$0xff] %v5605_v32  ;;  %v5512_v38 = vmul.f32 %v9473_v27, %v5480_v8  ;;  %v4454_v59 = vmul.f32 %v9473_v27, %v4422_v34 }
 0x318   : > { %6425 = vst [vmem:[%s8964_s8 + $0x2c8] sm:$0xff] %v4547_v50  ;;  %v5481_v0 = vadd.f32 %v9736_v51, %v9465_v25  ;;  %v4423_v58 = vadd.f32 %v9465_v25, %v9746_v22  ;;  %v4488_v60 = vadd.f32 %v9485_v39, %v4456_v20  ;;  %v5510_v36 = vmul.f32 %v9473_v27, %v5478_v57 }
 0x319   : > { %6542 = vst [vmem:[%s8964_s8 + $0x3c8] sm:$0xff] %v5603_v62  ;;  %v4457_v47 = vmul.f32 %v9473_v27, %v4425_v14  ;;  %v5479_v33 = vadd.f32 %v9465_v25, %v9742_v29  ;;  %v5544_v10 = vadd.f32 %v9485_v39, %v5512_v38  ;;  %v4486_v35 = vadd.f32 %v9485_v39, %v4454_v59 }
 0x31a   : > { %v5513_v19 = vmul.f32 %v9473_v27, %v5481_v0  ;;  %v4455_v51 = vmul.f32 %v9473_v27, %v4423_v58  ;;  %v4520_v55 = vmax.f32 %v4488_v60, 0.0  ;;  %v5542_v22 = vadd.f32 %v9485_v39, %v5510_v36 }
 0x31b   : > { %v4489_v49 = vadd.f32 %v9485_v39, %v4457_v47  ;;  %v5511_v48 = vmul.f32 %v9473_v27, %v5479_v33  ;;  %v5576_v24 = vmax.f32 %v5544_v10, 0.0  ;;  %v4518_v42 = vmax.f32 %v4486_v35, 0.0 }
 0x31c   : > { %v5545_v25 = vadd.f32 %v9485_v39, %v5513_v19  ;;  %v4487_v29 = vadd.f32 %v9485_v39, %v4455_v51  ;;  %v4552_v53 = vadd.f32 %v9933_v13, %v4520_v55  ;;  %v5574_v1 = vmax.f32 %v5542_v22, 0.0 }
 0x31d   : > { %v4521_v41 = vmax.f32 %v4489_v49, 0.0  ;;  %v5543_v16 = vadd.f32 %v9485_v39, %v5511_v48  ;;  %v5608_v52 = vadd.f32 %v9933_v13, %v5576_v24  ;;  %v4550_v27 = vadd.f32 %v4518_v42, %v9934_v11 }
 0x31e   : > { %v5577_v6 = vmax.f32 %v5545_v25, 0.0  ;;  %v4519_v2 = vmax.f32 %v4487_v29, 0.0  ;;  %6430 = vst [vmem:[%s8964_s8 + $0x2f0] sm:$0xff] %v4552_v53  ;;  %v5606_v7 = vadd.f32 %v5574_v1, %v9934_v11 }
 0x31f   : > { %v4553_v44 = vadd.f32 %v9935_v31, %v4521_v41  ;;  %v5575_v17 = vmax.f32 %v5543_v16, 0.0  ;;  %6547 = vst [vmem:[%s8964_s8 + $0x3f0] sm:$0xff] %v5608_v52  ;;  %6428 = vst [vmem:[%s8964_s8 + $0x2e0] sm:$0xff] %v4550_v27 }
 0x320   : > { %v5609_v15 = vadd.f32 %v9935_v31, %v5577_v6  ;;  %v4551_v39 = vadd.f32 %v4519_v2, %v9936_v3  ;;  %6545 = vst [vmem:[%s8964_s8 + $0x3e0] sm:$0xff] %v5606_v7 }
 0x321   : > { %6431 = vst [vmem:[%s8964_s8 + $0x2f8] sm:$0xff] %v4553_v44  ;;  %v5607_v13 = vadd.f32 %v5575_v17, %v9936_v3 }
 0x322   : > { %6548 = vst [vmem:[%s8964_s8 + $0x3f8] sm:$0xff] %v5609_v15  ;;  %6429 = vst [vmem:[%s8964_s8 + $0x2e8] sm:$0xff] %v4551_v39 }
 0x323   : > { %6546 = vst [vmem:[%s8964_s8 + $0x3e8] sm:$0xff] %v5607_v13 }
 0x324 PF: > { %s16_s23 = sadd.s32 1, %s8032_s23   ;;  %s9944_s21 = smov %s8028_s22 }
 0x325   : > { %p13_p5 = scmp.ge.s32.totalorder %s16_s23, 4   ;;  %s9945_s22 = smov %s9947_s24 }
 0x327   :  { %15 = sbr.rel (!%p13_p5) target bundleno = 2 (0x2), region = 101 }

</bundles_post_ra>
